<compile_context>
chip_gen: v6e
topology: v6e:2x2x1
jax: 0.10.0
libtpu: 0.0.40
codegen_flags: <defaults>
</compile_context>

<pallas_src>
import functools

import numpy as np
import jax
import jax.numpy as jnp
from jax.experimental import pallas as pl
from jax.experimental.pallas import tpu as pltpu


# ---------------------------------------------------------------------------
# Geometry of the miniature backbone (stand-in for resnet50, feat_dim = 2048)
# ---------------------------------------------------------------------------
H_IN = W_IN = 16          # input spatial size
C_IN = 3                  # RGB
C1 = 64                   # conv1 channels  (3x3, stride 1, pad 1)
C2 = 128                  # conv2 channels  (3x3, stride 2, pad 1)
FEAT_DIM = 2048           # conv3 channels  (1x1)  == resnet50 feat_dim
H2 = W2 = 8               # spatial size after the stride-2 conv
N_TAPS = 9                # 3x3 kernel taps
K1_PAD = 32               # conv1 contraction 3*3*3 = 27 padded to 32
K2 = N_TAPS * C1          # 576: fused conv2 contraction depth
NUM_CLASSES_PAD = 128     # classifier output padded to a lane-dense width
N_CHUNK = 512             # conv3 N-chunk size (FEAT_DIM // N_CHUNK chunks)
TB_MAX = 8                # images per grid step (keeps v7x VMEM footprint tiny)

assert FEAT_DIM % N_CHUNK == 0


# ---------------------------------------------------------------------------
# The single fused Pallas kernel (one grid step == TB images)
# ---------------------------------------------------------------------------
def _fused_kernel(p1_ref, w1_ref, b1_ref, w2_ref, b2_ref, w3_ref, b3_ref,
                  wc_ref, bc_ref, feat_ref, logits_ref):
    f32, bf16 = jnp.float32, jnp.bfloat16
    TB = p1_ref.shape[0]
    HW1 = H_IN * W_IN
    HW2 = H2 * W2

    # --- conv1: one (TB*256, 32) @ (32, 64) matmul, f32 bias/ReLU epilogue.
    p1 = p1_ref[...].reshape(TB * HW1, K1_PAD)
    h1 = jnp.dot(p1, w1_ref[...], preferred_element_type=f32)
    h1 = jnp.maximum(h1 + b1_ref[...], 0.0).astype(bf16)            # (TB*256, 64)

    # --- conv2 (3x3, stride 2, pad 1): build the (TB*64, 576) patch matrix from the
    #     four parity planes of h1 (rows were emitted in parity-block order), then
    #     ONE deep-K matmul.  h1 never leaves VMEM/vregs; no gather matmuls.
    h1g = h1.reshape(TB, 4, HW2, C1)            # groups: ee, eo, oe, oo
    pieces = []
    for di in range(3):
        for dj in range(3):
            g = 2 * (0 if di == 1 else 1) + (0 if dj == 1 else 1)
            plane = h1g[:, g].reshape(TB, H2, W2, C1)
            if di == 0:   # tap needs sub-row oi-1: shift down one sub-row, zero row 0
                plane = jnp.concatenate(
                    [jnp.zeros((TB, 1, W2, C1), bf16), plane[:, :H2 - 1]], axis=1)
            if dj == 0:   # tap needs sub-col oj-1: shift right one sub-col, zero col 0
                plane = jnp.concatenate(
                    [jnp.zeros((TB, H2, 1, C1), bf16), plane[:, :, :W2 - 1]], axis=2)
            pieces.append(plane)
    patches2 = jnp.concatenate(pieces, axis=-1).reshape(TB * HW2, K2)

    h2 = jnp.dot(patches2, w2_ref[...], preferred_element_type=f32)  # (TB*64, 128)
    h2 = jnp.maximum(h2 + b2_ref[...], 0.0).astype(bf16)

    # --- conv3 (1x1) chunked along N, with fused GAP and classifier K-chunk
    #     accumulation: the (TB*64, 2048) f32 activation never materializes.
    logits = jnp.zeros((TB, NUM_CLASSES_PAD), f32)
    inv_hw = 1.0 / HW2
    for c in range(FEAT_DIM // N_CHUNK):
        lo, hi = c * N_CHUNK, (c + 1) * N_CHUNK
        h3c = jnp.dot(h2, w3_ref[:, lo:hi], preferred_element_type=f32)
        h3c = jnp.maximum(h3c + b3_ref[:, lo:hi], 0.0)               # (TB*64, 512)
        featc = jnp.sum(h3c.reshape(TB, HW2, N_CHUNK), axis=1) * inv_hw   # (TB, 512)
        feat_ref[:, lo:hi] = featc.astype(feat_ref.dtype)
        logits = logits + jnp.dot(featc.astype(bf16), wc_ref[lo:hi, :],
                                  preferred_element_type=f32)
    logits_ref[...] = (logits + bc_ref[...]).astype(logits_ref.dtype)


def _fused_forward(patches1, w1, b1, w2, b2, w3, b3, wc, bc, tb):
    b_pad = patches1.shape[0]
    hw1 = H_IN * W_IN
    return pl.pallas_call(
        _fused_kernel,
        out_shape=(
            jax.ShapeDtypeStruct((b_pad, FEAT_DIM), jnp.float32),
            jax.ShapeDtypeStruct((b_pad, NUM_CLASSES_PAD), jnp.float32),
        ),
        grid=(b_pad // tb,),
        in_specs=[
            pl.BlockSpec((tb, hw1, K1_PAD), lambda i: (i, 0, 0)),           # conv1 patches
            pl.BlockSpec((K1_PAD, C1), lambda i: (0, 0)),                   # w1
            pl.BlockSpec((1, C1), lambda i: (0, 0)),                        # b1
            pl.BlockSpec((K2, C2), lambda i: (0, 0)),                       # w2 (tap-fused)
            pl.BlockSpec((1, C2), lambda i: (0, 0)),                        # b2
            pl.BlockSpec((C2, FEAT_DIM), lambda i: (0, 0)),                 # w3
            pl.BlockSpec((1, FEAT_DIM), lambda i: (0, 0)),                  # b3
            pl.BlockSpec((FEAT_DIM, NUM_CLASSES_PAD), lambda i: (0, 0)),    # classifier w
            pl.BlockSpec((1, NUM_CLASSES_PAD), lambda i: (0, 0)),           # classifier b
        ],
        out_specs=(
            pl.BlockSpec((tb, FEAT_DIM), lambda i: (i, 0)),
            pl.BlockSpec((tb, NUM_CLASSES_PAD), lambda i: (i, 0)),
        ),
        compiler_params=pltpu.CompilerParams(dimension_semantics=("parallel",)),
    )(patches1, w1, b1, w2, b2, w3, b3, wc, bc)


# ---------------------------------------------------------------------------
# Wrapper-side glue (tiny, layout only)
# ---------------------------------------------------------------------------
def _im2col_conv1_parity(x_nhwc):
    """3x3/s1/p1 patches of the raw (B,16,16,3) input, (di,dj,c) tap order, K->32.

    Rows are emitted in PARITY-BLOCK order per image: 4 groups of 64 rows
    [(row even, col even), (even, odd), (odd, even), (odd, odd)], each group
    row-major over its 8x8 sub-grid.  This makes conv2's stride-2 taps plain
    slices of conv1's output inside the kernel.
    """
    B, H, W, C = x_nhwc.shape
    xp = jnp.pad(x_nhwc, ((0, 0), (1, 1), (1, 1), (0, 0)))
    taps = [xp[:, di:di + H, dj:dj + W, :] for di in range(3) for dj in range(3)]
    p = jnp.stack(taps, axis=3).reshape(B, H, W, N_TAPS * C)        # (B,16,16,27)
    p = p.reshape(B, H // 2, 2, W // 2, 2, N_TAPS * C)              # (B,oi,ri,oj,rj,27)
    p = jnp.transpose(p, (0, 2, 4, 1, 3, 5))                        # (B,ri,rj,oi,oj,27)
    p = p.reshape(B, H * W, N_TAPS * C)
    p = jnp.pad(p, ((0, 0), (0, 0), (0, K1_PAD - N_TAPS * C)))
    return p.astype(jnp.bfloat16)


# ---------------------------------------------------------------------------
# Parameters
# ---------------------------------------------------------------------------
def init_params(key, num_classes):
    ks = jax.random.split(key, 8)

    def he(k, shape, fan_in):
        return jax.random.normal(k, shape, jnp.float32) * np.sqrt(2.0 / fan_in)

    return {
        "w1": he(ks[0], (3, 3, C_IN, C1), 9 * C_IN).astype(jnp.bfloat16),
        "b1": (jax.random.normal(ks[1], (C1,), jnp.float32) * 0.01),
        "w2": he(ks[2], (3, 3, C1, C2), 9 * C1).astype(jnp.bfloat16),
        "b2": (jax.random.normal(ks[3], (C2,), jnp.float32) * 0.01),
        "w3": he(ks[4], (1, 1, C2, FEAT_DIM), C2).astype(jnp.bfloat16),
        "b3": (jax.random.normal(ks[5], (FEAT_DIM,), jnp.float32) * 0.01),
        "wc": he(ks[6], (FEAT_DIM, num_classes), FEAT_DIM).astype(jnp.bfloat16),
        "bc": (jax.random.normal(ks[7], (num_classes,), jnp.float32) * 0.01),
    }


def prepare_kernel_params(params, num_classes):
    """One-time reshape/pad to kernel-ready layouts (keeps glue off the hot path)."""
    w1 = jnp.pad(params["w1"].reshape(N_TAPS * C_IN, C1),
                 ((0, K1_PAD - N_TAPS * C_IN), (0, 0)))
    return {
        "w1": w1.astype(jnp.bfloat16),
        "b1": params["b1"].reshape(1, C1).astype(jnp.float32),
        "w2": params["w2"].reshape(K2, C2).astype(jnp.bfloat16),      # (9*64, 128)
        "b2": params["b2"].reshape(1, C2).astype(jnp.float32),
        "w3": params["w3"].reshape(C2, FEAT_DIM).astype(jnp.bfloat16),
        "b3": params["b3"].reshape(1, FEAT_DIM).astype(jnp.float32),
        "wc": jnp.pad(params["wc"],
                      ((0, 0), (0, NUM_CLASSES_PAD - num_classes))).astype(jnp.bfloat16),
        "bc": jnp.pad(params["bc"],
                      ((0, NUM_CLASSES_PAD - num_classes),)).reshape(
                          1, NUM_CLASSES_PAD).astype(jnp.float32),
    }


# ---------------------------------------------------------------------------
# Forward pass (mirrors PawprintModel.forward, use_local_features=False)
# ---------------------------------------------------------------------------
@functools.partial(jax.jit, static_argnames=("num_classes", "tile_batch"))
def pawprint_forward(kp, x_nchw, *, num_classes, tile_batch=TB_MAX):
    B = x_nchw.shape[0]
    tb = min(tile_batch, B)                      # tb == B (<=8) or tb == 8
    b_pad = ((B + tb - 1) // tb) * tb
    x = jnp.transpose(x_nchw, (0, 2, 3, 1))      # NCHW -> NHWC
    patches1 = _im2col_conv1_parity(x)
    if b_pad != B:
        patches1 = jnp.pad(patches1, ((0, b_pad - B), (0, 0), (0, 0)))
    feat, logits_pad = _fused_forward(
        patches1, kp["w1"], kp["b1"], kp["w2"], kp["b2"],
        kp["w3"], kp["b3"], kp["wc"], kp["bc"], tb)
    features = feat[:B]
    logits = logits_pad[:B, :num_classes]
    return logits, features


# ---------------------------------------------------------------------------
# Pure-JAX reference (same bf16 cast points) for a numerical sanity check
# ---------------------------------------------------------------------------
def reference_forward(params, x_nchw, num_classes):
    bf16 = jnp.bfloat16
    x = jnp.transpose(x_nchw, (0, 2, 3, 1)).astype(bf16)

    def conv(h, w, b, stride, pad):
        y = jax.lax.conv_general_dilated(
            h.astype(bf16), w.astype(bf16), window_strides=(stride, stride),
            padding=[(pad, pad), (pad, pad)],
            dimension_numbers=("NHWC", "HWIO", "NHWC"),
            preferred_element_type=jnp.float32)
        return jnp.maximum(y + b, 0.0)

    h = conv(x, params["w1"], params["b1"], 1, 1)
    h = conv(h, params["w2"], params["b2"], 2, 1)
    h = conv(h, params["w3"], params["b3"], 1, 0)
    feat = jnp.mean(h, axis=(1, 2))
    logits = jnp.dot(feat.astype(bf16), params["wc"].astype(bf16),
                     preferred_element_type=jnp.float32) + params["bc"]
    return logits, feat


# ---------------------------------------------------------------------------
if __name__ == "__main__":
    key = jax.random.PRNGKey(0)
    k_x, k_p, k_x2 = jax.random.split(key, 3)

    num_classes = 10
    params = init_params(k_p, num_classes)
    kparams = prepare_kernel_params(params, num_classes)

    # --- small batch (tb == B path)
    B, C, H, W = 2, 3, 16, 16
    x = jax.random.uniform(k_x, (B, C, H, W), jnp.float32)
    logits, features = pawprint_forward(kparams, x, num_classes=num_classes)
    jax.block_until_ready((logits, features))

    assert logits.shape == (B, num_classes), logits.shape
    assert features.shape == (B, FEAT_DIM), features.shape
    assert logits.dtype == jnp.float32 and features.dtype == jnp.float32
    assert bool(jnp.all(jnp.isfinite(logits))) and bool(jnp.all(jnp.isfinite(features)))

    ref_logits, ref_feat = reference_forward(params, x, num_classes)
    assert jnp.allclose(features, ref_feat, atol=1e-2, rtol=1e-2)
    assert jnp.allclose(logits, ref_logits, atol=1e-2, rtol=1e-2)

    # --- larger batch exercising TB=8 tiling + batch padding (grid of 2 blocks)
    B2 = 10
    x2 = jax.random.uniform(k_x2, (B2, C, H, W), jnp.float32)
    logits2, features2 = pawprint_forward(kparams, x2, num_classes=num_classes)
    jax.block_until_ready((logits2, features2))
    ref_logits2, ref_feat2 = reference_forward(params, x2, num_classes)
    assert logits2.shape == (B2, num_classes) and features2.shape == (B2, FEAT_DIM)
    assert jnp.allclose(features2, ref_feat2, atol=1e-2, rtol=1e-2)
    assert jnp.allclose(logits2, ref_logits2, atol=1e-2, rtol=1e-2)

    print("KERNEL_OK")
</pallas_src>

<mosaic_0001>
module attributes {stable_mosaic.version = 11 : i64} {
  func.func @_fused_kernel(%arg0: i32, %arg1: memref<2x256x32xbf16, #tpu.memory_space<vmem>>, %arg2: memref<32x64xbf16, #tpu.memory_space<vmem>>, %arg3: memref<1x64xf32, #tpu.memory_space<vmem>>, %arg4: memref<576x128xbf16, #tpu.memory_space<vmem>>, %arg5: memref<1x128xf32, #tpu.memory_space<vmem>>, %arg6: memref<128x2048xbf16, #tpu.memory_space<vmem>>, %arg7: memref<1x2048xf32, #tpu.memory_space<vmem>>, %arg8: memref<2048x128xbf16, #tpu.memory_space<vmem>>, %arg9: memref<1x128xf32, #tpu.memory_space<vmem>>, %arg10: memref<2x2048xf32, #tpu.memory_space<vmem>>, %arg11: memref<2x128xf32, #tpu.memory_space<vmem>>) attributes {dimension_semantics = [#tpu.dimension_semantics<parallel>], iteration_bounds = array<i64: 1>, scalar_prefetch = 0 : i64, scratch_operands = 0 : i64, tpu.core_type = #tpu.core_type<tc>, window_params = [{transform_indices = @transform_0, window_bounds = array<i64: 2, 256, 32>}, {pipeline_mode = #tpu.pipeline_mode<synchronous>, transform_indices = @transform_1, window_bounds = array<i64: 32, 64>}, {pipeline_mode = #tpu.pipeline_mode<synchronous>, transform_indices = @transform_2, window_bounds = array<i64: 1, 64>}, {pipeline_mode = #tpu.pipeline_mode<synchronous>, transform_indices = @transform_3, window_bounds = array<i64: 576, 128>}, {pipeline_mode = #tpu.pipeline_mode<synchronous>, transform_indices = @transform_4, window_bounds = array<i64: 1, 128>}, {pipeline_mode = #tpu.pipeline_mode<synchronous>, transform_indices = @transform_5, window_bounds = array<i64: 128, 2048>}, {pipeline_mode = #tpu.pipeline_mode<synchronous>, transform_indices = @transform_6, window_bounds = array<i64: 1, 2048>}, {pipeline_mode = #tpu.pipeline_mode<synchronous>, transform_indices = @transform_7, window_bounds = array<i64: 2048, 128>}, {pipeline_mode = #tpu.pipeline_mode<synchronous>, transform_indices = @transform_8, window_bounds = array<i64: 1, 128>}, {transform_indices = @transform_9, window_bounds = array<i64: 2, 2048>}, {transform_indices = @transform_10, window_bounds = array<i64: 2, 128>}]} {
    %c0 = arith.constant 0 : index
    %c0_0 = arith.constant 0 : index
    %c0_1 = arith.constant 0 : index
    %0 = vector.load %arg1[%c0, %c0_0, %c0_1] : memref<2x256x32xbf16, #tpu.memory_space<vmem>>, vector<2x256x32xbf16>
    %1 = vector.shape_cast %0 : vector<2x256x32xbf16> to vector<512x32xbf16>
    %c0_2 = arith.constant 0 : index
    %c0_3 = arith.constant 0 : index
    %2 = vector.load %arg2[%c0_2, %c0_3] : memref<32x64xbf16, #tpu.memory_space<vmem>>, vector<32x64xbf16>
    %cst = arith.constant dense<0.000000e+00> : vector<512x64xf32>
    %3 = tpu.matmul %1, %2, %cst {dimension_numbers = #tpu.dot_dimension_numbers<[1], [0], [0], [1], [0, 0, 1, 1], [], []>} : vector<512x32xbf16>, vector<32x64xbf16>, vector<512x64xf32> -> vector<512x64xf32>
    %c0_4 = arith.constant 0 : index
    %c0_5 = arith.constant 0 : index
    %4 = vector.load %arg3[%c0_4, %c0_5] : memref<1x64xf32, #tpu.memory_space<vmem>>, vector<1x64xf32>
    %5 = vector.broadcast %4 : vector<1x64xf32> to vector<512x64xf32>
    %6 = arith.addf %3, %5 : vector<512x64xf32>
    %cst_6 = arith.constant 0.000000e+00 : f32
    %7 = vector.broadcast %cst_6 : f32 to vector<512x64xf32>
    %8 = arith.maximumf %6, %7 : vector<512x64xf32>
    %9 = arith.truncf %8 : vector<512x64xf32> to vector<512x64xbf16>
    %10 = vector.shape_cast %9 : vector<512x64xbf16> to vector<2x4x64x64xbf16>
    %11 = vector.extract_strided_slice %10 {offsets = [0, 3, 0, 0], sizes = [2, 1, 64, 64], strides = [1, 1, 1, 1]} : vector<2x4x64x64xbf16> to vector<2x1x64x64xbf16>
    %12 = vector.shape_cast %11 : vector<2x1x64x64xbf16> to vector<2x64x64xbf16>
    %13 = vector.shape_cast %12 : vector<2x64x64xbf16> to vector<2x8x8x64xbf16>
    %cst_7 = arith.constant 0.000000e+00 : bf16
    %14 = vector.broadcast %cst_7 : bf16 to vector<2x1x8x64xbf16>
    %15 = vector.extract_strided_slice %13 {offsets = [0, 0, 0, 0], sizes = [2, 7, 8, 64], strides = [1, 1, 1, 1]} : vector<2x8x8x64xbf16> to vector<2x7x8x64xbf16>
    %16 = tpu.concatenate %14, %15 in 1 : vector<2x1x8x64xbf16>, vector<2x7x8x64xbf16> -> vector<2x8x8x64xbf16>
    %cst_8 = arith.constant 0.000000e+00 : bf16
    %17 = vector.broadcast %cst_8 : bf16 to vector<2x8x1x64xbf16>
    %18 = vector.extract_strided_slice %16 {offsets = [0, 0, 0, 0], sizes = [2, 8, 7, 64], strides = [1, 1, 1, 1]} : vector<2x8x8x64xbf16> to vector<2x8x7x64xbf16>
    %19 = tpu.concatenate %17, %18 in 2 : vector<2x8x1x64xbf16>, vector<2x8x7x64xbf16> -> vector<2x8x8x64xbf16>
    %20 = vector.extract_strided_slice %10 {offsets = [0, 2, 0, 0], sizes = [2, 1, 64, 64], strides = [1, 1, 1, 1]} : vector<2x4x64x64xbf16> to vector<2x1x64x64xbf16>
    %21 = vector.shape_cast %20 : vector<2x1x64x64xbf16> to vector<2x64x64xbf16>
    %22 = vector.shape_cast %21 : vector<2x64x64xbf16> to vector<2x8x8x64xbf16>
    %cst_9 = arith.constant 0.000000e+00 : bf16
    %23 = vector.broadcast %cst_9 : bf16 to vector<2x1x8x64xbf16>
    %24 = vector.extract_strided_slice %22 {offsets = [0, 0, 0, 0], sizes = [2, 7, 8, 64], strides = [1, 1, 1, 1]} : vector<2x8x8x64xbf16> to vector<2x7x8x64xbf16>
    %25 = tpu.concatenate %23, %24 in 1 : vector<2x1x8x64xbf16>, vector<2x7x8x64xbf16> -> vector<2x8x8x64xbf16>
    %26 = vector.extract_strided_slice %10 {offsets = [0, 3, 0, 0], sizes = [2, 1, 64, 64], strides = [1, 1, 1, 1]} : vector<2x4x64x64xbf16> to vector<2x1x64x64xbf16>
    %27 = vector.shape_cast %26 : vector<2x1x64x64xbf16> to vector<2x64x64xbf16>
    %28 = vector.shape_cast %27 : vector<2x64x64xbf16> to vector<2x8x8x64xbf16>
    %cst_10 = arith.constant 0.000000e+00 : bf16
    %29 = vector.broadcast %cst_10 : bf16 to vector<2x1x8x64xbf16>
    %30 = vector.extract_strided_slice %28 {offsets = [0, 0, 0, 0], sizes = [2, 7, 8, 64], strides = [1, 1, 1, 1]} : vector<2x8x8x64xbf16> to vector<2x7x8x64xbf16>
    %31 = tpu.concatenate %29, %30 in 1 : vector<2x1x8x64xbf16>, vector<2x7x8x64xbf16> -> vector<2x8x8x64xbf16>
    %32 = vector.extract_strided_slice %10 {offsets = [0, 1, 0, 0], sizes = [2, 1, 64, 64], strides = [1, 1, 1, 1]} : vector<2x4x64x64xbf16> to vector<2x1x64x64xbf16>
    %33 = vector.shape_cast %32 : vector<2x1x64x64xbf16> to vector<2x64x64xbf16>
    %34 = vector.shape_cast %33 : vector<2x64x64xbf16> to vector<2x8x8x64xbf16>
    %cst_11 = arith.constant 0.000000e+00 : bf16
    %35 = vector.broadcast %cst_11 : bf16 to vector<2x8x1x64xbf16>
    %36 = vector.extract_strided_slice %34 {offsets = [0, 0, 0, 0], sizes = [2, 8, 7, 64], strides = [1, 1, 1, 1]} : vector<2x8x8x64xbf16> to vector<2x8x7x64xbf16>
    %37 = tpu.concatenate %35, %36 in 2 : vector<2x8x1x64xbf16>, vector<2x8x7x64xbf16> -> vector<2x8x8x64xbf16>
    %38 = vector.extract_strided_slice %10 {offsets = [0, 0, 0, 0], sizes = [2, 1, 64, 64], strides = [1, 1, 1, 1]} : vector<2x4x64x64xbf16> to vector<2x1x64x64xbf16>
    %39 = vector.shape_cast %38 : vector<2x1x64x64xbf16> to vector<2x64x64xbf16>
    %40 = vector.shape_cast %39 : vector<2x64x64xbf16> to vector<2x8x8x64xbf16>
    %41 = vector.extract_strided_slice %10 {offsets = [0, 1, 0, 0], sizes = [2, 1, 64, 64], strides = [1, 1, 1, 1]} : vector<2x4x64x64xbf16> to vector<2x1x64x64xbf16>
    %42 = vector.shape_cast %41 : vector<2x1x64x64xbf16> to vector<2x64x64xbf16>
    %43 = vector.shape_cast %42 : vector<2x64x64xbf16> to vector<2x8x8x64xbf16>
    %44 = vector.extract_strided_slice %10 {offsets = [0, 3, 0, 0], sizes = [2, 1, 64, 64], strides = [1, 1, 1, 1]} : vector<2x4x64x64xbf16> to vector<2x1x64x64xbf16>
    %45 = vector.shape_cast %44 : vector<2x1x64x64xbf16> to vector<2x64x64xbf16>
    %46 = vector.shape_cast %45 : vector<2x64x64xbf16> to vector<2x8x8x64xbf16>
    %cst_12 = arith.constant 0.000000e+00 : bf16
    %47 = vector.broadcast %cst_12 : bf16 to vector<2x8x1x64xbf16>
    %48 = vector.extract_strided_slice %46 {offsets = [0, 0, 0, 0], sizes = [2, 8, 7, 64], strides = [1, 1, 1, 1]} : vector<2x8x8x64xbf16> to vector<2x8x7x64xbf16>
    %49 = tpu.concatenate %47, %48 in 2 : vector<2x8x1x64xbf16>, vector<2x8x7x64xbf16> -> vector<2x8x8x64xbf16>
    %50 = vector.extract_strided_slice %10 {offsets = [0, 2, 0, 0], sizes = [2, 1, 64, 64], strides = [1, 1, 1, 1]} : vector<2x4x64x64xbf16> to vector<2x1x64x64xbf16>
    %51 = vector.shape_cast %50 : vector<2x1x64x64xbf16> to vector<2x64x64xbf16>
    %52 = vector.shape_cast %51 : vector<2x64x64xbf16> to vector<2x8x8x64xbf16>
    %53 = vector.extract_strided_slice %10 {offsets = [0, 3, 0, 0], sizes = [2, 1, 64, 64], strides = [1, 1, 1, 1]} : vector<2x4x64x64xbf16> to vector<2x1x64x64xbf16>
    %54 = vector.shape_cast %53 : vector<2x1x64x64xbf16> to vector<2x64x64xbf16>
    %55 = vector.shape_cast %54 : vector<2x64x64xbf16> to vector<2x8x8x64xbf16>
    %56 = tpu.concatenate %19, %25, %31, %37, %40, %43, %49, %52, %55 in 3 : vector<2x8x8x64xbf16>, vector<2x8x8x64xbf16>, vector<2x8x8x64xbf16>, vector<2x8x8x64xbf16>, vector<2x8x8x64xbf16>, vector<2x8x8x64xbf16>, vector<2x8x8x64xbf16>, vector<2x8x8x64xbf16>, vector<2x8x8x64xbf16> -> vector<2x8x8x576xbf16>
    %57 = vector.shape_cast %56 : vector<2x8x8x576xbf16> to vector<128x576xbf16>
    %c0_13 = arith.constant 0 : index
    %c0_14 = arith.constant 0 : index
    %58 = vector.load %arg4[%c0_13, %c0_14] : memref<576x128xbf16, #tpu.memory_space<vmem>>, vector<576x128xbf16>
    %cst_15 = arith.constant dense<0.000000e+00> : vector<128x128xf32>
    %59 = tpu.matmul %57, %58, %cst_15 {dimension_numbers = #tpu.dot_dimension_numbers<[1], [0], [0], [1], [0, 0, 1, 1], [], []>} : vector<128x576xbf16>, vector<576x128xbf16>, vector<128x128xf32> -> vector<128x128xf32>
    %c0_16 = arith.constant 0 : index
    %c0_17 = arith.constant 0 : index
    %60 = vector.load %arg5[%c0_16, %c0_17] : memref<1x128xf32, #tpu.memory_space<vmem>>, vector<1x128xf32>
    %61 = vector.broadcast %60 : vector<1x128xf32> to vector<128x128xf32>
    %62 = arith.addf %59, %61 : vector<128x128xf32>
    %cst_18 = arith.constant 0.000000e+00 : f32
    %63 = vector.broadcast %cst_18 : f32 to vector<128x128xf32>
    %64 = arith.maximumf %62, %63 : vector<128x128xf32>
    %65 = arith.truncf %64 : vector<128x128xf32> to vector<128x128xbf16>
    %cst_19 = arith.constant 0.000000e+00 : f32
    %66 = vector.broadcast %cst_19 : f32 to vector<2x128xf32>
    %c0_20 = arith.constant 0 : index
    %c0_21 = arith.constant 0 : index
    %67 = vector.load %arg6[%c0_20, %c0_21] : memref<128x2048xbf16, #tpu.memory_space<vmem>>, vector<128x512xbf16>
    %cst_22 = arith.constant dense<0.000000e+00> : vector<128x512xf32>
    %68 = tpu.matmul %65, %67, %cst_22 {dimension_numbers = #tpu.dot_dimension_numbers<[1], [0], [0], [1], [0, 0, 1, 1], [], []>} : vector<128x128xbf16>, vector<128x512xbf16>, vector<128x512xf32> -> vector<128x512xf32>
    %c0_23 = arith.constant 0 : index
    %c0_24 = arith.constant 0 : index
    %69 = vector.load %arg7[%c0_23, %c0_24] : memref<1x2048xf32, #tpu.memory_space<vmem>>, vector<1x512xf32>
    %70 = vector.broadcast %69 : vector<1x512xf32> to vector<128x512xf32>
    %71 = arith.addf %68, %70 : vector<128x512xf32>
    %cst_25 = arith.constant 0.000000e+00 : f32
    %72 = vector.broadcast %cst_25 : f32 to vector<128x512xf32>
    %73 = arith.maximumf %71, %72 : vector<128x512xf32>
    %74 = vector.shape_cast %73 : vector<128x512xf32> to vector<2x64x512xf32>
    %cst_26 = arith.constant dense<0.000000e+00> : vector<2x512xf32>
    %75 = vector.multi_reduction <add>, %74, %cst_26 [1] : vector<2x64x512xf32> to vector<2x512xf32>
    %cst_27 = arith.constant 1.562500e-02 : f32
    %76 = vector.broadcast %cst_27 : f32 to vector<2x512xf32>
    %77 = arith.mulf %75, %76 : vector<2x512xf32>
    %c0_28 = arith.constant 0 : index
    %c0_29 = arith.constant 0 : index
    %78 = vector.load %arg10[%c0_28, %c0_29] : memref<2x2048xf32, #tpu.memory_space<vmem>>, vector<2x512xf32>
    tpu.vector_store %arg10[%c0_28, %c0_29], %77 {strides = array<i32>} : memref<2x2048xf32, #tpu.memory_space<vmem>>, vector<2x512xf32>,
    %79 = arith.truncf %77 : vector<2x512xf32> to vector<2x512xbf16>
    %c0_30 = arith.constant 0 : index
    %c0_31 = arith.constant 0 : index
    %80 = vector.load %arg8[%c0_30, %c0_31] : memref<2048x128xbf16, #tpu.memory_space<vmem>>, vector<512x128xbf16>
    %cst_32 = arith.constant dense<0.000000e+00> : vector<2x128xf32>
    %81 = tpu.matmul %79, %80, %cst_32 {dimension_numbers = #tpu.dot_dimension_numbers<[1], [0], [0], [1], [0, 0, 1, 1], [], []>} : vector<2x512xbf16>, vector<512x128xbf16>, vector<2x128xf32> -> vector<2x128xf32>
    %82 = arith.addf %66, %81 : vector<2x128xf32>
    %c0_33 = arith.constant 0 : index
    %c512 = arith.constant 512 : index
    %83 = vector.load %arg6[%c0_33, %c512] : memref<128x2048xbf16, #tpu.memory_space<vmem>>, vector<128x512xbf16>
    %cst_34 = arith.constant dense<0.000000e+00> : vector<128x512xf32>
    %84 = tpu.matmul %65, %83, %cst_34 {dimension_numbers = #tpu.dot_dimension_numbers<[1], [0], [0], [1], [0, 0, 1, 1], [], []>} : vector<128x128xbf16>, vector<128x512xbf16>, vector<128x512xf32> -> vector<128x512xf32>
    %c0_35 = arith.constant 0 : index
    %c512_36 = arith.constant 512 : index
    %85 = vector.load %arg7[%c0_35, %c512_36] : memref<1x2048xf32, #tpu.memory_space<vmem>>, vector<1x512xf32>
    %86 = vector.broadcast %85 : vector<1x512xf32> to vector<128x512xf32>
    %87 = arith.addf %84, %86 : vector<128x512xf32>
    %cst_37 = arith.constant 0.000000e+00 : f32
    %88 = vector.broadcast %cst_37 : f32 to vector<128x512xf32>
    %89 = arith.maximumf %87, %88 : vector<128x512xf32>
    %90 = vector.shape_cast %89 : vector<128x512xf32> to vector<2x64x512xf32>
    %cst_38 = arith.constant dense<0.000000e+00> : vector<2x512xf32>
    %91 = vector.multi_reduction <add>, %90, %cst_38 [1] : vector<2x64x512xf32> to vector<2x512xf32>
    %cst_39 = arith.constant 1.562500e-02 : f32
    %92 = vector.broadcast %cst_39 : f32 to vector<2x512xf32>
    %93 = arith.mulf %91, %92 : vector<2x512xf32>
    %c0_40 = arith.constant 0 : index
    %c512_41 = arith.constant 512 : index
    %94 = vector.load %arg10[%c0_40, %c512_41] : memref<2x2048xf32, #tpu.memory_space<vmem>>, vector<2x512xf32>
    tpu.vector_store %arg10[%c0_40, %c512_41], %93 {strides = array<i32>} : memref<2x2048xf32, #tpu.memory_space<vmem>>, vector<2x512xf32>,
    %95 = arith.truncf %93 : vector<2x512xf32> to vector<2x512xbf16>
    %c512_42 = arith.constant 512 : index
    %c0_43 = arith.constant 0 : index
    %96 = vector.load %arg8[%c512_42, %c0_43] : memref<2048x128xbf16, #tpu.memory_space<vmem>>, vector<512x128xbf16>
    %cst_44 = arith.constant dense<0.000000e+00> : vector<2x128xf32>
    %97 = tpu.matmul %95, %96, %cst_44 {dimension_numbers = #tpu.dot_dimension_numbers<[1], [0], [0], [1], [0, 0, 1, 1], [], []>} : vector<2x512xbf16>, vector<512x128xbf16>, vector<2x128xf32> -> vector<2x128xf32>
    %98 = arith.addf %82, %97 : vector<2x128xf32>
    %c0_45 = arith.constant 0 : index
    %c1024 = arith.constant 1024 : index
    %99 = vector.load %arg6[%c0_45, %c1024] : memref<128x2048xbf16, #tpu.memory_space<vmem>>, vector<128x512xbf16>
    %cst_46 = arith.constant dense<0.000000e+00> : vector<128x512xf32>
    %100 = tpu.matmul %65, %99, %cst_46 {dimension_numbers = #tpu.dot_dimension_numbers<[1], [0], [0], [1], [0, 0, 1, 1], [], []>} : vector<128x128xbf16>, vector<128x512xbf16>, vector<128x512xf32> -> vector<128x512xf32>
    %c0_47 = arith.constant 0 : index
    %c1024_48 = arith.constant 1024 : index
    %101 = vector.load %arg7[%c0_47, %c1024_48] : memref<1x2048xf32, #tpu.memory_space<vmem>>, vector<1x512xf32>
    %102 = vector.broadcast %101 : vector<1x512xf32> to vector<128x512xf32>
    %103 = arith.addf %100, %102 : vector<128x512xf32>
    %cst_49 = arith.constant 0.000000e+00 : f32
    %104 = vector.broadcast %cst_49 : f32 to vector<128x512xf32>
    %105 = arith.maximumf %103, %104 : vector<128x512xf32>
    %106 = vector.shape_cast %105 : vector<128x512xf32> to vector<2x64x512xf32>
    %cst_50 = arith.constant dense<0.000000e+00> : vector<2x512xf32>
    %107 = vector.multi_reduction <add>, %106, %cst_50 [1] : vector<2x64x512xf32> to vector<2x512xf32>
    %cst_51 = arith.constant 1.562500e-02 : f32
    %108 = vector.broadcast %cst_51 : f32 to vector<2x512xf32>
    %109 = arith.mulf %107, %108 : vector<2x512xf32>
    %c0_52 = arith.constant 0 : index
    %c1024_53 = arith.constant 1024 : index
    %110 = vector.load %arg10[%c0_52, %c1024_53] : memref<2x2048xf32, #tpu.memory_space<vmem>>, vector<2x512xf32>
    tpu.vector_store %arg10[%c0_52, %c1024_53], %109 {strides = array<i32>} : memref<2x2048xf32, #tpu.memory_space<vmem>>, vector<2x512xf32>,
    %111 = arith.truncf %109 : vector<2x512xf32> to vector<2x512xbf16>
    %c1024_54 = arith.constant 1024 : index
    %c0_55 = arith.constant 0 : index
    %112 = vector.load %arg8[%c1024_54, %c0_55] : memref<2048x128xbf16, #tpu.memory_space<vmem>>, vector<512x128xbf16>
    %cst_56 = arith.constant dense<0.000000e+00> : vector<2x128xf32>
    %113 = tpu.matmul %111, %112, %cst_56 {dimension_numbers = #tpu.dot_dimension_numbers<[1], [0], [0], [1], [0, 0, 1, 1], [], []>} : vector<2x512xbf16>, vector<512x128xbf16>, vector<2x128xf32> -> vector<2x128xf32>
    %114 = arith.addf %98, %113 : vector<2x128xf32>
    %c0_57 = arith.constant 0 : index
    %c1536 = arith.constant 1536 : index
    %115 = vector.load %arg6[%c0_57, %c1536] : memref<128x2048xbf16, #tpu.memory_space<vmem>>, vector<128x512xbf16>
    %cst_58 = arith.constant dense<0.000000e+00> : vector<128x512xf32>
    %116 = tpu.matmul %65, %115, %cst_58 {dimension_numbers = #tpu.dot_dimension_numbers<[1], [0], [0], [1], [0, 0, 1, 1], [], []>} : vector<128x128xbf16>, vector<128x512xbf16>, vector<128x512xf32> -> vector<128x512xf32>
    %c0_59 = arith.constant 0 : index
    %c1536_60 = arith.constant 1536 : index
    %117 = vector.load %arg7[%c0_59, %c1536_60] : memref<1x2048xf32, #tpu.memory_space<vmem>>, vector<1x512xf32>
    %118 = vector.broadcast %117 : vector<1x512xf32> to vector<128x512xf32>
    %119 = arith.addf %116, %118 : vector<128x512xf32>
    %cst_61 = arith.constant 0.000000e+00 : f32
    %120 = vector.broadcast %cst_61 : f32 to vector<128x512xf32>
    %121 = arith.maximumf %119, %120 : vector<128x512xf32>
    %122 = vector.shape_cast %121 : vector<128x512xf32> to vector<2x64x512xf32>
    %cst_62 = arith.constant dense<0.000000e+00> : vector<2x512xf32>
    %123 = vector.multi_reduction <add>, %122, %cst_62 [1] : vector<2x64x512xf32> to vector<2x512xf32>
    %cst_63 = arith.constant 1.562500e-02 : f32
    %124 = vector.broadcast %cst_63 : f32 to vector<2x512xf32>
    %125 = arith.mulf %123, %124 : vector<2x512xf32>
    %c0_64 = arith.constant 0 : index
    %c1536_65 = arith.constant 1536 : index
    %126 = vector.load %arg10[%c0_64, %c1536_65] : memref<2x2048xf32, #tpu.memory_space<vmem>>, vector<2x512xf32>
    tpu.vector_store %arg10[%c0_64, %c1536_65], %125 {strides = array<i32>} : memref<2x2048xf32, #tpu.memory_space<vmem>>, vector<2x512xf32>,
    %127 = arith.truncf %125 : vector<2x512xf32> to vector<2x512xbf16>
    %c1536_66 = arith.constant 1536 : index
    %c0_67 = arith.constant 0 : index
    %128 = vector.load %arg8[%c1536_66, %c0_67] : memref<2048x128xbf16, #tpu.memory_space<vmem>>, vector<512x128xbf16>
    %cst_68 = arith.constant dense<0.000000e+00> : vector<2x128xf32>
    %129 = tpu.matmul %127, %128, %cst_68 {dimension_numbers = #tpu.dot_dimension_numbers<[1], [0], [0], [1], [0, 0, 1, 1], [], []>} : vector<2x512xbf16>, vector<512x128xbf16>, vector<2x128xf32> -> vector<2x128xf32>
    %130 = arith.addf %114, %129 : vector<2x128xf32>
    %c0_69 = arith.constant 0 : index
    %c0_70 = arith.constant 0 : index
    %131 = vector.load %arg9[%c0_69, %c0_70] : memref<1x128xf32, #tpu.memory_space<vmem>>, vector<1x128xf32>
    %132 = vector.broadcast %131 : vector<1x128xf32> to vector<2x128xf32>
    %133 = arith.addf %130, %132 : vector<2x128xf32>
    %c0_71 = arith.constant 0 : index
    %c0_72 = arith.constant 0 : index
    %134 = vector.load %arg11[%c0_71, %c0_72] : memref<2x128xf32, #tpu.memory_space<vmem>>, vector<2x128xf32>
    tpu.vector_store %arg11[%c0_71, %c0_72], %133 {strides = array<i32>} : memref<2x128xf32, #tpu.memory_space<vmem>>, vector<2x128xf32>,
    return
  }
  func.func @transform_0(%arg0: i32) -> (i32, i32, i32) {
    %c0_i32 = arith.constant 0 : i32
    %c0_i32_0 = arith.constant 0 : i32
    %c0_i32_1 = arith.constant 0 : i32
    return %arg0, %c0_i32, %c0_i32_0 : i32, i32, i32
  }
  func.func @transform_1(%arg0: i32) -> (i32, i32) {
    %c0_i32 = arith.constant 0 : i32
    %c0_i32_0 = arith.constant 0 : i32
    %c0_i32_1 = arith.constant 0 : i32
    return %c0_i32, %c0_i32_0 : i32, i32
  }
  func.func @transform_2(%arg0: i32) -> (i32, i32) {
    %c0_i32 = arith.constant 0 : i32
    %c0_i32_0 = arith.constant 0 : i32
    %c0_i32_1 = arith.constant 0 : i32
    return %c0_i32, %c0_i32_0 : i32, i32
  }
  func.func @transform_3(%arg0: i32) -> (i32, i32) {
    %c0_i32 = arith.constant 0 : i32
    %c0_i32_0 = arith.constant 0 : i32
    %c0_i32_1 = arith.constant 0 : i32
    return %c0_i32, %c0_i32_0 : i32, i32
  }
  func.func @transform_4(%arg0: i32) -> (i32, i32) {
    %c0_i32 = arith.constant 0 : i32
    %c0_i32_0 = arith.constant 0 : i32
    %c0_i32_1 = arith.constant 0 : i32
    return %c0_i32, %c0_i32_0 : i32, i32
  }
  func.func @transform_5(%arg0: i32) -> (i32, i32) {
    %c0_i32 = arith.constant 0 : i32
    %c0_i32_0 = arith.constant 0 : i32
    %c0_i32_1 = arith.constant 0 : i32
    return %c0_i32, %c0_i32_0 : i32, i32
  }
  func.func @transform_6(%arg0: i32) -> (i32, i32) {
    %c0_i32 = arith.constant 0 : i32
    %c0_i32_0 = arith.constant 0 : i32
    %c0_i32_1 = arith.constant 0 : i32
    return %c0_i32, %c0_i32_0 : i32, i32
  }
  func.func @transform_7(%arg0: i32) -> (i32, i32) {
    %c0_i32 = arith.constant 0 : i32
    %c0_i32_0 = arith.constant 0 : i32
    %c0_i32_1 = arith.constant 0 : i32
    return %c0_i32, %c0_i32_0 : i32, i32
  }
  func.func @transform_8(%arg0: i32) -> (i32, i32) {
    %c0_i32 = arith.constant 0 : i32
    %c0_i32_0 = arith.constant 0 : i32
    %c0_i32_1 = arith.constant 0 : i32
    return %c0_i32, %c0_i32_0 : i32, i32
  }
  func.func @transform_9(%arg0: i32) -> (i32, i32) {
    %c0_i32 = arith.constant 0 : i32
    %c0_i32_0 = arith.constant 0 : i32
    return %arg0, %c0_i32 : i32, i32
  }
  func.func @transform_10(%arg0: i32) -> (i32, i32) {
    %c0_i32 = arith.constant 0 : i32
    %c0_i32_0 = arith.constant 0 : i32
    return %arg0, %c0_i32 : i32, i32
  }
}

</mosaic_0001>

<bundles_post_ra>
// kernel: pawprint_forward.1
= control target key start
LH: loop header
LB: loop body
LE: loop exit
PB: predicated region body
PF: predicated region fallthrough
CT: control target
= control target key end

     0   :  { %16 = vsyncpa [#allocation3], 0  ;;  %vm284_vm0 = vcmask 261120   ;;  %v10165_v31 = vmov 0   ;;  %s7698_s12 = smov 64   ;;  %s10154_s0 = inlined_call_operand.vmem [shape: bf16[2,256,32], index: 0, kind: input, shape index: {}]   ;;  %s10155_s1 = inlined_call_operand.vmem [shape: bf16[32,64], index: 1, kind: input, shape index: {}]   ;;  %s10156_s2 = inlined_call_operand.vmem [shape: f32[1,64], index: 2, kind: input, shape index: {}]   ;;  %s10157_s3 = inlined_call_operand.vmem [shape: bf16[576,128], index: 3, kind: input, shape index: {}]   ;;  %s10158_s4 = inlined_call_operand.vmem [shape: f32[1,128], index: 4, kind: input, shape index: {}]   ;;  %s10159_s5 = inlined_call_operand.vmem [shape: bf16[128,2048], index: 5, kind: input, shape index: {}]   ;;  %s10160_s6 = inlined_call_operand.vmem [shape: f32[1,2048], index: 6, kind: input, shape index: {}]   ;;  %s10161_s7 = inlined_call_operand.vmem [shape: bf16[2048,128], index: 7, kind: input, shape index: {}]   ;;  %s10162_s8 = inlined_call_operand.vmem [shape: f32[1,128], index: 8, kind: input, shape index: {}]   ;;  %s10163_s9 = inlined_call_operand.hbm [shape: f32[2,2048], index: 9, kind: output, shape index: {0}]   ;;  %s10164_s10 = inlined_call_operand.hbm [shape: f32[2,128], index: 10, kind: output, shape index: {1}]  }
   0x1   :  { %v7454_v0 = vld [vmem:[%s10155_s1 + $0x8] sm:$0xff]   ;;  %v7455_v1 = vld [vmem:[%s10155_s1] sm:$0xff]   ;;  %v7458_v4 = vld [vmem:[%s10154_s0 + $0x10] sm:$0xff]   ;;  %1225 = vrot.lane.b32.xlu1 %v10165_v31, %s7698_s12 }
   0x2   :  { %7357 = vmatprep.subr.bf16.mxu0 %v7454_v0  ;;  %v7456_v2 = vld [vmem:[%s10154_s0] sm:$0xff]   ;;  %v7457_v3 = vld [vmem:[%s10154_s0 + $0x8] sm:$0xff]   ;;  %v7459_v5 = vld [vmem:[%s10154_s0 + $0x18] sm:$0xff]  }
   0x3   :  { %7358 = vmatpush3.bf16.msra.mxu0 %v7454_v0  ;;  %7361 = vmatprep.mubr.msk.bf16.mxu0 %vm284_vm0, %v7456_v2  ;;  %v7460_v6 = vld [vmem:[%s10154_s0 + $0x20] sm:$0xff]   ;;  %v7461_v7 = vld [vmem:[%s10154_s0 + $0x28] sm:$0xff]   ;;  %v7462_v8 = vld [vmem:[%s10154_s0 + $0x30] sm:$0xff]  }
   0x4   :  { %7359 = vmatprep.subr.bf16.mxu0 %v7455_v1  ;;  %v7463_v9 = vld [vmem:[%s10154_s0 + $0x38] sm:$0xff]   ;;  %v7464_v10 = vld [vmem:[%s10154_s0 + $0x40] sm:$0xff]   ;;  %v7465_v11 = vld [vmem:[%s10154_s0 + $0x48] sm:$0xff]  }
   0x5   :  { %v7466_v12 = vld [vmem:[%s10154_s0 + $0x50] sm:$0xff]   ;;  %v7467_v13 = vld [vmem:[%s10154_s0 + $0x58] sm:$0xff]   ;;  %v7468_v14 = vld [vmem:[%s10154_s0 + $0x60] sm:$0xff]  }
   0x6   :  { %v7469_v15 = vld [vmem:[%s10154_s0 + $0x68] sm:$0xff]   ;;  %v7470_v16 = vld [vmem:[%s10154_s0 + $0x70] sm:$0xff]   ;;  %v7471_v17 = vld [vmem:[%s10154_s0 + $0x78] sm:$0xff]  }
   0x7   :  { %7360 = vmatpush3.bf16.msra.mxu0 %v7455_v1  ;;  %v7472_v18 = vld [vmem:[%s10154_s0 + $0x80] sm:$0xff]   ;;  %v7473_v19 = vld [vmem:[%s10154_s0 + $0x88] sm:$0xff]   ;;  %v7474_v20 = vld [vmem:[%s10154_s0 + $0x90] sm:$0xff]  }
   0x8   :  { %v7475_v21 = vld [vmem:[%s10154_s0 + $0x98] sm:$0xff]   ;;  %v7476_v22 = vld [vmem:[%s10154_s0 + $0xa0] sm:$0xff]   ;;  %v7477_v23 = vld [vmem:[%s10154_s0 + $0xa8] sm:$0xff]  }
   0x9   :  { %v7478_v24 = vld [vmem:[%s10154_s0 + $0xb0] sm:$0xff]   ;;  %v7479_v25 = vld [vmem:[%s10154_s0 + $0xb8] sm:$0xff]   ;;  %v7480_v26 = vld [vmem:[%s10154_s0 + $0xc0] sm:$0xff]  }
   0xa   :  { %7362 = vmatmul.mubr.msk.bf16.vlgmr.msra.gmra.mxu0 %vm284_vm0, %v7457_v3  ;;  %v7481_v27 = vld [vmem:[%s10154_s0 + $0xc8] sm:$0xff]   ;;  %v7482_v28 = vld [vmem:[%s10154_s0 + $0xd0] sm:$0xff]   ;;  %v7483_v29 = vld [vmem:[%s10154_s0 + $0xd8] sm:$0xff]  }
   0xb   :  { %7365 = vmatprep.mubr.msk.bf16.mxu0 %vm284_vm0, %v7458_v4  ;;  %v7484_v30 = vld [vmem:[%s10154_s0 + $0xe0] sm:$0xff]   ;;  %v7485_v32 = vld [vmem:[%s10154_s0 + $0xe8] sm:$0xff]   ;;  %v7486_v33 = vld [vmem:[%s10154_s0 + $0xf0] sm:$0xff]  }
   0xc   :  { %v7488_v34 = vld [vmem:[%s10157_s3 + $0x118] sm:$0xff]   ;;  %v7489_v35 = vld [vmem:[%s10157_s3 + $0x110] sm:$0xff]   ;;  %v7490_v37 = vld [vmem:[%s10157_s3 + $0x108] sm:$0xff]  }
   0xd   :  { %7425 = vmatprep.subr.bf16.mxu0 %v7488_v34  ;;  %v7487_v36 = vld [vmem:[%s10154_s0 + $0xf8] sm:$0xff]   ;;  %v7491_v38 = vld [vmem:[%s10157_s3 + $0x100] sm:$0xff]  }
   0xe   :  { %7426 = vmatpush3.bf16.msra.mxu0 %v7488_v34 }
   0xf   :  { %7427 = vmatprep.subr.bf16.mxu0 %v7489_v35 }
  0x12   :  { %7366 = vmatmul.mubr.msk.bf16.gmra.mxu0 %vm284_vm0, %v7459_v5 }
  0x13   :  { %7369 = vmatprep.mubr.msk.bf16.mxu0 %vm284_vm0, %v7460_v6  ;;  %7428 = vmatpush3.bf16.msra.mxu0 %v7489_v35 }
  0x14   :  { %7429 = vmatprep.subr.bf16.mxu0 %v7490_v37 }
  0x17   :  { %7430 = vmatpush3.bf16.msra.mxu0 %v7490_v37 }
  0x18   :  { %7431 = vmatprep.subr.bf16.mxu0 %v7491_v38 }
  0x1a   :  { %7370 = vmatmul.mubr.msk.bf16.gmra.mxu0 %vm284_vm0, %v7461_v7 }
  0x1b   :  { %7373 = vmatprep.mubr.msk.bf16.mxu0 %vm284_vm0, %v7462_v8  ;;  %7432 = vmatpush3.bf16.msra.mxu0 %v7491_v38 }
  0x22   :  { %7374 = vmatmul.mubr.msk.bf16.gmra.mxu0 %vm284_vm0, %v7463_v9 }
  0x23   :  { %7377 = vmatprep.mubr.msk.bf16.mxu0 %vm284_vm0, %v7464_v10 }
  0x2a   :  { %7378 = vmatmul.mubr.msk.bf16.gmra.mxu0 %vm284_vm0, %v7465_v11 }
  0x2b   :  { %7381 = vmatprep.mubr.msk.bf16.mxu0 %vm284_vm0, %v7466_v12 }
  0x32   :  { %7382 = vmatmul.mubr.msk.bf16.gmra.mxu0 %vm284_vm0, %v7467_v13 }
  0x33   :  { %7385 = vmatprep.mubr.msk.bf16.mxu0 %vm284_vm0, %v7468_v14 }
  0x3a   :  { %7386 = vmatmul.mubr.msk.bf16.gmra.mxu0 %vm284_vm0, %v7469_v15 }
  0x3b   :  { %7389 = vmatprep.mubr.msk.bf16.mxu0 %vm284_vm0, %v7470_v16 }
  0x42   :  { %7390 = vmatmul.mubr.msk.bf16.gmra.mxu0 %vm284_vm0, %v7471_v17 }
  0x43   :  { %7393 = vmatprep.mubr.msk.bf16.mxu0 %vm284_vm0, %v7472_v18 }
  0x4a   :  { %7394 = vmatmul.mubr.msk.bf16.gmra.mxu0 %vm284_vm0, %v7473_v19 }
  0x4b   :  { %7397 = vmatprep.mubr.msk.bf16.mxu0 %vm284_vm0, %v7474_v20 }
  0x52   :  { %7398 = vmatmul.mubr.msk.bf16.gmra.mxu0 %vm284_vm0, %v7475_v21 }
  0x53   :  { %7401 = vmatprep.mubr.msk.bf16.mxu0 %vm284_vm0, %v7476_v22 }
  0x5a   :  { %7402 = vmatmul.mubr.msk.bf16.gmra.mxu0 %vm284_vm0, %v7477_v23 }
  0x5b   :  { %7405 = vmatprep.mubr.msk.bf16.mxu0 %vm284_vm0, %v7478_v24 }
  0x62   :  { %7406 = vmatmul.mubr.msk.bf16.gmra.mxu0 %vm284_vm0, %v7479_v25 }
  0x63   :  { %7409 = vmatprep.mubr.msk.bf16.mxu0 %vm284_vm0, %v7480_v26 }
  0x6a   :  { %7410 = vmatmul.mubr.msk.bf16.gmra.mxu0 %vm284_vm0, %v7481_v27 }
  0x6b   :  { %7413 = vmatprep.mubr.msk.bf16.mxu0 %vm284_vm0, %v7482_v28 }
  0x72   :  { %7414 = vmatmul.mubr.msk.bf16.gmra.mxu0 %vm284_vm0, %v7483_v29 }
  0x73   :  { %7417 = vmatprep.mubr.msk.bf16.mxu0 %vm284_vm0, %v7484_v30 }
  0x7a   :  { %7418 = vmatmul.mubr.msk.bf16.gmra.mxu0 %vm284_vm0, %v7485_v32 }
  0x7b   :  { %7421 = vmatprep.mubr.msk.bf16.mxu0 %vm284_vm0, %v7486_v33 }
  0x82   :  { %7422 = vmatmul.mubr.msk.bf16.gmra.mxu0 %vm284_vm0, %v7487_v36 }
  0x83   :  { %17 = vsyncpa [#allocation5], 0  ;;  %v7492_v39 = vld [vmem:[%s10157_s3 + $0x78] sm:$0xff]   ;;  %v7494_v42 = vld [vmem:[%s10157_s3 + $0x70] sm:$0xff]   ;;  %vm924_vm1 = vcmask 1040384   ;;  %vm1341_vm4 = vcmask 523264  }
  0x84   :  { %v7493_v40 = vld [vmem:[%s10157_s3 + $0x38] sm:$0xff]   ;;  %7041 = vmatprep.subr.bf16.mxu1 %v7492_v39  ;;  %v7495_v43 = vld [vmem:[%s10157_s3 + $0x30] sm:$0xff]   ;;  %v7496_v46 = vld [vmem:[%s10157_s3 + $0x68] sm:$0xff]   ;;  %vm925_vm2 = vsmask.f32 256  ;;  %vm2940_vm5 = vcmask 1041409  }
  0x85   :  { %7042 = vmatpush3.bf16.msra.mxu1 %v7493_v40  ;;  %v7497_v47 = vld [vmem:[%s10157_s3 + $0x28] sm:$0xff]   ;;  %v7498_v50 = vld [vmem:[%s10157_s3 + $0x60] sm:$0xff]   ;;  %v7500_v54 = vld [vmem:[%s10157_s3 + $0x58] sm:$0xff]   ;;  %vm2942_vm6 = vcmask 1043459   ;;  %vm2944_vm7 = vcmask 1045509   ;;  %vm2946_vm8 = vcmask 1047559  }
  0x86   :  { %7043 = vmatprep.subr.bf16.mxu1 %v7494_v42  ;;  %v7499_v51 = vld [vmem:[%s10157_s3 + $0x20] sm:$0xff]   ;;  %v7501_v55 = vld [vmem:[%s10157_s3 + $0x18] sm:$0xff]   ;;  %v7502_v61 = vld [vmem:[%s10157_s3 + $0x50] sm:$0xff]  }
  0x87   :  { %v7954_v57 = vld [vmem:[%s10156_s2] ss:$0 sm:$0xff]  ;;  %v7503_v0 = vld [vmem:[%s10157_s3 + $0x10] sm:$0xff]   ;;  %v7504_v5 = vld [vmem:[%s10157_s3 + $0x48] sm:$0xff]  }
  0x88   :  { %v7505_v10 = vld [vmem:[%s10157_s3 + $0x8] sm:$0xff]   ;;  %v7506_v15 = vld [vmem:[%s10157_s3 + $0x40] sm:$0xff]   ;;  %vm7994_vm3 = vmand %vm924_vm1, %vm925_vm2 }
  0x89   :  { %7044 = vmatpush3.bf16.msra.mxu1 %v7495_v43  ;;  %v7507_v20 = vld [vmem:[%s10157_s3] sm:$0xff]  }
  0x8a   :  { %7045 = vmatprep.subr.bf16.mxu1 %v7496_v46 }
  0x8d   :  { %7046 = vmatpush3.bf16.msra.mxu1 %v7497_v47 }
  0x8e   :  { %7047 = vmatprep.subr.bf16.mxu1 %v7498_v50 }
  0x91   :  { %7048 = vmatpush3.bf16.msra.mxu1 %v7499_v51 }
  0x92   :  { %7049 = vmatprep.subr.bf16.mxu1 %v7500_v54 }
  0x95   :  { %7050 = vmatpush3.bf16.msra.mxu1 %v7501_v55 }
  0x96   :  { %7051 = vmatprep.subr.bf16.mxu1 %v7502_v61 }
  0x99   :  { %7052 = vmatpush3.bf16.msra.mxu1 %v7503_v0 }
  0x9a   :  { %7053 = vmatprep.subr.bf16.mxu1 %v7504_v5 }
  0x9d   :  { %7054 = vmatpush3.bf16.msra.mxu1 %v7505_v10 }
  0x9e   :  { %7055 = vmatprep.subr.bf16.mxu1 %v7506_v15 }
  0xa1   :  { %7056 = vmatpush3.bf16.msra.mxu1 %v7507_v20 }
  0xca   :  { %v7911_v41 = vpop.f32.mrf.mxu0 }
  0xcc   :  { %v7919_v44 = vpop.f32.mrf.mxu0 }
  0xce   :  { %v7921_v45 = vpop.f32.mrf.mxu0 }
  0xd0   :  { %v7929_v48 = vpop.f32.mrf.mxu0 }
  0xd2   :  { %v7931_v49 = vpop.f32.mrf.mxu0 }
  0xd4   :  { %v7939_v52 = vpop.f32.mrf.mxu0 }
  0xd6   :  { %v7941_v53 = vpop.f32.mrf.mxu0 }
  0xd8   :  { %v7949_v56 = vpop.f32.mrf.mxu0 }
  0xda   :  { %v7371_v58 = vpop.f32.mrf.mxu0 }
  0xdb   :  { %v456_v59 = vadd.f32 %v7371_v58, %v7954_v57 }
  0xdc   :  { %v447_v60 = vpop.f32.mrf.mxu0 }
  0xdd   :  { %v680_v62 = vmax.f32 %v456_v59, 0.0  ;;  %v448_v63 = vadd.f32 %v7954_v57, %v447_v60 }
  0xde   :  { %v7372_v1 = vpop.f32.mrf.mxu0 }
  0xdf   :  { %v678_v2 = vmax.f32 %v448_v63, 0.0  ;;  %v459_v3 = vadd.f32 %v7372_v1, %v7954_v57  ;;  %v7968_v6 = vpack.c.bf16 %v680_v62, %v680_v62 }
  0xe0   :  { %v450_v4 = vpop.f32.mrf.mxu0 }
  0xe1   :  { %v7970_v7 = vpack.c.bf16 %v678_v2, %v678_v2  ;;  %v681_v8 = vmax.f32 %v459_v3, 0.0  ;;  %v451_v9 = vadd.f32 %v7954_v57, %v450_v4  ;;  %v1035_v16 = vshrl.u32 %v7968_v6, 16 }
  0xe2   :  { %v7375_v11 = vpop.f32.mrf.mxu0  ;;  %v1038_v40 = vshll.u32 %v7968_v6, 16 }
  0xe3   :  { %v679_v12 = vmax.f32 %v451_v9, 0.0  ;;  %v1021_v13 = vshrl.u32 %v7970_v7, 16  ;;  %v7981_v17 = vpack.c.bf16 %v681_v8, %v681_v8  ;;  %v1024_v23 = vshll.u32 %v7970_v7, 16 }
  0xe4   :  { %v463_v14 = vpop.f32.mrf.mxu0  ;;  %v472_v26 = vadd.f32 %v7375_v11, %v7954_v57  ;;  %v1037_v33 = vrot.slane %v1035_v16, 7 }
  0xe5   :  { %v7983_v18 = vpack.c.bf16 %v679_v12, %v679_v12  ;;  %v464_v19 = vadd.f32 %v7954_v57, %v463_v14  ;;  %v1023_v22 = vrot.slane %v1021_v13, 7  ;;  %v1042_v29 = vshrl.u32 %v7981_v17, 16 }
  0xe6   :  { %v7376_v21 = vpop.f32.mrf.mxu0  ;;  %v684_v42 = vmax.f32 %v472_v26, 0.0  ;;  %v1040_v51 = vor.u32 %v1038_v40, %v1037_v33  ;;  %v1045_v0 = vshll.u32 %v7981_v17, 16 }
  0xe7   :  { %v682_v24 = vmax.f32 %v464_v19, 0.0  ;;  %v1028_v25 = vshrl.u32 %v7983_v18, 16  ;;  %v1026_v28 = vor.u32 %v1024_v23, %v1023_v22  ;;  %v1031_v38 = vshll.u32 %v7983_v18, 16 }
  0xe8   :  { %v466_v27 = vpop.f32.mrf.mxu0  ;;  %v475_v47 = vadd.f32 %v7376_v21, %v7954_v57  ;;  %v1044_v60 = vrot.slane %v1042_v29, 7  ;;  %v8013_v62 = vpack.c.bf16 %v684_v42, %v684_v42  ;;  %v1150_v4 = vsel %vm7994_vm3, 0, %v1040_v51 }
  0xe9   :  { %v467_v30 = vadd.f32 %v7954_v57, %v466_v27  ;;  %v7998_v34 = vpack.c.bf16 %v682_v24, %v682_v24  ;;  %v1148_v36 = vsel %vm7994_vm3, 0, %v1026_v28  ;;  %v1030_v37 = vrot.slane %v1028_v25, 7 }
  0xea   :  { %v7379_v35 = vpop.f32.mrf.mxu0  ;;  %1271 = vrot.lane.b32.xlu0 %v1148_v36, %s7698_s12  ;;  %v685_v5 = vmax.f32 %v475_v47, 0.0  ;;  %v1047_v9 = vor.u32 %v1045_v0, %v1044_v60  ;;  %v1063_v15 = vshrl.u32 %v8013_v62, 16  ;;  %v1066_v40 = vshll.u32 %v8013_v62, 16 }
  0xeb   :  { %v683_v39 = vmax.f32 %v467_v30, 0.0  ;;  %v1033_v46 = vor.u32 %v1031_v38, %v1030_v37  ;;  %v1049_v54 = vshrl.u32 %v7998_v34, 16  ;;  %v488_v1 = vadd.f32 %v7379_v35, %v7954_v57 }
  0xec   :  { %v479_v43 = vpop.f32.mrf.mxu0  ;;  %v1052_v14 = vshll.u32 %v7998_v34, 16  ;;  %v8026_v21 = vpack.c.bf16 %v685_v5, %v685_v5  ;;  %v1151_v23 = vsel %vm7994_vm3, 0, %v1047_v9  ;;  %v1065_v38 = vrot.slane %v1063_v15, 7 }
  0xed   :  { %v480_v50 = vadd.f32 %v7954_v57, %v479_v43  ;;  %v8008_v55 = vpack.c.bf16 %v683_v39, %v683_v39  ;;  %v1149_v59 = vsel %vm7994_vm3, 0, %v1033_v46  ;;  %v1051_v10 = vrot.slane %v1049_v54, 7 }
  0xee   :  { %v7380_v58 = vpop.f32.mrf.mxu0  ;;  %1273 = vrot.lane.b32.xlu0 %v1149_v59, %s7698_s12  ;;  %v688_v16 = vmax.f32 %v488_v1, 0.0  ;;  %v1070_v33 = vshrl.u32 %v8026_v21, 16  ;;  %v1068_v51 = vor.u32 %v1066_v40, %v1065_v38 }
  0xef   :  { %v686_v61 = vmax.f32 %v480_v50, 0.0  ;;  %v1056_v11 = vshrl.u32 %v8008_v55, 16  ;;  %v491_v19 = vadd.f32 %v7380_v58, %v7954_v57  ;;  %v1054_v24 = vor.u32 %v1052_v14, %v1051_v10 }
  0xf0   :  { %v482_v63 = vpop.f32.mrf.mxu0  ;;  %v1059_v27 = vshll.u32 %v8008_v55, 16  ;;  %v6959_v28 = vpack.c.bf16 %v688_v16, %v688_v16  ;;  %v1072_v54 = vrot.slane %v1070_v33, 7  ;;  %v1154_v9 = vsel %vm7994_vm3, 0, %v1068_v51 }
  0xf1   :  { %v6957_v2 = vpack.c.bf16 %v686_v61, %v686_v61  ;;  %v483_v3 = vadd.f32 %v7954_v57, %v482_v63  ;;  %v1058_v25 = vrot.slane %v1056_v11, 7  ;;  %v689_v29 = vmax.f32 %v491_v19, 0.0 }
  0xf2   :  { %v7383_v8 = vpop.f32.mrf.mxu0  ;;  %1275 = vrot.lane.b32.xlu0 %v1150_v4, %s7698_s12  ;;  %v1152_v36 = vsel %vm7994_vm3, 0, %v1054_v24  ;;  %v1073_v61 = vshll.u32 %v8026_v21, 16 }
  0xf3   :  { %v687_v12 = vmax.f32 %v483_v3, 0.0  ;;  %1227 = vrot.lane.b32.xlu1 %v6957_v2, %s7698_s12  ;;  %v1061_v37 = vor.u32 %v1059_v27, %v1058_v25  ;;  %v6960_v42 = vpack.c.bf16 %v689_v29, %v689_v29  ;;  %v504_v63 = vadd.f32 %v7383_v8, %v7954_v57  ;;  %v7508_v3 = vld [vmem:[%s10157_s3 + $0xf8] sm:$0xff]  }
  0xf4   :  { %v495_v13 = vpop.f32.mrf.mxu0  ;;  %v1075_v10 = vor.u32 %v1073_v61, %v1072_v54  ;;  %7105 = vmatprep.subr.bf16.mxu1 %v7508_v3 }
  0xf5   :  { %v6958_v20 = vpack.c.bf16 %v687_v12, %v687_v12  ;;  %v496_v30 = vadd.f32 %v7954_v57, %v495_v13  ;;  %v1153_v50 = vsel %vm7994_vm3, 0, %v1061_v37  ;;  %v692_v14 = vmax.f32 %v504_v63, 0.0 }
  0xf6   :  { %v8028_v22 = vpop.f32.mrf.mxu0 }
  0xf7   :  { %1277 = vrot.lane.b32.xlu1 %v1151_v23, %s7698_s12  ;;  %1229 = vrot.lane.b32.xlu0 %v6958_v20, %s7698_s12  ;;  %v690_v43 = vmax.f32 %v496_v30, 0.0  ;;  %v1155_v23 = vsel %vm7994_vm3, 0, %v1075_v10 }
  0xf8   :  { %v498_v26 = vpop.f32.mrf.mxu0 }
  0xf9   :  { %v499_v46 = vadd.f32 %v7954_v57, %v498_v26  ;;  %v6961_v0 = vpack.c.bf16 %v690_v43, %v690_v43 }
  0xfa   :  { %v7387_v35 = vpop.f32.mrf.mxu0 }
  0xfb   :  { %1231 = vrot.lane.b32.xlu1 %v6959_v28, %s7698_s12  ;;  %1279 = vrot.lane.b32.xlu0 %v1152_v36, %s7698_s12  ;;  %v691_v1 = vmax.f32 %v499_v46, 0.0  ;;  %v520_v2 = vadd.f32 %v7387_v35, %v7954_v57  ;;  %v6963_v28 = vpack.c.bf16 %v692_v14, %v692_v14 }
  0xfc   :  { %v511_v39 = vpop.f32.mrf.mxu0 }
  0xfd   :  { %v512_v59 = vadd.f32 %v7954_v57, %v511_v39  ;;  %v6962_v15 = vpack.c.bf16 %v691_v1, %v691_v1  ;;  %v8066_v16 = vmax.f32 %v520_v2, 0.0 }
  0xfe   :  { %v7388_v47 = vpop.f32.mrf.mxu0 }
  0xff   :  { %v523_v58 = vadd.f32 %v7388_v47, %v7954_v57  ;;  %1281 = vrot.lane.b32.xlu1 %v1153_v50, %s7698_s12  ;;  %1233 = vrot.lane.b32.xlu0 %v6960_v42, %s7698_s12  ;;  %v8062_v8 = vmax.f32 %v512_v59, 0.0 }
 0x100   :  { %v514_v60 = vpop.f32.mrf.mxu0 }
 0x101   :  { %v515_v4 = vadd.f32 %v7954_v57, %v514_v60  ;;  %v8058_v11 = vmax.f32 %v523_v58, 0.0 }
 0x102   :  { %v7391_v5 = vpop.f32.mrf.mxu0 }
 0x103   :  { %1235 = vrot.lane.b32.xlu1 %v6961_v0, %s7698_s12  ;;  %1283 = vrot.lane.b32.xlu0 %v1154_v9, %s7698_s12  ;;  %v8064_v12 = vmax.f32 %v515_v4, 0.0  ;;  %v747_v24 = vpack.c.bf16 %v8058_v11, %v8066_v16  ;;  %v536_v29 = vadd.f32 %v7391_v5, %v7954_v57 }
 0x104   :  { %v527_v13 = vpop.f32.mrf.mxu0 }
 0x105   :  { %v746_v19 = vpack.c.bf16 %v8064_v12, %v8062_v8  ;;  %v528_v26 = vadd.f32 %v7954_v57, %v527_v13  ;;  %v8093_v39 = vmax.f32 %v536_v29, 0.0 }
 0x106   :  { %v7392_v20 = vpop.f32.mrf.mxu0 }
 0x107   :  { %v539_v25 = vadd.f32 %v7392_v20, %v7954_v57  ;;  %1285 = vrot.lane.b32.xlu1 %v1155_v23, %s7698_s12  ;;  %1237 = vrot.lane.b32.xlu0 %v6962_v15, %s7698_s12  ;;  %v8087_v36 = vmax.f32 %v528_v26, 0.0 }
 0x108   :  { %7433 = vmatprep.mubr.msk.bf16.mxu0 %vm1341_vm4, %v746_v19  ;;  %v530_v27 = vpop.f32.mrf.mxu0 }
 0x109   :  { %v531_v30 = vadd.f32 %v7954_v57, %v530_v27  ;;  %7434 = vmatmul.mubr.msk.bf16.vlgmr.msra.gmra.mxu0 %vm1341_vm4, %v747_v24  ;;  %v8084_v35 = vmax.f32 %v539_v25, 0.0 }
 0x10a   :  { %v8082_v33 = vpop.f32.mrf.mxu0 }
 0x10b   :  { %1239 = vrot.lane.b32.xlu1 %v6963_v28, %s7698_s12  ;;  %v8089_v37 = vmax.f32 %v531_v30, 0.0  ;;  %v749_v43 = vpack.c.bf16 %v8084_v35, %v8093_v39 }
 0x10c   :  { %v8091_v38 = vpop.f32.mrf.mxu0 }
 0x10d   :  { %v748_v40 = vpack.c.bf16 %v8089_v37, %v8087_v36 }
 0x10e   :  { %v8097_v42 = vpop.f32.mrf.mxu0 }
 0x10f   :  { %7437 = vmatprep.mubr.msk.bf16.mxu0 %vm1341_vm4, %v748_v40 }
 0x110   :  { %v8102_v46 = vpop.f32.mrf.mxu0 }
 0x111   :  { %7438 = vmatmul.mubr.msk.bf16.gmra.mxu0 %vm1341_vm4, %v749_v43 }
 0x112   :  { %v8105_v47 = vpop.f32.mrf.mxu0 }
 0x114   :  { %v8107_v50 = vpop.f32.mrf.mxu0 }
 0x115   :  { %10179 = vst [vmem:[#allocation8_spill] sm:$0xff] %v8107_v50 }
 0x116   :  { %v8109_v51 = vpop.f32.mrf.mxu0 }
 0x118   :  { %v8111_v54 = vpop.f32.mrf.mxu0 }
 0x119   :  { %10180 = vst [vmem:[#allocation9_spill] sm:$0xff] %v8111_v54 }
 0x11a   :  { %v7403_v58 = vpop.f32.mrf.mxu0 }
 0x11b   :  { %v584_v59 = vadd.f32 %v7403_v58, %v7954_v57 }
 0x11c   :  { %v575_v60 = vpop.f32.mrf.mxu0 }
 0x11d   :  { %v712_v61 = vmax.f32 %v584_v59, 0.0  ;;  %v576_v63 = vadd.f32 %v7954_v57, %v575_v60 }
 0x11e   :  { %v7404_v0 = vpop.f32.mrf.mxu0 }
 0x11f   :  { %v710_v1 = vmax.f32 %v576_v63, 0.0  ;;  %v587_v2 = vadd.f32 %v7404_v0, %v7954_v57  ;;  %v8116_v4 = vpack.c.bf16 %v712_v61, %v712_v61 }
 0x120   :  { %v578_v3 = vpop.f32.mrf.mxu0 }
 0x121   :  { %v8118_v5 = vpack.c.bf16 %v710_v1, %v710_v1  ;;  %v713_v9 = vmax.f32 %v587_v2, 0.0  ;;  %v579_v10 = vadd.f32 %v7954_v57, %v578_v3  ;;  %v1091_v20 = vshrl.u32 %v8116_v4, 16 }
 0x122   :  { %v7407_v13 = vpop.f32.mrf.mxu0 }
 0x123   :  { %v1077_v14 = vshrl.u32 %v8118_v5, 16  ;;  %v711_v15 = vmax.f32 %v579_v10, 0.0  ;;  %v8123_v23 = vpack.c.bf16 %v713_v9, %v713_v9  ;;  %v1080_v28 = vshll.u32 %v8118_v5, 16 }
 0x124   :  { %v591_v19 = vpop.f32.mrf.mxu0  ;;  %v600_v40 = vadd.f32 %v7407_v13, %v7954_v57  ;;  %v1093_v61 = vrot.slane %v1091_v20, 7  ;;  %v1094_v10 = vshll.u32 %v8116_v4, 16 }
 0x125   :  { %v8125_v24 = vpack.c.bf16 %v711_v15, %v711_v15  ;;  %v592_v25 = vadd.f32 %v7954_v57, %v591_v19  ;;  %v1079_v27 = vrot.slane %v1077_v14, 7  ;;  %v1098_v59 = vshrl.u32 %v8123_v23, 16 }
 0x126   :  { %v7408_v26 = vpop.f32.mrf.mxu0  ;;  %v716_v13 = vmax.f32 %v600_v40, 0.0 }
 0x127   :  { %v714_v29 = vmax.f32 %v592_v25, 0.0  ;;  %v1084_v30 = vshrl.u32 %v8125_v24, 16  ;;  %v1082_v58 = vor.u32 %v1080_v28, %v1079_v27  ;;  %v1087_v3 = vshll.u32 %v8125_v24, 16 }
 0x128   :  { %v594_v43 = vpop.f32.mrf.mxu0  ;;  %v603_v19 = vadd.f32 %v7408_v26, %v7954_v57  ;;  %v1096_v25 = vor.u32 %v1094_v10, %v1093_v61  ;;  %v8148_v40 = vpack.c.bf16 %v716_v13, %v716_v13  ;;  %v1101_v26 = vshll.u32 %v8123_v23, 16 }
 0x129   :  { %v595_v60 = vadd.f32 %v7954_v57, %v594_v43  ;;  %v8133_v63 = vpack.c.bf16 %v714_v29, %v714_v29  ;;  %v1156_v1 = vsel %vm7994_vm3, 0, %v1082_v58  ;;  %v1086_v2 = vrot.slane %v1084_v30, 7 }
 0x12a   :  { %v7411_v0 = vpop.f32.mrf.mxu0  ;;  %1287 = vrot.lane.b32.xlu0 %v1156_v1, %s7698_s12  ;;  %v1100_v43 = vrot.slane %v1098_v59, 7 }
 0x12b   :  { %v715_v9 = vmax.f32 %v595_v60, 0.0  ;;  %v1089_v15 = vor.u32 %v1087_v3, %v1086_v2  ;;  %v1105_v27 = vshrl.u32 %v8133_v63, 16  ;;  %v616_v1 = vadd.f32 %v7411_v0, %v7954_v57 }
 0x12c   :  { %v607_v14 = vpop.f32.mrf.mxu0  ;;  %v1158_v3 = vsel %vm7994_vm3, 0, %v1096_v25  ;;  %v1108_v0 = vshll.u32 %v8133_v63, 16 }
 0x12d   :  { %v608_v20 = vadd.f32 %v7954_v57, %v607_v14  ;;  %v8143_v28 = vpack.c.bf16 %v715_v9, %v715_v9  ;;  %v1157_v30 = vsel %vm7994_vm3, 0, %v1089_v15  ;;  %v717_v9 = vmax.f32 %v603_v19, 0.0 }
 0x12e   :  { %v7412_v29 = vpop.f32.mrf.mxu0  ;;  %1289 = vrot.lane.b32.xlu1 %v1157_v30, %s7698_s12  ;;  %v1103_v14 = vor.u32 %v1101_v26, %v1100_v43  ;;  %v1107_v59 = vrot.slane %v1105_v27, 7  ;;  %v1119_v30 = vshrl.u32 %v8148_v40, 16 }
 0x12f   :  { %v718_v58 = vmax.f32 %v608_v20, 0.0  ;;  %v1112_v15 = vshrl.u32 %v8143_v28, 16  ;;  %v8161_v19 = vpack.c.bf16 %v717_v9, %v717_v9 }
 0x130   :  { %v610_v60 = vpop.f32.mrf.mxu0  ;;  %v1159_v27 = vsel %vm7994_vm3, 0, %v1103_v14  ;;  %v1110_v26 = vor.u32 %v1108_v0, %v1107_v59  ;;  %v1121_v54 = vrot.slane %v1119_v30, 7 }
 0x131   :  { %v6964_v61 = vpack.c.bf16 %v718_v58, %v718_v58  ;;  %v611_v2 = vadd.f32 %v7954_v57, %v610_v60  ;;  %v720_v58 = vmax.f32 %v616_v1, 0.0  ;;  %v619_v60 = vadd.f32 %v7412_v29, %v7954_v57 }
 0x132   :  { %v7415_v10 = vpop.f32.mrf.mxu0  ;;  %1291 = vrot.lane.b32.xlu1 %v1158_v3, %s7698_s12  ;;  %v1115_v3 = vshll.u32 %v8143_v28, 16  ;;  %v1126_v9 = vshrl.u32 %v8161_v19, 16  ;;  %v1160_v14 = vsel %vm7994_vm3, 0, %v1110_v26 }
 0x133   :  { %v719_v20 = vmax.f32 %v611_v2, 0.0  ;;  %1241 = vrot.lane.b32.xlu0 %v6964_v61, %s7698_s12  ;;  %v1114_v2 = vrot.slane %v1112_v15, 7  ;;  %v6966_v1 = vpack.c.bf16 %v720_v58, %v720_v58  ;;  %v721_v31 = vmax.f32 %v619_v60, 0.0 }
 0x134   :  { %v623_v13 = vpop.f32.mrf.mxu0  ;;  %v1122_v15 = vshll.u32 %v8148_v40, 16 }
 0x135   :  { %v6965_v25 = vpack.c.bf16 %v719_v20, %v719_v20  ;;  %v624_v29 = vadd.f32 %v7954_v57, %v623_v13  ;;  %v1117_v20 = vor.u32 %v1115_v3, %v1114_v2  ;;  %v1128_v2 = vrot.slane %v1126_v9, 7 }
 0x136   :  { %v8165_v43 = vpop.f32.mrf.mxu0  ;;  %v1124_v26 = vor.u32 %v1122_v15, %v1121_v54 }
 0x137   :  { %1243 = vrot.lane.b32.xlu1 %v6965_v25, %s7698_s12  ;;  %1293 = vrot.lane.b32.xlu0 %v1159_v27, %s7698_s12  ;;  %v6967_v25 = vpack.c.bf16 %v721_v31, %v721_v31  ;;  %v722_v58 = vmax.f32 %v624_v29, 0.0  ;;  %v1161_v27 = vsel %vm7994_vm3, 0, %v1117_v20  ;;  %v632_v31 = vadd.f32 %v7415_v10, %v7954_v57 }
 0x138   :  { %v626_v61 = vpop.f32.mrf.mxu0  ;;  %v1162_v9 = vsel %vm7994_vm3, 0, %v1124_v26 }
 0x139   :  { %v627_v60 = vadd.f32 %v7954_v57, %v626_v61  ;;  %v1129_v61 = vshll.u32 %v8161_v19, 16 }
 0x13a   :  { %v7419_v59 = vpop.f32.mrf.mxu0 }
 0x13b   :  { %1295 = vrot.lane.b32.xlu1 %v1160_v14, %s7698_s12  ;;  %1245 = vrot.lane.b32.xlu0 %v6966_v1, %s7698_s12  ;;  %v648_v13 = vadd.f32 %v7419_v59, %v7954_v57  ;;  %v6968_v14 = vpack.c.bf16 %v722_v58, %v722_v58  ;;  %v723_v59 = vmax.f32 %v627_v60, 0.0  ;;  %v1131_v20 = vor.u32 %v1129_v61, %v1128_v2 }
 0x13c   :  { %v639_v0 = vpop.f32.mrf.mxu0  ;;  %v724_v60 = vmax.f32 %v632_v31, 0.0 }
 0x13d   :  { %v640_v30 = vadd.f32 %v7954_v57, %v639_v0  ;;  %v8187_v50 = vmax.f32 %v648_v13, 0.0  ;;  %v6969_v13 = vpack.c.bf16 %v723_v59, %v723_v59  ;;  %v1163_v2 = vsel %vm7994_vm3, 0, %v1131_v20 }
 0x13e   :  { %v7420_v3 = vpop.f32.mrf.mxu0 }
 0x13f   :  { %1247 = vrot.lane.b32.xlu1 %v6967_v25, %s7698_s12  ;;  %1297 = vrot.lane.b32.xlu0 %v1161_v27, %s7698_s12  ;;  %v651_v1 = vadd.f32 %v7420_v3, %v7954_v57  ;;  %v8193_v15 = vmax.f32 %v640_v30, 0.0 }
 0x140   :  { %v642_v29 = vpop.f32.mrf.mxu0 }
 0x141   :  { %v8189_v54 = vmax.f32 %v651_v1, 0.0  ;;  %v643_v0 = vadd.f32 %v7954_v57, %v642_v29  ;;  %v6970_v29 = vpack.c.bf16 %v724_v60, %v724_v60 }
 0x142   :  { %v7423_v25 = vpop.f32.mrf.mxu0 }
 0x143   :  { %1299 = vrot.lane.b32.xlu1 %v1162_v9, %s7698_s12  ;;  %1249 = vrot.lane.b32.xlu0 %v6968_v14, %s7698_s12  ;;  %v8198_v10 = vmax.f32 %v643_v0, 0.0  ;;  %v763_v27 = vpack.c.bf16 %v8189_v54, %v8187_v50  ;;  %v664_v26 = vadd.f32 %v7423_v25, %v7954_v57  ;;  %v507_v25 = vadd.f32 %v8028_v22, %v7954_v57 }
 0x144   :  { %v655_v58 = vpop.f32.mrf.mxu0 }
 0x145   :  { %v762_v30 = vpack.c.bf16 %v8198_v10, %v8193_v15  ;;  %v656_v3 = vadd.f32 %v7954_v57, %v655_v58  ;;  %v8213_v14 = vmax.f32 %v664_v26, 0.0 }
 0x146   :  { %v7424_v1 = vpop.f32.mrf.mxu0 }
 0x147   :  { %1251 = vrot.lane.b32.xlu1 %v6969_v13, %s7698_s12  ;;  %1301 = vrot.lane.b32.xlu0 %v1163_v2, %s7698_s12  ;;  %v667_v31 = vadd.f32 %v7424_v1, %v7954_v57  ;;  %v8218_v20 = vmax.f32 %v656_v3, 0.0  ;;  %v10181_v13 = vmov 0  }
 0x148   :  { %7441 = vmatprep.mubr.msk.bf16.mxu0 %vm1341_vm4, %v762_v30  ;;  %v658_v61 = vpop.f32.mrf.mxu0 }
 0x149   :  { %7442 = vmatmul.mubr.msk.bf16.gmra.mxu0 %vm1341_vm4, %v763_v27  ;;  %v8215_v59 = vmax.f32 %v667_v31, 0.0  ;;  %v659_v9 = vadd.f32 %v7954_v57, %v658_v61  ;;  %v6944_v27 = vpack.c.bf16 %v8064_v12, %v8064_v12  ;;  %v635_v12 = vadd.f32 %v8165_v43, %v7954_v57 }
 0x14b   :  { %1303 = vrot.lane.b32.xlu1 %v7970_v7, %s7698_s12  ;;  %1253 = vrot.lane.b32.xlu0 %v6970_v29, %s7698_s12  ;;  %v8223_v0 = vmax.f32 %v659_v9, 0.0  ;;  %v765_v58 = vpack.c.bf16 %v8215_v59, %v8213_v14  ;;  %v693_v7 = vmax.f32 %v507_v25, 0.0  ;;  %v819_v2 = vshrl.u32 %v6944_v27, 16 }
 0x14c   :  { %v6947_v9 = vpack.c.bf16 %v8087_v36, %v8087_v36  ;;  %v725_v25 = vmax.f32 %v635_v12, 0.0 }
 0x14d   :  { %v764_v60 = vpack.c.bf16 %v8223_v0, %v8218_v20  ;;  %v7005_v22 = vpack.c.bf16 %v693_v7, %v693_v7  ;;  %v821_v31 = vrot.slane %v819_v2, 7  ;;  %v8299_v2 = vpack.c.bf16 %v8089_v37, %v8089_v37  ;;  %v7511_v37 = vld [vmem:[%s10157_s3 + $0xb0] sm:$0xff]  }
 0x14f   :  { %1307 = vrot.lane.b32.xlu1 %v7968_v6, %s7698_s12  ;;  %1305 = vrot.lane.b32.xlu0 %v7983_v18, %s7698_s12  ;;  %v6943_v6 = vpack.c.bf16 %v8062_v8, %v8062_v8  ;;  %v807_v8 = vrot.slane %v10181_v13, 7 }
 0x150   :  { %7445 = vmatprep.mubr.msk.bf16.mxu0 %vm1341_vm4, %v764_v60 }
 0x151   :  { %7446 = vmatmul.mubr.msk.bf16.gmra.mxu0 %vm1341_vm4, %v765_v58  ;;  %v812_v18 = vshrl.u32 %v6943_v6, 16  ;;  %v815_v30 = vshll.u32 %v6943_v6, 16  ;;  %v927_v3 = vsel %vm7994_vm3, 0, %v807_v8  ;;  %v7510_v8 = vld [vmem:[%s10157_s3 + $0xf0] sm:$0xff]  }
 0x152   :  { %2636 = vmatprep.mubr.bf16.mxu0 %v10181_v13 }
 0x153   :  { %1311 = vrot.lane.b32.xlu1 %v7998_v34, %s7698_s12  ;;  %1309 = vrot.lane.b32.xlu0 %v7981_v17, %s7698_s12  ;;  %v6945_v17 = vpack.c.bf16 %v8066_v16, %v8066_v16  ;;  %v814_v26 = vrot.slane %v812_v18, 7 }
 0x155   :  { %v817_v1 = vor.u32 %v815_v30, %v814_v26  ;;  %v840_v26 = vshrl.u32 %v6947_v9, 16  ;;  %v7006_v30 = vpack.c.bf16 %v725_v25, %v725_v25  ;;  %v7513_v25 = vld [vmem:[%s10157_s3 + $0xa8] sm:$0xff]  }
 0x157   :  { %1337 = vrot.lane.b32.xlu1 %v7005_v22, %s7698_s12  ;;  %1313 = vrot.lane.b32.xlu0 %v8008_v55, %s7698_s12  ;;  %v1226_v55 = vpop.permute.xlu1 %1225 }
 0x158   :  { %v8276_v43 = vsel %vm1341_vm4, %v927_v3, %v1226_v55 }
 0x15b   :  { %1317 = vrot.lane.b32.xlu1 %v8026_v21, %s7698_s12  ;;  %1315 = vrot.lane.b32.xlu0 %v8013_v62, %s7698_s12  ;;  %v826_v21 = vshrl.u32 %v6945_v17, 16  ;;  %v8262_v62 = vpack.c.bf16 %v8058_v11, %v8058_v11 }
 0x15c   :  { %v1272_v34 = vpop.permute.xlu0 %1271 }
 0x15d   :  { %v833_v57 = vshrl.u32 %v8262_v62, 16  ;;  %v828_v29 = vrot.slane %v826_v21, 7  ;;  %v836_v3 = vshll.u32 %v8262_v62, 16 }
 0x15f   :  { %1321 = vrot.lane.b32.xlu1 %v8125_v24, %s7698_s12  ;;  %1319 = vrot.lane.b32.xlu0 %v8118_v5, %s7698_s12  ;;  %v1388_v24 = vsel %vm1341_vm4, 0, %v1272_v34  ;;  %v822_v5 = vshll.u32 %v6944_v27, 16  ;;  %v835_v34 = vrot.slane %v833_v57, 7  ;;  %v842_v57 = vrot.slane %v840_v26, 7  ;;  %v7515_v26 = vld [vmem:[%s10157_s3 + $0xa0] sm:$0xff]  }
 0x160   :  { %v1274_v16 = vpop.permute.xlu0 %1273 }
 0x161   :  { %v1390_v61 = vsel %vm1341_vm4, %v6943_v6, %v1274_v16  ;;  %v824_v7 = vor.u32 %v822_v5, %v821_v31  ;;  %v7509_v6 = vld [vmem:[%s10157_s3 + $0xb8] sm:$0xff]   ;;  %v838_v5 = vor.u32 %v836_v3, %v835_v34 }
 0x162   :  { %v6611_v11 = vcombine.low %v1388_v24, %v1390_v61 }
 0x163   :  { %1325 = vrot.lane.b32.xlu1 %v8123_v23, %s7698_s12  ;;  %1323 = vrot.lane.b32.xlu0 %v8116_v4, %s7698_s12  ;;  %v928_v23 = vsel %vm7994_vm3, 0, %v817_v1  ;;  %v829_v4 = vshll.u32 %v6945_v17, 16 }
 0x164   :  { %1994 = vmatprep.mubr.bf16.mxu1 %v6611_v11  ;;  %v1276_v58 = vpop.permute.xlu0 %1275 }
 0x165   :  { %v1228_v60 = vpop.permute.xlu1 %1227  ;;  %v831_v36 = vor.u32 %v829_v4, %v828_v29  ;;  %v931_v4 = vsel %vm7994_vm3, 0, %v838_v5 }
 0x166   :  { %v8283_v22 = vsel %vm1341_vm4, %v928_v23, %v1228_v60  ;;  %v7514_v23 = vld [vmem:[%s10157_s3 + $0xe0] sm:$0xff]  }
 0x167   :  { %v6610_v18 = vcombine.low %v8276_v43, %v8283_v22  ;;  %1329 = vrot.lane.b32.xlu1 %v8143_v28, %s7698_s12  ;;  %1327 = vrot.lane.b32.xlu0 %v8133_v63, %s7698_s12  ;;  %v929_v28 = vsel %vm7994_vm3, 0, %v824_v7  ;;  %v1392_v63 = vsel %vm1341_vm4, %v6944_v27, %v1276_v58  ;;  %v7512_v27 = vld [vmem:[%s10157_s3 + $0xe8] sm:$0xff]   ;;  %v930_v24 = vsel %vm7994_vm3, 0, %v831_v36 }
 0x169   :  { %v1278_v55 = vpop.permute.xlu1 %1277  ;;  %1995 = vmatmul.mubr.bf16.vlgmr.msra.gmra.mxu1 %v6610_v18  ;;  %v1230_v21 = vpop.permute.xlu0 %1229 }
 0x16a   :  { %v1394_v12 = vsel %vm1341_vm4, %v6945_v17, %v1278_v55  ;;  %v8306_v16 = vsel %vm1341_vm4, %v929_v28, %v1230_v21  ;;  %7106 = vmatpush3.bf16.msra.mxu1 %v7509_v6  ;;  %v6949_v17 = vpack.c.bf16 %v8093_v39, %v8093_v39  ;;  %v843_v39 = vshll.u32 %v6947_v9, 16 }
 0x16b   :  { %v6615_v1 = vcombine.low %v1392_v63, %v1394_v12  ;;  %v6613_v31 = vcombine.low %v8283_v22, %v8306_v16  ;;  %1331 = vrot.lane.b32.xlu1 %v8148_v40, %s7698_s12  ;;  %1339 = vrot.lane.b32.xlu0 %v7006_v30, %s7698_s12  ;;  %v847_v40 = vshrl.u32 %v8299_v2, 16  ;;  %v850_v28 = vshll.u32 %v8299_v2, 16 }
 0x16c   :  { %7107 = vmatprep.subr.bf16.mxu1 %v7510_v8  ;;  %v854_v60 = vshrl.u32 %v6949_v17, 16  ;;  %v845_v18 = vor.u32 %v843_v39, %v842_v57 }
 0x16d   :  { %v1232_v61 = vpop.permute.xlu1 %1231  ;;  %2002 = vmatprep.mubr.bf16.mxu1 %v6615_v1  ;;  %v1280_v11 = vpop.permute.xlu0 %1279  ;;  %v849_v36 = vrot.slane %v847_v40, 7  ;;  %v7517_v1 = vld [vmem:[%s10157_s3 + $0x98] sm:$0xff]  }
 0x16e   :  { %v8326_v29 = vsel %vm1341_vm4, %v930_v24, %v1232_v61  ;;  %7108 = vmatpush3.bf16.msra.mxu1 %v7511_v37  ;;  %v1396_v34 = vsel %vm1341_vm4, %v8262_v62, %v1280_v11  ;;  %v7516_v62 = vld [vmem:[%s10157_s3 + $0xd8] sm:$0xff]   ;;  %v856_v37 = vrot.slane %v854_v60, 7  ;;  %v7518_v61 = vld [vmem:[%s10157_s3 + $0xd0] sm:$0xff]  }
 0x16f   :  { %v6614_v58 = vcombine.low %v8306_v16, %v8326_v29  ;;  %1333 = vrot.lane.b32.xlu0 %v8161_v19, %s7698_s12  ;;  %7109 = vmatprep.subr.bf16.mxu1 %v7512_v27  ;;  %v852_v12 = vor.u32 %v850_v28, %v849_v36  ;;  %v857_v27 = vshll.u32 %v6949_v17, 16  ;;  %v6951_v28 = vpack.c.bf16 %v8198_v10, %v8198_v10 }
 0x171   :  { %v1282_v7 = vpop.permute.xlu1 %1281  ;;  %2003 = vmatmul.mubr.bf16.gmra.mxu1 %v6614_v58  ;;  %v1234_v6 = vpop.permute.xlu0 %1233  ;;  %v933_v5 = vsel %vm7994_vm3, 0, %v852_v12  ;;  %v859_v40 = vor.u32 %v857_v27, %v856_v37 }
 0x172   :  { %v1398_v8 = vsel %vm1341_vm4, %v6947_v9, %v1282_v7  ;;  %v8344_v19 = vsel %vm1341_vm4, %v931_v4, %v1234_v6  ;;  %7110 = vmatpush3.bf16.msra.mxu1 %v7513_v25  ;;  %v932_v9 = vsel %vm7994_vm3, 0, %v845_v18  ;;  %v7520_v4 = vld [vmem:[%s10157_s3 + $0xc8] sm:$0xff]  }
 0x173   :  { %v6619_v30 = vcombine.low %v1396_v34, %v1398_v8  ;;  %v6617_v55 = vcombine.low %v8326_v29, %v8344_v19  ;;  %7111 = vmatprep.subr.bf16.mxu1 %v7514_v23  ;;  %v7519_v23 = vld [vmem:[%s10157_s3 + $0x90] sm:$0xff]   ;;  %v7521_v18 = vld [vmem:[%s10157_s3 + $0x88] sm:$0xff]   ;;  %v7522_v34 = vld [vmem:[%s10157_s3 + $0xc0] sm:$0xff]  }
 0x174   :  { %v7523_v8 = vld [vmem:[%s10157_s3 + $0x80] sm:$0xff]  }
 0x175   :  { %v1236_v21 = vpop.permute.xlu1 %1235  ;;  %2010 = vmatprep.mubr.bf16.mxu1 %v6619_v30  ;;  %v1284_v63 = vpop.permute.xlu0 %1283  ;;  %v2303_v29 = vld [vmem:[%s10159_s5 + $0x340] sm:$0xff] }
 0x176   :  { %v8358_v3 = vsel %vm1341_vm4, %v932_v9, %v1236_v21  ;;  %7112 = vmatpush3.bf16.msra.mxu1 %v7515_v26  ;;  %v1400_v25 = vsel %vm1341_vm4, %v8299_v2, %v1284_v63  ;;  %v934_v2 = vsel %vm7994_vm3, 0, %v859_v40  ;;  %v6950_v26 = vpack.c.bf16 %v8193_v15, %v8193_v15 }
 0x177   :  { %v6618_v24 = vcombine.low %v8344_v19, %v8358_v3  ;;  %7113 = vmatprep.subr.bf16.mxu1 %v7516_v62  ;;  %v6952_v62 = vpack.c.bf16 %v8187_v50, %v8187_v50  ;;  %v868_v63 = vshrl.u32 %v6951_v28, 16 }
 0x178   :  { %v861_v30 = vshrl.u32 %v6950_v26, 16  ;;  %v864_v9 = vshll.u32 %v6950_v26, 16 }
 0x179   :  { %v1286_v11 = vpop.permute.xlu1 %1285  ;;  %2011 = vmatmul.mubr.bf16.gmra.mxu1 %v6618_v24  ;;  %v1238_v57 = vpop.permute.xlu0 %1237  ;;  %v875_v37 = vshrl.u32 %v6952_v62, 16 }
 0x17a   :  { %v1402_v39 = vsel %vm1341_vm4, %v6949_v17, %v1286_v11  ;;  %v8374_v58 = vsel %vm1341_vm4, %v933_v5, %v1238_v57  ;;  %7114 = vmatpush3.bf16.msra.mxu1 %v7517_v1  ;;  %v863_v21 = vrot.slane %v861_v30, 7  ;;  %v6953_v1 = vpack.c.bf16 %v8189_v54, %v8189_v54 }
 0x17b   :  { %v6623_v60 = vcombine.low %v1400_v25, %v1402_v39  ;;  %v6621_v7 = vcombine.low %v8358_v3, %v8374_v58  ;;  %7115 = vmatprep.subr.bf16.mxu1 %v7518_v61  ;;  %v870_v61 = vrot.slane %v868_v63, 7  ;;  %v871_v11 = vshll.u32 %v6951_v28, 16 }
 0x17c   :  { %v866_v24 = vor.u32 %v864_v9, %v863_v21  ;;  %v878_v57 = vshll.u32 %v6952_v62, 16  ;;  %v877_v40 = vrot.slane %v875_v37, 7  ;;  %v882_v50 = vshrl.u32 %v6953_v1, 16 }
 0x17d   :  { %v1240_v17 = vpop.permute.xlu1 %1239  ;;  %2018 = vmatprep.mubr.bf16.mxu1 %v6623_v60  ;;  %v6954_v25 = vpack.c.bf16 %v8218_v20, %v8218_v20  ;;  %v873_v60 = vor.u32 %v871_v11, %v870_v61 }
 0x17e   :  { %v8387_v6 = vsel %vm1341_vm4, %v934_v2, %v1240_v17  ;;  %7116 = vmatpush3.bf16.msra.mxu1 %v7519_v23  ;;  %v935_v54 = vsel %vm7994_vm3, 0, %v866_v24  ;;  %v885_v17 = vshll.u32 %v6953_v1, 16  ;;  %v884_v30 = vrot.slane %v882_v50, 7 }
 0x17f   :  { %v6622_v36 = vcombine.low %v8374_v58, %v8387_v6  ;;  %7117 = vmatprep.subr.bf16.mxu1 %v7520_v4  ;;  %v936_v20 = vsel %vm7994_vm3, 0, %v873_v60 }
 0x181   :  { %2019 = vmatmul.mubr.bf16.gmra.mxu1 %v6622_v36  ;;  %v889_v36 = vshrl.u32 %v6954_v25, 16 }
 0x182   :  { %7118 = vmatpush3.bf16.msra.mxu1 %v7521_v18  ;;  %v880_v18 = vor.u32 %v878_v57, %v877_v40 }
 0x183   :  { %7119 = vmatprep.subr.bf16.mxu1 %v7522_v34  ;;  %v6955_v34 = vpack.c.bf16 %v8223_v0, %v8223_v0  ;;  %v6956_v0 = vpack.c.bf16 %v8213_v14, %v8213_v14  ;;  %v891_v11 = vrot.slane %v889_v36, 7 }
 0x184   :  { %v937_v37 = vsel %vm7994_vm3, 0, %v880_v18 }
 0x185   :  { %v906_v36 = vshll.u32 %v6956_v0, 16 }
 0x186   :  { %7120 = vmatpush3.bf16.msra.mxu1 %v7523_v8 }
 0x19c   :  { %v1288_v12 = vpop.permute.xlu0 %1287 }
 0x19d   :  { %v1404_v15 = vsel %vm1341_vm4, 0, %v1288_v12 }
 0x1a0   :  { %v1290_v27 = vpop.permute.xlu1 %1289 }
 0x1a1   :  { %v1406_v5 = vsel %vm1341_vm4, %v6950_v26, %v1290_v27  ;;  %v892_v27 = vshll.u32 %v6954_v25, 16 }
 0x1a2   :  { %v6627_v10 = vcombine.low %v1404_v15, %v1406_v5  ;;  %v896_v15 = vshrl.u32 %v6955_v34, 16 }
 0x1a3   :  { %v894_v50 = vor.u32 %v892_v27, %v891_v11 }
 0x1a4   :  { %v1292_v39 = vpop.permute.xlu1 %1291  ;;  %2026 = vmatprep.mubr.bf16.mxu1 %v6627_v10  ;;  %v903_v10 = vshrl.u32 %v6956_v0, 16 }
 0x1a5   :  { %v1242_v23 = vpop.permute.xlu0 %1241  ;;  %v1408_v9 = vsel %vm1341_vm4, %v6951_v28, %v1292_v39  ;;  %v887_v28 = vor.u32 %v885_v17, %v884_v30  ;;  %v898_v39 = vrot.slane %v896_v15, 7 }
 0x1a6   :  { %v8415_v4 = vsel %vm1341_vm4, %v935_v54, %v1242_v23  ;;  %v899_v54 = vshll.u32 %v6955_v34, 16 }
 0x1a7   :  { %v6626_v2 = vcombine.low %v8276_v43, %v8415_v4  ;;  %v938_v14 = vsel %vm7994_vm3, 0, %v887_v28 }
 0x1a8   :  { %v901_v30 = vor.u32 %v899_v54, %v898_v39 }
 0x1a9   :  { %v1244_v8 = vpop.permute.xlu1 %1243  ;;  %2027 = vmatmul.mubr.bf16.gmra.mxu1 %v6626_v2  ;;  %v1294_v26 = vpop.permute.xlu0 %1293 }
 0x1aa   :  { %v8425_v21 = vsel %vm1341_vm4, %v936_v20, %v1244_v8  ;;  %v1410_v43 = vsel %vm1341_vm4, %v6952_v62, %v1294_v26  ;;  %v939_v8 = vsel %vm7994_vm3, 0, %v894_v50 }
 0x1ab   :  { %v6629_v63 = vcombine.low %v8415_v4, %v8425_v21  ;;  %v6631_v12 = vcombine.low %v1408_v9, %v1410_v43  ;;  %v905_v9 = vrot.slane %v903_v10, 7  ;;  %v2299_v4 = vld [vmem:[%s10159_s5 + $0x2c0] sm:$0xff] }
 0x1ad   :  { %v1296_v24 = vpop.permute.xlu1 %1295  ;;  %2034 = vmatprep.mubr.bf16.mxu1 %v6631_v12  ;;  %v1246_v61 = vpop.permute.xlu0 %1245  ;;  %v908_v27 = vor.u32 %v906_v36, %v905_v9 }
 0x1ae   :  { %v8435_v5 = vsel %vm1341_vm4, %v937_v37, %v1246_v61  ;;  %v1412_v23 = vsel %vm1341_vm4, %v6953_v1, %v1296_v24  ;;  %v8460_v24 = vld [vmem:[%s10156_s2] ss:$0 sm:$0xff] }
 0x1af   :  { %v6630_v62 = vcombine.low %v8425_v21, %v8435_v5  ;;  %v419_v61 = vadd.f32 %v8460_v24, %v7929_v48  ;;  %v416_v10 = vadd.f32 %v8460_v24, %v7919_v44  ;;  %v427_v48 = vadd.f32 %v8460_v24, %v7921_v45  ;;  %v10182_v21 = vld [vmem:[#allocation8_spill] sm:$0xff] }
 0x1b1   :  { %v1248_v57 = vpop.permute.xlu1 %1247  ;;  %2035 = vmatmul.mubr.bf16.gmra.mxu1 %v6630_v62  ;;  %v1298_v40 = vpop.permute.xlu0 %1297  ;;  %v424_v62 = vadd.f32 %v8460_v24, %v7911_v41  ;;  %v670_v54 = vmax.f32 %v416_v10, 0.0  ;;  %v2307_v10 = vld [vmem:[%s10159_s5 + $0x3c0] sm:$0xff] }
 0x1b2   :  { %v8443_v60 = vsel %vm1341_vm4, %v938_v14, %v1248_v57  ;;  %v1414_v2 = vsel %vm1341_vm4, %v6954_v25, %v1298_v40  ;;  %v940_v25 = vsel %vm7994_vm3, 0, %v901_v30  ;;  %v7003_v30 = vpack.c.bf16 %v8084_v35, %v8084_v35 }
 0x1b3   :  { %v6633_v17 = vcombine.low %v8435_v5, %v8443_v60  ;;  %v6635_v18 = vcombine.low %v1412_v23, %v1414_v2  ;;  %v672_v41 = vmax.f32 %v424_v62, 0.0  ;;  %v673_v23 = vmax.f32 %v427_v48, 0.0  ;;  %v2295_v5 = vld [vmem:[%s10159_s5 + $0x240] sm:$0xff] }
 0x1b4   :  { %v435_v35 = vadd.f32 %v8460_v24, %v7949_v56  ;;  %v432_v56 = vadd.f32 %v8460_v24, %v7939_v52  ;;  %v1210_v52 = vshll.u32 %v7003_v30, 16 }
 0x1b5   :  { %v1300_v20 = vpop.permute.xlu1 %1299  ;;  %2042 = vmatprep.mubr.bf16.mxu1 %v6635_v18  ;;  %v1250_v26 = vpop.permute.xlu0 %1249  ;;  %v6989_v36 = vpack.c.bf16 %v672_v41, %v672_v41 }
 0x1b6   :  { %v8451_v1 = vsel %vm1341_vm4, %v939_v8, %v1250_v26  ;;  %v1416_v28 = vsel %vm1341_vm4, %v6955_v34, %v1300_v20  ;;  %v941_v34 = vsel %vm7994_vm3, 0, %v908_v27  ;;  %v6987_v20 = vpack.c.bf16 %v670_v54, %v670_v54 }
 0x1b7   :  { %v6634_v43 = vcombine.low %v8443_v60, %v8451_v1  ;;  %v6990_v8 = vpack.c.bf16 %v673_v23, %v673_v23  ;;  %v443_v26 = vadd.f32 %v8460_v24, %v7941_v53  ;;  %v1207_v53 = vshrl.u32 %v7003_v30, 16 }
 0x1b8   :  { %v675_v41 = vmax.f32 %v435_v35, 0.0  ;;  %v552_v54 = vadd.f32 %v8460_v24, %v8082_v33  ;;  %v7004_v23 = vpack.c.bf16 %v8215_v59, %v8215_v59 }
 0x1b9   :  { %v1252_v12 = vpop.permute.xlu1 %1251  ;;  %2043 = vmatmul.mubr.bf16.gmra.mxu1 %v6634_v43  ;;  %v1302_v37 = vpop.permute.xlu0 %1301  ;;  %v440_v43 = vadd.f32 %v8460_v24, %v7931_v49  ;;  %v2305_v49 = vld [vmem:[%s10159_s5 + $0x380] sm:$0xff] }
 0x1ba   :  { %v8466_v11 = vsel %vm1341_vm4, %v940_v25, %v1252_v12  ;;  %v1418_v15 = vsel %vm1341_vm4, %v6956_v0, %v1302_v37  ;;  %v671_v0 = vmax.f32 %v419_v61, 0.0  ;;  %v677_v61 = vmax.f32 %v443_v26, 0.0 }
 0x1bb   :  { %v6637_v14 = vcombine.low %v8451_v1, %v8466_v11  ;;  %v6639_v57 = vcombine.low %v1416_v28, %v1418_v15  ;;  %v676_v28 = vmax.f32 %v440_v43, 0.0  ;;  %v6714_v48 = vcombine.low %v2305_v49, %v2307_v10  ;;  %v2289_v1 = vld [vmem:[%s10159_s5 + $0x180] sm:$0xff] }
 0x1bc   :  { %v6988_v45 = vpack.c.bf16 %v671_v0, %v671_v0  ;;  %v6994_v19 = vpack.c.bf16 %v677_v61, %v677_v61  ;;  %v6992_v43 = vpack.c.bf16 %v675_v41, %v675_v41  ;;  %v1214_v30 = vshrl.u32 %v7004_v23, 16 }
 0x1bd   :  { %v1304_v40 = vpop.permute.xlu1 %1303  ;;  %2050 = vmatprep.mubr.bf16.mxu1 %v6639_v57  ;;  %v1254_v50 = vpop.permute.xlu0 %1253  ;;  %v2301_v57 = vld [vmem:[%s10159_s5 + $0x300] sm:$0xff]  ;;  %v6993_v0 = vpack.c.bf16 %v676_v28, %v676_v28  ;;  %v1217_v28 = vshll.u32 %v7004_v23, 16 }
 0x1be   :  { %v8480_v39 = vsel %vm1341_vm4, %v941_v34, %v1254_v50  ;;  %v1421_v37 = vsel %vm1341_vm4, %v6987_v20, %v1304_v40  ;;  %v6715_v40 = vcombine.high %v2305_v49, %v2307_v10  ;;  %v555_v34 = vadd.f32 %v8460_v24, %v8097_v42 }
 0x1bf   :  { %v6638_v44 = vcombine.low %v8466_v11, %v8480_v39  ;;  %v6711_v50 = vcombine.high %v2301_v57, %v2303_v29  ;;  %v674_v42 = vmax.f32 %v432_v56, 0.0  ;;  %v544_v56 = vadd.f32 %v8460_v24, %v8091_v38  ;;  %v2291_v11 = vld [vmem:[%s10159_s5 + $0x1c0] sm:$0xff] }
 0x1c0   :  { %2491 = vmatprep.subr.bf16.mxu1 %v6715_v40  ;;  %v705_v20 = vmax.f32 %v555_v34, 0.0 }
 0x1c1   :  { %v1308_v2 = vpop.permute.xlu1 %1307  ;;  %2051 = vmatmul.mubr.bf16.gmra.mxu1 %v6638_v44  ;;  %v1306_v18 = vpop.permute.xlu0 %1305  ;;  %v6991_v59 = vpack.c.bf16 %v674_v42, %v674_v42  ;;  %v10183_v42 = vld [vmem:[#allocation9_spill] sm:$0xff] }
 0x1c2   :  { %2091 = vmatprep.mubr.bf16.mxu1 %v6613_v31  ;;  %v1424_v9 = vsel %vm1341_vm4, %v6988_v45, %v1306_v18  ;;  %v1427_v22 = vsel %vm1341_vm4, %v6989_v36, %v1308_v2  ;;  %v6710_v45 = vcombine.low %v2301_v57, %v2303_v29 }
 0x1c3   :  { %v6612_v31 = vcombine.low %v1421_v37, %v1424_v9  ;;  %v704_v9 = vmax.f32 %v552_v54, 0.0  ;;  %v6998_v37 = vpack.c.bf16 %v705_v20, %v705_v20  ;;  %v563_v20 = vadd.f32 %v8460_v24, %v10183_v42  ;;  %v8654_v42 = vld [vmem:[%s10159_s5 + $0x390] sm:$0xff] }
 0x1c5   :  { %v1312_v25 = vpop.permute.xlu1 %1311  ;;  %v1310_v12 = vpop.permute.xlu0 %1309 }
 0x1c6   :  { %v1430_v16 = vsel %vm1341_vm4, %v6990_v8, %v1310_v12  ;;  %v1433_v35 = vsel %vm1341_vm4, %v6991_v59, %v1312_v25  ;;  %v547_v25 = vadd.f32 %v8460_v24, %v8102_v46 }
 0x1c7   :  { %v6616_v27 = vcombine.low %v1427_v22, %v1430_v16 }
 0x1c8   :  { %v703_v34 = vmax.f32 %v547_v25, 0.0  ;;  %v2294_v25 = vld [vmem:[%s10159_s5 + $0x208] sm:$0xff] }
 0x1c9   :  { %v1338_v15 = vpop.permute.xlu1 %1337  ;;  %2092 = vmatmul.mubr.bf16.vlgmr.msra.gmra.mxu1 %v6612_v31  ;;  %v1314_v62 = vpop.permute.xlu0 %1313  ;;  %v6997_v31 = vpack.c.bf16 %v704_v9, %v704_v9 }
 0x1ca   :  { %2099 = vmatprep.mubr.bf16.mxu1 %v6617_v55  ;;  %v1209_v55 = vrot.slane %v1207_v53, 7  ;;  %2492 = vmatpush1.bf16.msra.mxu1 %v6714_v48  ;;  %v1436_v16 = vsel %vm1341_vm4, %v6992_v43, %v1314_v62  ;;  %v568_v62 = vadd.f32 %v8460_v24, %v8105_v47 }
 0x1cb   :  { %2493 = vmatprep.subr.bf16.mxu1 %v6711_v50  ;;  %v6620_v58 = vcombine.low %v1433_v35, %v1436_v16  ;;  %v6699_v16 = vcombine.high %v2289_v1, %v2291_v11 }
 0x1cc   :  { %v1212_v8 = vor.u32 %v1210_v52, %v1209_v55  ;;  %v702_v55 = vmax.f32 %v544_v56, 0.0 }
 0x1cd   :  { %v1318_v44 = vpop.permute.xlu1 %1317  ;;  %v1316_v18 = vpop.permute.xlu0 %1315 }
 0x1ce   :  { %v1442_v2 = vsel %vm1341_vm4, %v6994_v19, %v1318_v44  ;;  %v1439_v36 = vsel %vm1341_vm4, %v6993_v0, %v1316_v18  ;;  %2494 = vmatpush1.bf16.msra.mxu1 %v6710_v45  ;;  %v1222_v22 = vsel %vm7994_vm3, 0, %v1212_v8  ;;  %v708_v19 = vmax.f32 %v568_v62, 0.0  ;;  %v2300_v62 = vld [vmem:[%s10159_s5 + $0x2c8] sm:$0xff] }
 0x1cf   :  { %v6624_v26 = vcombine.low %v1439_v36, %v1442_v2  ;;  %v1469_v61 = vsel %vm1341_vm4, %v1222_v22, %v1338_v15  ;;  %v571_v15 = vadd.f32 %v8460_v24, %v8109_v51  ;;  %v6995_v46 = vpack.c.bf16 %v702_v55, %v702_v55  ;;  %v2297_v36 = vld [vmem:[%s10159_s5 + $0x280] sm:$0xff]  ;;  %v2290_v55 = vld [vmem:[%s10159_s5 + $0x188] sm:$0xff] }
 0x1d0   :  { %v6625_v10 = vcombine.low %v8387_v6, %v1469_v61  ;;  %v7001_v41 = vpack.c.bf16 %v708_v19, %v708_v19  ;;  %v6996_v44 = vpack.c.bf16 %v703_v34, %v703_v34  ;;  %v6706_v8 = vcombine.low %v2297_v36, %v2299_v4  ;;  %v2281_v19 = vld [vmem:[%s10159_s5 + $0x80] sm:$0xff] }
 0x1d1   :  { %v1322_v33 = vpop.permute.xlu1 %1321  ;;  %2100 = vmatmul.mubr.bf16.gmra.mxu1 %v6616_v27  ;;  %v1320_v12 = vpop.permute.xlu0 %1319  ;;  %v1216_v27 = vrot.slane %v1214_v30, 7  ;;  %v709_v6 = vmax.f32 %v571_v15, 0.0  ;;  %v6698_v22 = vcombine.low %v2289_v1, %v2291_v11 }
 0x1d2   :  { %2107 = vmatprep.mubr.bf16.mxu1 %v6621_v7  ;;  %v1448_v2 = vsel %vm1341_vm4, %v6996_v44, %v1322_v33  ;;  %v1445_v18 = vsel %vm1341_vm4, %v6995_v46, %v1320_v12  ;;  %v707_v33 = vmax.f32 %v563_v20, 0.0  ;;  %v2282_v44 = vld [vmem:[%s10159_s5 + $0x88] sm:$0xff]  ;;  %v8659_v20 = vld [vmem:[%s10159_s5 + $0x3d0] sm:$0xff] }
 0x1d3   :  { %v1219_v29 = vor.u32 %v1217_v28, %v1216_v27  ;;  %v7002_v54 = vpack.c.bf16 %v709_v6, %v709_v6  ;;  %v2302_v27 = vld [vmem:[%s10159_s5 + $0x308] sm:$0xff]  ;;  %v2283_v6 = vld [vmem:[%s10159_s5 + $0xc0] sm:$0xff] }
 0x1d4   :  { %v7000_v30 = vpack.c.bf16 %v707_v33, %v707_v33  ;;  %v2304_v28 = vld [vmem:[%s10159_s5 + $0x348] sm:$0xff]  ;;  %v6690_v34 = vcombine.low %v2281_v19, %v2283_v6  ;;  %v8673_v33 = vld [vmem:[%s10159_s5 + $0x3d8] sm:$0xff] }
 0x1d5   :  { %v1326_v53 = vpop.permute.xlu1 %1325  ;;  %v1324_v3 = vpop.permute.xlu0 %1323  ;;  %v1223_v47 = vsel %vm7994_vm3, 0, %v1219_v29  ;;  %v6712_v35 = vcombine.low %v2302_v27, %v2304_v28 }
 0x1d6   :  { %v1454_v49 = vsel %vm1341_vm4, %v6998_v37, %v1326_v53  ;;  %v1451_v7 = vsel %vm1341_vm4, %v6997_v31, %v1324_v3  ;;  %v2308_v31 = vld [vmem:[%s10159_s5 + $0x3c8] sm:$0xff]  ;;  %v2285_v3 = vld [vmem:[%s10159_s5 + $0x100] sm:$0xff] }
 0x1d7   :  { %v6632_v57 = vcombine.low %v1451_v7, %v1454_v49  ;;  %v6713_v49 = vcombine.high %v2302_v27, %v2304_v28  ;;  %v2298_v7 = vld [vmem:[%s10159_s5 + $0x288] sm:$0xff] }
 0x1d8   :  { %v6708_v15 = vcombine.low %v2298_v7, %v2300_v62  ;;  %v6709_v56 = vcombine.high %v2298_v7, %v2300_v62 }
 0x1d9   :  { %2108 = vmatmul.mubr.bf16.gmra.mxu1 %v6620_v58  ;;  %v1330_v48 = vpop.permute.xlu1 %1329  ;;  %v1328_v40 = vpop.permute.xlu0 %1327  ;;  %v2287_v58 = vld [vmem:[%s10159_s5 + $0x140] sm:$0xff] }
 0x1da   :  { %2115 = vmatprep.mubr.bf16.mxu1 %v6625_v10  ;;  %v1460_v12 = vsel %vm1341_vm4, %v7000_v30, %v1330_v48  ;;  %v6694_v10 = vcombine.low %v2285_v3, %v2287_v58  ;;  %v2296_v48 = vld [vmem:[%s10159_s5 + $0x248] sm:$0xff] }
 0x1db   :  { %v6705_v29 = vcombine.high %v2294_v25, %v2296_v48 }
 0x1dd   :  { %v1340_v50 = vpop.permute.xlu0 %1339  ;;  %v1332_v0 = vpop.permute.xlu1 %1331 }
 0x1de   :  { %v1472_v51 = vsel %vm1341_vm4, %v1223_v47, %v1340_v50  ;;  %v1463_v23 = vsel %vm1341_vm4, %v7001_v41, %v1332_v0  ;;  %v6691_v47 = vcombine.high %v2281_v19, %v2283_v6  ;;  %v2292_v50 = vld [vmem:[%s10159_s5 + $0x1c8] sm:$0xff] }
 0x1df   :  { %v6641_v38 = vcombine.low %v8480_v39, %v1472_v51  ;;  %v6628_v39 = vcombine.low %v1445_v18, %v1448_v2  ;;  %v6700_v51 = vcombine.low %v2290_v55, %v2292_v50  ;;  %v6701_v0 = vcombine.high %v2290_v55, %v2292_v50  ;;  %v2288_v41 = vld [vmem:[%s10159_s5 + $0x148] sm:$0xff]  ;;  %v2277_v2 = vld [vmem:[%s10159_s5] sm:$0xff] }
 0x1e0   :  { %v2279_v18 = vld [vmem:[%s10159_s5 + $0x40] sm:$0xff] }
 0x1e1   :  { %2116 = vmatmul.mubr.bf16.gmra.mxu1 %v6624_v26  ;;  %v1334_v52 = vpop.permute.xlu0 %1333  ;;  %v6707_v26 = vcombine.high %v2297_v36, %v2299_v4  ;;  %v6687_v36 = vcombine.high %v2277_v2, %v2279_v18  ;;  %v2280_v4 = vld [vmem:[%s10159_s5 + $0x48] sm:$0xff] }
 0x1e2   :  { %2123 = vmatprep.mubr.bf16.mxu1 %v6629_v63  ;;  %v1466_v32 = vsel %vm1341_vm4, %v7002_v54, %v1334_v52  ;;  %v560_v63 = vadd.f32 %v8460_v24, %v10182_v21  ;;  %v2293_v24 = vld [vmem:[%s10159_s5 + $0x200] sm:$0xff]  ;;  %v2284_v52 = vld [vmem:[%s10159_s5 + $0xc8] sm:$0xff] }
 0x1e3   :  { %v6640_v45 = vcombine.low %v1463_v23, %v1466_v32  ;;  %2495 = vmatprep.subr.bf16.mxu1 %v6707_v26  ;;  %v6702_v60 = vcombine.low %v2293_v24, %v2295_v5  ;;  %v6693_v23 = vcombine.high %v2282_v44, %v2284_v52  ;;  %v6692_v32 = vcombine.low %v2282_v44, %v2284_v52 }
 0x1e4   :  { %2496 = vmatpush1.bf16.msra.mxu1 %v6706_v8  ;;  %v706_v9 = vmax.f32 %v560_v63, 0.0  ;;  %v8664_v8 = vld [vmem:[%s10159_s5 + $0x398] sm:$0xff]  ;;  %v6746_v26 = vcombine.low %v8654_v42, %v8659_v20 }
 0x1e5   :  { %v6749_v30 = vcombine.high %v8664_v8, %v8673_v33 }
 0x1e6   :  { %v6999_v43 = vpack.c.bf16 %v706_v9, %v706_v9  ;;  %v6747_v9 = vcombine.high %v8654_v42, %v8659_v20  ;;  %v3038_v20 = vld [vmem:[%s10159_s5 + $0x210] sm:$0xff] }
 0x1e8   :  { %v1457_v59 = vsel %vm1341_vm4, %v6999_v43, %v1328_v40  ;;  %v6704_v40 = vcombine.low %v2294_v25, %v2296_v48  ;;  %v6748_v43 = vcombine.low %v8664_v8, %v8673_v33 }
 0x1e9   :  { %2124 = vmatmul.mubr.bf16.gmra.mxu1 %v6628_v39  ;;  %v6636_v37 = vcombine.low %v1457_v59, %v1460_v12  ;;  %v6686_v39 = vcombine.low %v2277_v2, %v2279_v18 }
 0x1ea   :  { %2131 = vmatprep.mubr.bf16.mxu1 %v6633_v17  ;;  %v6703_v17 = vcombine.high %v2293_v24, %v2295_v5 }
 0x1ec   :  { %2497 = vmatprep.subr.bf16.mxu1 %v6703_v17 }
 0x1ed   :  { %2498 = vmatpush1.bf16.msra.mxu1 %v6702_v60 }
 0x1ee   :  { %2499 = vmatprep.subr.bf16.mxu1 %v6699_v16 }
 0x1f1   :  { %2132 = vmatmul.mubr.bf16.gmra.mxu1 %v6632_v57  ;;  %v6695_v57 = vcombine.high %v2285_v3, %v2287_v58 }
 0x1f2   :  { %2139 = vmatprep.mubr.bf16.mxu1 %v6637_v14  ;;  %v2306_v14 = vld [vmem:[%s10159_s5 + $0x388] sm:$0xff]  ;;  %2500 = vmatpush1.bf16.msra.mxu1 %v6698_v22 }
 0x1f3   :  { %v6716_v61 = vcombine.low %v2306_v14, %v2308_v31  ;;  %v6717_v53 = vcombine.high %v2306_v14, %v2308_v31  ;;  %2501 = vmatprep.subr.bf16.mxu1 %v6695_v57 }
 0x1f5   :  { %2604 = vmatprep.subr.bf16.mxu0 %v6717_v53 }
 0x1f6   :  { %2605 = vmatpush1.bf16.msra.mxu0 %v6716_v61  ;;  %2502 = vmatpush1.bf16.msra.mxu1 %v6694_v10 }
 0x1f7   :  { %2606 = vmatprep.subr.bf16.mxu0 %v6713_v49  ;;  %2503 = vmatprep.subr.bf16.mxu1 %v6691_v47 }
 0x1f9   :  { %2140 = vmatmul.mubr.bf16.gmra.mxu1 %v6636_v37 }
 0x1fa   :  { %2147 = vmatprep.mubr.bf16.mxu1 %v6641_v38  ;;  %2607 = vmatpush1.bf16.msra.mxu0 %v6712_v35  ;;  %v2286_v38 = vld [vmem:[%s10159_s5 + $0x108] sm:$0xff] }
 0x1fb   :  { %2608 = vmatprep.subr.bf16.mxu0 %v6709_v56  ;;  %2504 = vmatpush1.bf16.msra.mxu1 %v6690_v34  ;;  %v6697_v54 = vcombine.high %v2286_v38, %v2288_v41  ;;  %v6696_v46 = vcombine.low %v2286_v38, %v2288_v41  ;;  %v7435_v38 = vpop.f32.mrf.mxu0 }
 0x1fc   :  { %2505 = vmatprep.subr.bf16.mxu1 %v6687_v36 }
 0x1fd   :  { %v2190_v44 = vpop.f32.mrf.mxu0 }
 0x1fe   :  { %2609 = vmatpush1.bf16.msra.mxu0 %v6708_v15 }
 0x1ff   :  { %2610 = vmatprep.subr.bf16.mxu0 %v6705_v29  ;;  %2506 = vmatpush1.bf16.msra.mxu1 %v6686_v39  ;;  %v7436_v39 = vpop.f32.mrf.mxu0 }
 0x200   :  { %3236 = vmatprep.subr.bf16.mxu1 %v6747_v9 }
 0x201   :  { %2148 = vmatmul.mubr.bf16.gmra.mxu1 %v6640_v45  ;;  %v2278_v45 = vld [vmem:[%s10159_s5 + $0x8] sm:$0xff] }
 0x202   :  { %2523 = vmatprep.mubr.bf16.mxu1 %v10181_v13  ;;  %2611 = vmatpush1.bf16.msra.mxu0 %v6704_v40  ;;  %v6688_v21 = vcombine.low %v2278_v45, %v2280_v4  ;;  %v6689_v63 = vcombine.high %v2278_v45, %v2280_v4 }
 0x203   :  { %2612 = vmatprep.subr.bf16.mxu0 %v6701_v0 }
 0x206   :  { %2613 = vmatpush1.bf16.msra.mxu0 %v6700_v51 }
 0x207   :  { %2614 = vmatprep.subr.bf16.mxu0 %v6697_v54  ;;  %v8718_v54 = vld [vmem:[%s10158_s4] ss:$0 sm:$0xff] }
 0x20a   :  { %2615 = vmatpush1.bf16.msra.mxu0 %v6696_v46 }
 0x20b   :  { %2616 = vmatprep.subr.bf16.mxu0 %v6693_v23 }
 0x20e   :  { %2617 = vmatpush1.bf16.msra.mxu0 %v6692_v32 }
 0x20f   :  { %2618 = vmatprep.subr.bf16.mxu0 %v6689_v63 }
 0x212   :  { %2619 = vmatpush1.bf16.msra.mxu0 %v6688_v21 }
 0x213   :  { %3349 = vmatprep.subr.bf16.mxu0 %v6749_v30 }
 0x229   :  { %v7057_v24 = vpop.f32.mrf.mxu1 }
 0x22b   :  { %v7058_v5 = vpop.f32.mrf.mxu1 }
 0x22c   :  { %v7059_v60 = vadd.f32 %v7058_v5, %v7057_v24  ;;  %v2193_v24 = vpop.f32.mrf.mxu0 }
 0x22d   :  { %v7060_v17 = vpop.f32.mrf.mxu1 }
 0x22e   :  { %v1997_v23 = vadd.f32 %v7059_v60, %v8718_v54 }
 0x22f   :  { %v7061_v12 = vpop.f32.mrf.mxu1 }
 0x230   :  { %v7062_v32 = vadd.f32 %v7061_v12, %v7060_v17  ;;  %v3046_v17 = vld [vmem:[%s10159_s5 + $0x310] sm:$0xff] }
 0x231   :  { %v7063_v59 = vpop.f32.mrf.mxu1 }
 0x232   :  { %v2000_v4 = vadd.f32 %v7062_v32, %v8718_v54 }
 0x233   :  { %v7064_v37 = vpop.f32.mrf.mxu1 }
 0x234   :  { %v7065_v1 = vadd.f32 %v7064_v37, %v7063_v59 }
 0x235   :  { %v7066_v11 = vpop.f32.mrf.mxu1 }
 0x236   :  { %v2005_v59 = vadd.f32 %v7065_v1, %v8718_v54  ;;  %v3049_v1 = vld [vmem:[%s10159_s5 + $0x358] sm:$0xff] }
 0x237   :  { %v7067_v14 = vpop.f32.mrf.mxu1 }
 0x238   :  { %v7068_v37 = vadd.f32 %v7067_v14, %v7066_v11  ;;  %v8735_v11 = vpop.f32.mrf.mxu0 }
 0x239   :  { %v7069_v22 = vpop.f32.mrf.mxu1 }
 0x23b   :  { %v7070_v16 = vpop.f32.mrf.mxu1 }
 0x23c   :  { %v8679_v31 = vadd.f32 %v7070_v16, %v7069_v22 }
 0x23d   :  { %v8681_v61 = vpop.f32.mrf.mxu1 }
 0x23f   :  { %v8683_v53 = vpop.f32.mrf.mxu1 }
 0x241   :  { %v7075_v27 = vpop.f32.mrf.mxu1 }
 0x243   :  { %v7076_v28 = vpop.f32.mrf.mxu1 }
 0x244   :  { %v8685_v35 = vadd.f32 %v7076_v28, %v7075_v27 }
 0x245   :  { %v8687_v49 = vpop.f32.mrf.mxu1 }
 0x247   :  { %v8689_v3 = vpop.f32.mrf.mxu1 }
 0x269   :  { %v7081_v58 = vpop.f32.mrf.mxu1 }
 0x26b   :  { %v7082_v7 = vpop.f32.mrf.mxu1 }
 0x26c   :  { %v8691_v10 = vadd.f32 %v7082_v7, %v7081_v58  ;;  %v3048_v58 = vld [vmem:[%s10159_s5 + $0x350] sm:$0xff]  ;;  %v3047_v7 = vld [vmem:[%s10159_s5 + $0x318] sm:$0xff] }
 0x26d   :  { %v8693_v57 = vpop.f32.mrf.mxu1  ;;  %v6745_v32 = vcombine.high %v3047_v7, %v3049_v1 }
 0x26f   :  { %v8695_v62 = vpop.f32.mrf.mxu1 }
 0x271   :  { %v7087_v15 = vpop.f32.mrf.mxu1 }
 0x273   :  { %v7088_v56 = vpop.f32.mrf.mxu1 }
 0x274   :  { %v8697_v25 = vadd.f32 %v7088_v56, %v7087_v15  ;;  %v8740_v15 = vld [vmem:[%s10159_s5 + $0x290] sm:$0xff]  ;;  %v2008_v56 = vadd.f32 %v7068_v37, %v8718_v54 }
 0x275   :  { %v8699_v48 = vpop.f32.mrf.mxu1 }
 0x277   :  { %v8701_v40 = vpop.f32.mrf.mxu1 }
 0x279   :  { %v7093_v29 = vpop.f32.mrf.mxu1 }
 0x27b   :  { %v7094_v19 = vpop.f32.mrf.mxu1 }
 0x27c   :  { %v8703_v6 = vadd.f32 %v7094_v19, %v7093_v29 }
 0x27d   :  { %v8705_v55 = vpop.f32.mrf.mxu1 }
 0x27f   :  { %v8707_v34 = vpop.f32.mrf.mxu1 }
 0x281   :  { %v7099_v47 = vpop.f32.mrf.mxu1 }
 0x283   :  { %v7100_v50 = vpop.f32.mrf.mxu1 }
 0x284   :  { %v8709_v51 = vadd.f32 %v7100_v50, %v7099_v47  ;;  %v8748_v47 = vld [vmem:[%s10159_s5 + $0x2d0] sm:$0xff]  ;;  %v8753_v50 = vld [vmem:[%s10159_s5 + $0x298] sm:$0xff] }
 0x285   :  { %v8711_v0 = vpop.f32.mrf.mxu1 }
 0x287   :  { %v8713_v41 = vpop.f32.mrf.mxu1 }
 0x289   :  { %v7121_v46 = vpop.f32.mrf.mxu1 }
 0x28b   :  { %v7122_v52 = vpop.f32.mrf.mxu1 }
 0x28c   :  { %v7123_v2 = vadd.f32 %v7122_v52, %v7121_v46  ;;  %v8758_v46 = vld [vmem:[%s10159_s5 + $0x2d8] sm:$0xff]  ;;  %v6742_v52 = vcombine.low %v3046_v17, %v3048_v58 }
 0x28d   :  { %v7124_v18 = vpop.f32.mrf.mxu1 }
 0x28e   :  { %v2094_v45 = vadd.f32 %v7123_v2, %v1997_v23  ;;  %v6743_v23 = vcombine.high %v3046_v17, %v3048_v58 }
 0x28f   :  { %v7125_v36 = vpop.f32.mrf.mxu1 }
 0x290   :  { %v7126_v21 = vadd.f32 %v7125_v36, %v7124_v18  ;;  %v2191_v9 = vadd.f32 %v2190_v44, %v2094_v45  ;;  %v6744_v45 = vcombine.low %v3047_v7, %v3049_v1  ;;  %v2206_v36 = vpop.f32.mrf.mxu0  ;;  %v3036_v7 = vld [vmem:[%s10159_s5 + $0x1d0] sm:$0xff]  ;;  %v3035_v1 = vld [vmem:[%s10159_s5 + $0x198] sm:$0xff] }
 0x291   :  { %v7127_v63 = vpop.f32.mrf.mxu1 }
 0x292   :  { %v2097_v30 = vadd.f32 %v7126_v21, %v2000_v4  ;;  %v2253_v12 = vmax.f32 %v2191_v9, 0.0  ;;  %v2013_v4 = vadd.f32 %v8679_v31, %v8718_v54  ;;  %v7074_v9 = vadd.f32 %v8683_v53, %v8681_v61  ;;  %v3039_v61 = vld [vmem:[%s10159_s5 + $0x218] sm:$0xff] }
 0x293   :  { %v7128_v5 = vpop.f32.mrf.mxu1  ;;  %v3041_v53 = vld [vmem:[%s10159_s5 + $0x258] sm:$0xff] }
 0x294   :  { %v2194_v22 = vadd.f32 %v2193_v24, %v2097_v30  ;;  %v7129_v16 = vadd.f32 %v7128_v5, %v7127_v63  ;;  %v6741_v63 = vcombine.high %v8753_v50, %v8758_v46  ;;  %v6738_v5 = vcombine.low %v8740_v15, %v8748_v47 }
 0x295   :  { %v7130_v60 = vpop.f32.mrf.mxu1  ;;  %v2016_v37 = vadd.f32 %v7074_v9, %v8718_v54 }
 0x296   :  { %v2254_v27 = vmax.f32 %v2194_v22, 0.0  ;;  %v2102_v28 = vadd.f32 %v7129_v16, %v2005_v59  ;;  %v6740_v59 = vcombine.low %v8753_v50, %v8758_v46  ;;  %v6736_v50 = vcombine.low %v3039_v61, %v3041_v53 }
 0x297   :  { %v7131_v14 = vpop.f32.mrf.mxu1  ;;  %v7080_v46 = vadd.f32 %v8689_v3, %v8687_v49  ;;  %v3032_v49 = vld [vmem:[%s10159_s5 + $0x150] sm:$0xff]  ;;  %v3031_v3 = vld [vmem:[%s10159_s5 + $0x118] sm:$0xff] }
 0x298   :  { %v8743_v29 = vpack.c.bf16 %v2254_v27, %v2253_v12  ;;  %v7132_v19 = vadd.f32 %v7131_v14, %v7130_v60  ;;  %v2199_v2 = vadd.f32 %v7435_v38, %v2102_v28  ;;  %v6739_v38 = vcombine.high %v8740_v15, %v8748_v47  ;;  %v8802_v27 = vld [vmem:[%s10159_s5 + $0x190] sm:$0xff]  ;;  %v3037_v14 = vld [vmem:[%s10159_s5 + $0x1d8] sm:$0xff] }
 0x299   :  { %v7133_v44 = vpop.f32.mrf.mxu1  ;;  %v6737_v12 = vcombine.high %v3039_v61, %v3041_v53  ;;  %v6732_v9 = vcombine.low %v3035_v1, %v3037_v14  ;;  %v3028_v53 = vld [vmem:[%s10159_s5 + $0xd0] sm:$0xff] }
 0x29a   :  { %v2105_v18 = vadd.f32 %v7132_v19, %v2008_v56  ;;  %2524 = vmatmul.mubr.bf16.vlgmr.msra.gmra.mxu1 %v8743_v29  ;;  %2637 = vmatmul.mubr.bf16.vlgmr.msra.gmra.mxu0 %v8743_v29  ;;  %v2255_v8 = vmax.f32 %v2199_v2, 0.0  ;;  %v2021_v56 = vadd.f32 %v8685_v35, %v8718_v54  ;;  %v6733_v35 = vcombine.high %v3035_v1, %v3037_v14  ;;  %v3030_v2 = vld [vmem:[%s10159_s5 + $0x110] sm:$0xff] }
 0x29b   :  { %3237 = vmatpush1.bf16.msra.mxu1 %v6746_v26  ;;  %3350 = vmatpush1.bf16.msra.mxu0 %v6748_v43  ;;  %v7134_v21 = vpop.f32.mrf.mxu1  ;;  %v3040_v43 = vld [vmem:[%s10159_s5 + $0x250] sm:$0xff] }
 0x29c   :  { %v2202_v30 = vadd.f32 %v7436_v39, %v2105_v18  ;;  %v7135_v31 = vadd.f32 %v7134_v21, %v7133_v44  ;;  %2533 = vmatprep.mubr.bf16.mxu1 %v10181_v13  ;;  %2646 = vmatprep.mubr.bf16.mxu0 %v10181_v13  ;;  %v8790_v39 = vpop.f32.mrf.mxu0  ;;  %v6735_v17 = vcombine.high %v3038_v20, %v3040_v43 }
 0x29d   :  { %v7136_v42 = vpop.f32.mrf.mxu1  ;;  %3238 = vmatprep.subr.bf16.mxu1 %v6743_v23  ;;  %3351 = vmatprep.subr.bf16.mxu0 %v6745_v32  ;;  %v6734_v47 = vcombine.low %v3038_v20, %v3040_v43  ;;  %v6731_v32 = vcombine.high %v8802_v27, %v3036_v7 }
 0x29e   :  { %v2256_v26 = vmax.f32 %v2202_v30, 0.0  ;;  %v2110_v33 = vadd.f32 %v7135_v31, %v2013_v4  ;;  %v2209_v15 = vpop.f32.mrf.mxu0  ;;  %v3033_v4 = vld [vmem:[%s10159_s5 + $0x158] sm:$0xff]  ;;  %v2024_v30 = vadd.f32 %v7080_v46, %v8718_v54 }
 0x29f   :  { %v7137_v24 = vpop.f32.mrf.mxu1  ;;  %3239 = vmatpush1.bf16.msra.mxu1 %v6742_v52  ;;  %3352 = vmatpush1.bf16.msra.mxu0 %v6744_v45 }
 0x2a0   :  { %v8797_v22 = vpack.c.bf16 %v2256_v26, %v2255_v8  ;;  %v7138_v16 = vadd.f32 %v7137_v24, %v7136_v42  ;;  %3240 = vmatprep.subr.bf16.mxu1 %v6739_v38  ;;  %3353 = vmatprep.subr.bf16.mxu0 %v6741_v63  ;;  %v2207_v28 = vadd.f32 %v2206_v36, %v2110_v33  ;;  %v8834_v21 = vpop.f32.mrf.mxu0  ;;  %v3026_v33 = vld [vmem:[%s10159_s5 + $0x90] sm:$0xff]  ;;  %v3027_v24 = vld [vmem:[%s10159_s5 + $0x98] sm:$0xff] }
 0x2a1   :  { %v7139_v60 = vpop.f32.mrf.mxu1  ;;  %v6730_v63 = vcombine.low %v8802_v27, %v3036_v7  ;;  %v6727_v8 = vcombine.high %v3030_v2, %v3032_v49  ;;  %v6729_v26 = vcombine.high %v3031_v3, %v3033_v4  ;;  %v3022_v7 = vld [vmem:[%s10159_s5 + $0x10] sm:$0xff] }
 0x2a2   :  { %v2113_v58 = vadd.f32 %v7138_v16, %v2016_v37  ;;  %2534 = vmatmul.mubr.bf16.gmra.mxu1 %v8797_v22  ;;  %2647 = vmatmul.mubr.bf16.gmra.mxu0 %v8797_v22  ;;  %v2257_v18 = vmax.f32 %v2207_v28, 0.0  ;;  %v6726_v16 = vcombine.low %v3030_v2, %v3032_v49 }
 0x2a3   :  { %v7140_v19 = vpop.f32.mrf.mxu1  ;;  %2543 = vmatprep.mubr.bf16.mxu1 %v10181_v13  ;;  %2656 = vmatprep.mubr.bf16.mxu0 %v10181_v13 }
 0x2a4   :  { %v2210_v44 = vadd.f32 %v2209_v15, %v2113_v58  ;;  %v7141_v52 = vadd.f32 %v7140_v19, %v7139_v60  ;;  %3241 = vmatpush1.bf16.msra.mxu1 %v6738_v5  ;;  %3354 = vmatpush1.bf16.msra.mxu0 %v6740_v59  ;;  %v3029_v5 = vld [vmem:[%s10159_s5 + $0xd8] sm:$0xff]  ;;  %v2222_v59 = vpop.f32.mrf.mxu0  ;;  %v6728_v60 = vcombine.low %v3031_v3, %v3033_v4 }
 0x2a5   :  { %v7142_v23 = vpop.f32.mrf.mxu1  ;;  %3242 = vmatprep.subr.bf16.mxu1 %v6735_v17  ;;  %3355 = vmatprep.subr.bf16.mxu0 %v6737_v12  ;;  %v7086_v17 = vadd.f32 %v8695_v62, %v8693_v57  ;;  %v6723_v58 = vcombine.high %v3026_v33, %v3028_v53  ;;  %v3024_v57 = vld [vmem:[%s10159_s5 + $0x50] sm:$0xff]  ;;  %v3023_v62 = vld [vmem:[%s10159_s5 + $0x18] sm:$0xff] }
 0x2a6   :  { %v2258_v45 = vmax.f32 %v2210_v44, 0.0  ;;  %v2118_v36 = vadd.f32 %v7141_v52, %v2021_v56  ;;  %v7444_v56 = vpop.f32.mrf.mxu0  ;;  %v6718_v3 = vcombine.low %v3022_v7, %v3024_v57 }
 0x2a7   :  { %v7143_v38 = vpop.f32.mrf.mxu1  ;;  %v2032_v46 = vadd.f32 %v7086_v17, %v8718_v54 }
 0x2a8   :  { %v8838_v31 = vpack.c.bf16 %v2258_v45, %v2257_v18  ;;  %v7144_v42 = vadd.f32 %v7143_v38, %v7142_v23  ;;  %3243 = vmatpush1.bf16.msra.mxu1 %v6734_v47  ;;  %3356 = vmatpush1.bf16.msra.mxu0 %v6736_v50  ;;  %v2215_v43 = vadd.f32 %v8735_v11, %v2118_v36  ;;  %v2225_v45 = vpop.f32.mrf.mxu0 }
 0x2a9   :  { %v7145_v20 = vpop.f32.mrf.mxu1  ;;  %3244 = vmatprep.subr.bf16.mxu1 %v6731_v32  ;;  %3357 = vmatprep.subr.bf16.mxu0 %v6733_v35  ;;  %v2029_v11 = vadd.f32 %v8691_v10, %v8718_v54  ;;  %v6725_v10 = vcombine.high %v3027_v24, %v3029_v5  ;;  %v6722_v47 = vcombine.low %v3026_v33, %v3028_v53 }
 0x2aa   :  { %v2121_v61 = vadd.f32 %v7144_v42, %v2024_v30  ;;  %2544 = vmatmul.mubr.bf16.gmra.mxu1 %v8838_v31  ;;  %2657 = vmatmul.mubr.bf16.gmra.mxu0 %v8838_v31  ;;  %v2259_v1 = vmax.f32 %v2215_v43, 0.0  ;;  %v6724_v50 = vcombine.low %v3027_v24, %v3029_v5  ;;  %v6719_v32 = vcombine.high %v3022_v7, %v3024_v57 }
 0x2ab   :  { %v7146_v37 = vpop.f32.mrf.mxu1  ;;  %2553 = vmatprep.mubr.bf16.mxu1 %v10181_v13  ;;  %2666 = vmatprep.mubr.bf16.mxu0 %v10181_v13  ;;  %v2037_v36 = vadd.f32 %v8697_v25, %v8718_v54  ;;  %v7092_v38 = vadd.f32 %v8701_v40, %v8699_v48  ;;  %v7104_v57 = vadd.f32 %v8713_v41, %v8711_v0 }
 0x2ac   :  { %v2218_v12 = vadd.f32 %v8790_v39, %v2121_v61  ;;  %v7147_v27 = vadd.f32 %v7146_v37, %v7145_v20  ;;  %3245 = vmatpush1.bf16.msra.mxu1 %v6730_v63  ;;  %3358 = vmatpush1.bf16.msra.mxu0 %v6732_v9  ;;  %v3025_v39 = vld [vmem:[%s10159_s5 + $0x58] sm:$0xff] }
 0x2ad   :  { %v7148_v28 = vpop.f32.mrf.mxu1  ;;  %3246 = vmatprep.subr.bf16.mxu1 %v6727_v8  ;;  %3359 = vmatprep.subr.bf16.mxu0 %v6729_v26  ;;  %v6721_v35 = vcombine.high %v3023_v62, %v3025_v39  ;;  %v6720_v4 = vcombine.low %v3023_v62, %v3025_v39  ;;  %v7447_v8 = vpop.f32.mrf.mxu0  ;;  %v2040_v33 = vadd.f32 %v7092_v38, %v8718_v54  ;;  %v7528_v38 = vld [vmem:[%s10161_s7 + $0x170] sm:$0xff]  }
 0x2ae   :  { %v2260_v14 = vmax.f32 %v2218_v12, 0.0  ;;  %v2126_v15 = vadd.f32 %v7147_v27, %v2029_v11  ;;  %v7098_v11 = vadd.f32 %v8707_v34, %v8705_v55  ;;  %v2053_v34 = vadd.f32 %v8709_v51, %v8718_v54 }
 0x2af   :  { %v7149_v19 = vpop.f32.mrf.mxu1  ;;  %v2238_v24 = vpop.f32.mrf.mxu0 }
 0x2b0   :  { %v8875_v44 = vpack.c.bf16 %v2260_v14, %v2259_v1  ;;  %v7150_v52 = vadd.f32 %v7149_v19, %v7148_v28  ;;  %3247 = vmatpush1.bf16.msra.mxu1 %v6726_v16  ;;  %3360 = vmatpush1.bf16.msra.mxu0 %v6728_v60  ;;  %v2223_v2 = vadd.f32 %v2222_v59, %v2126_v15 }
 0x2b1   :  { %v7151_v23 = vpop.f32.mrf.mxu1  ;;  %3248 = vmatprep.subr.bf16.mxu1 %v6723_v58  ;;  %3361 = vmatprep.subr.bf16.mxu0 %v6725_v10  ;;  %v2045_v59 = vadd.f32 %v8703_v6, %v8718_v54  ;;  %v7448_v27 = vpop.f32.mrf.mxu0  ;;  %v2048_v58 = vadd.f32 %v7098_v11, %v8718_v54  ;;  %v7538_v11 = vld [vmem:[%s10161_s7 + $0x120] sm:$0xff]  }
 0x2b2   :  { %v2129_v18 = vadd.f32 %v7150_v52, %v2032_v46  ;;  %2554 = vmatmul.mubr.bf16.gmra.mxu1 %v8875_v44  ;;  %2667 = vmatmul.mubr.bf16.gmra.mxu0 %v8875_v44  ;;  %v2261_v42 = vmax.f32 %v2223_v2, 0.0  ;;  %v2056_v52 = vadd.f32 %v7104_v57, %v8718_v54  ;;  %v7524_v54 = vld [vmem:[%s10161_s7 + $0x178] sm:$0xff]  }
 0x2b3   :  { %v7152_v49 = vpop.f32.mrf.mxu1  ;;  %2563 = vmatprep.mubr.bf16.mxu1 %v10181_v13  ;;  %2676 = vmatprep.mubr.bf16.mxu0 %v10181_v13  ;;  %v2241_v6 = vpop.f32.mrf.mxu0 }
 0x2b4   :  { %v2226_v63 = vadd.f32 %v2225_v45, %v2129_v18  ;;  %v7153_v9 = vadd.f32 %v7152_v49, %v7151_v23  ;;  %3249 = vmatpush1.bf16.msra.mxu1 %v6722_v47  ;;  %3362 = vmatpush1.bf16.msra.mxu0 %v6724_v50  ;;  %v7525_v45 = vld [vmem:[%s10161_s7 + $0x1f8] sm:$0xff]  }
 0x2b5   :  { %v7154_v30 = vpop.f32.mrf.mxu1  ;;  %3250 = vmatprep.subr.bf16.mxu1 %v6719_v32  ;;  %3363 = vmatprep.subr.bf16.mxu0 %v6721_v35  ;;  %v7527_v49 = vld [vmem:[%s10161_s7 + $0x1b8] sm:$0xff]  }
 0x2b6   :  { %v2262_v20 = vmax.f32 %v2226_v63, 0.0  ;;  %v2134_v25 = vadd.f32 %v7153_v9, %v2037_v36  ;;  %v7526_v36 = vld [vmem:[%s10161_s7 + $0x138] sm:$0xff]   ;;  %v7529_v63 = vld [vmem:[%s10161_s7 + $0x1f0] sm:$0xff]  }
 0x2b7   :  { %v7155_v26 = vpop.f32.mrf.mxu1  ;;  %v7530_v9 = vld [vmem:[%s10161_s7 + $0x130] sm:$0xff]  }
 0x2b8   :  { %v8886_v43 = vpack.c.bf16 %v2262_v20, %v2261_v42  ;;  %v7156_v61 = vadd.f32 %v7155_v26, %v7154_v30  ;;  %3251 = vmatpush1.bf16.msra.mxu1 %v6718_v3  ;;  %3364 = vmatpush1.bf16.msra.mxu0 %v6720_v4  ;;  %v2231_v40 = vadd.f32 %v8834_v21, %v2134_v25  ;;  %v2311_v3 = vlaneseq  ;;  %v7531_v30 = vld [vmem:[%s10161_s7 + $0x1b0] sm:$0xff]   ;;  %v7532_v42 = vld [vmem:[%s10161_s7 + $0x168] sm:$0xff]   ;;  %v2309_v26 = vld [vmem:[%s10160_s6] sm:$0xf] }
 0x2b9   :  { %v7157_v48 = vpop.f32.mrf.mxu1  ;;  %7181 = vmatprep.subr.bf16.mxu1 %v7524_v54  ;;  %7203 = vmatprep.subr.bf16.mxu0 %v7525_v45  ;;  %v7533_v20 = vld [vmem:[%s10161_s7 + $0x1e8] sm:$0xff]  }
 0x2ba   :  { %v2137_v53 = vadd.f32 %v7156_v61, %v2040_v33  ;;  %2564 = vmatmul.mubr.bf16.gmra.mxu1 %v8886_v43  ;;  %2677 = vmatmul.mubr.bf16.gmra.mxu0 %v8886_v43  ;;  %v2263_v60 = vmax.f32 %v2231_v40, 0.0  ;;  %v8963_v4 = vshrl.u32 %v2311_v3, 7  ;;  %v7534_v33 = vld [vmem:[%s10161_s7 + $0x128] sm:$0xff]   ;;  %v7537_v40 = vld [vmem:[%s10161_s7 + $0x1e0] sm:$0xff]  }
 0x2bb   :  { %v7158_v5 = vpop.f32.mrf.mxu1  ;;  %2573 = vmatprep.mubr.bf16.mxu1 %v10181_v13  ;;  %2686 = vmatprep.mubr.bf16.mxu0 %v10181_v13  ;;  %v7535_v61 = vld [vmem:[%s10161_s7 + $0x1a8] sm:$0xff]  }
 0x2bc   :  { %v2234_v37 = vadd.f32 %v7444_v56, %v2137_v53  ;;  %v7159_v16 = vadd.f32 %v7158_v5, %v7157_v48  ;;  %v8984_v25 = vsub.s32 0, %v8963_v4  ;;  %v7536_v48 = vld [vmem:[%s10161_s7 + $0x160] sm:$0xff]   ;;  %v9011_v5 = vsub.s32 1, %v8963_v4 }
 0x2bd   :  { %v7160_v21 = vpop.f32.mrf.mxu1 }
 0x2be   :  { %v2264_v17 = vmax.f32 %v2234_v37, 0.0  ;;  %v2142_v12 = vadd.f32 %v7159_v16, %v2045_v59  ;;  %10185 = vst [vmem:[#allocation9_spill] sm:$0xff] %v8984_v25  ;;  %v9005_v53 = vrot.slane %v2309_v26, %v8984_v25  ;;  %10187 = vst [vmem:[#allocation11_spill] sm:$0xff] %v9011_v5  ;;  %v9014_v59 = vsub.s32 3, %v8963_v4  ;;  %v7539_v37 = vld [vmem:[%s10161_s7 + $0x1a0] sm:$0xff]  }
 0x2bf   :  { %v7161_v28 = vpop.f32.mrf.mxu1 }
 0x2c0   :  { %v8898_v10 = vpack.c.bf16 %v2264_v17, %v2263_v60  ;;  %v7162_v7 = vadd.f32 %v7161_v28, %v7160_v21  ;;  %v2239_v14 = vadd.f32 %v2238_v24, %v2142_v12  ;;  %10188 = vst [vmem:[#allocation12_spill] sm:$0xff] %v9014_v59  ;;  %v9025_v12 = vrot.slane %v2309_v26, %v9011_v5 }
 0x2c1   :  { %v7163_v1 = vpop.f32.mrf.mxu1  ;;  %v9028_v28 = vrot.slane %v2309_v26, %v9014_v59 }
 0x2c2   :  { %v2145_v15 = vadd.f32 %v7162_v7, %v2048_v58  ;;  %2574 = vmatmul.mubr.bf16.gmra.mxu1 %v8898_v10  ;;  %2687 = vmatmul.mubr.bf16.gmra.mxu0 %v8898_v10  ;;  %v2265_v19 = vmax.f32 %v2239_v14, 0.0  ;;  %v7540_v7 = vld [vmem:[%s10161_s7 + $0x158] sm:$0xff]  }
 0x2c3   :  { %v7164_v55 = vpop.f32.mrf.mxu1  ;;  %2583 = vmatprep.mubr.bf16.mxu1 %v10181_v13  ;;  %2696 = vmatprep.mubr.bf16.mxu0 %v10181_v13  ;;  %v7542_v14 = vld [vmem:[%s10161_s7 + $0x118] sm:$0xff]  }
 0x2c4   :  { %v2242_v62 = vadd.f32 %v2241_v6, %v2145_v15  ;;  %v7165_v39 = vadd.f32 %v7164_v55, %v7163_v1  ;;  %v7541_v1 = vld [vmem:[%s10161_s7 + $0x1d8] sm:$0xff]  }
 0x2c5   :  { %v7166_v56 = vpop.f32.mrf.mxu1  ;;  %v7543_v15 = vld [vmem:[%s10161_s7 + $0x198] sm:$0xff]  }
 0x2c6   :  { %v2266_v47 = vmax.f32 %v2242_v62, 0.0  ;;  %v2150_v50 = vadd.f32 %v7165_v39, %v2053_v34 }
 0x2c7   :  { %v7167_v46 = vpop.f32.mrf.mxu1 }
 0x2c8   :  { %v8909_v23 = vpack.c.bf16 %v2266_v47, %v2265_v19  ;;  %v7168_v32 = vadd.f32 %v7167_v46, %v7166_v56  ;;  %v2247_v35 = vadd.f32 %v7447_v8, %v2150_v50  ;;  %v8987_v8 = vsub.s32 2, %v8963_v4 }
 0x2ca   :  { %v2153_v2 = vadd.f32 %v7168_v32, %v2056_v52  ;;  %2584 = vmatmul.mubr.bf16.gmra.mxu1 %v8909_v23  ;;  %2697 = vmatmul.mubr.bf16.gmra.mxu0 %v8909_v23  ;;  %v2267_v0 = vmax.f32 %v2247_v35, 0.0  ;;  %10186 = vst [vmem:[#allocation10_spill] sm:$0xff] %v8987_v8  ;;  %v9008_v24 = vrot.slane %v2309_v26, %v8987_v8 }
 0x2cb   :  { %2593 = vmatprep.mubr.bf16.mxu1 %v10181_v13  ;;  %2706 = vmatprep.mubr.bf16.mxu0 %v10181_v13 }
 0x2cc   :  { %v2250_v51 = vadd.f32 %v7448_v27, %v2153_v2 }
 0x2ce   :  { %v2268_v41 = vmax.f32 %v2250_v51, 0.0 }
 0x2d0   :  { %v8915_v18 = vpack.c.bf16 %v2268_v41, %v2267_v0 }
 0x2d2   :  { %10184 = vst [vmem:[#allocation8_spill] sm:$0xff] %v8915_v18  ;;  %2594 = vmatmul.mubr.bf16.gmra.mxu1 %v8915_v18  ;;  %2707 = vmatmul.mubr.bf16.gmra.mxu0 %v8915_v18 }
 0x2d3   :  { %3268 = vmatprep.mubr.bf16.mxu1 %v10181_v13  ;;  %3381 = vmatprep.mubr.bf16.mxu0 %v10181_v13 }
 0x2da   :  { %3269 = vmatmul.mubr.bf16.vlgmr.msra.gmra.mxu1 %v8743_v29  ;;  %3382 = vmatmul.mubr.bf16.vlgmr.msra.gmra.mxu0 %v8743_v29 }
 0x2db   :  { %3278 = vmatprep.mubr.bf16.mxu1 %v10181_v13  ;;  %3391 = vmatprep.mubr.bf16.mxu0 %v10181_v13 }
 0x2dc   :  { %7182 = vmatpush3.bf16.msra.mxu1 %v7526_v36  ;;  %7204 = vmatpush3.bf16.msra.mxu0 %v7527_v49 }
 0x2dd   :  { %7183 = vmatprep.subr.bf16.mxu1 %v7528_v38  ;;  %7205 = vmatprep.subr.bf16.mxu0 %v7529_v63 }
 0x2e0   :  { %7184 = vmatpush3.bf16.msra.mxu1 %v7530_v9  ;;  %7206 = vmatpush3.bf16.msra.mxu0 %v7531_v30 }
 0x2e1   :  { %7185 = vmatprep.subr.bf16.mxu1 %v7532_v42  ;;  %7207 = vmatprep.subr.bf16.mxu0 %v7533_v20 }
 0x2e2   :  { %3279 = vmatmul.mubr.bf16.gmra.mxu1 %v8797_v22  ;;  %3392 = vmatmul.mubr.bf16.gmra.mxu0 %v8797_v22 }
 0x2e3   :  { %3288 = vmatprep.mubr.bf16.mxu1 %v10181_v13  ;;  %3401 = vmatprep.mubr.bf16.mxu0 %v10181_v13 }
 0x2e4   :  { %7186 = vmatpush3.bf16.msra.mxu1 %v7534_v33  ;;  %7208 = vmatpush3.bf16.msra.mxu0 %v7535_v61 }
 0x2e5   :  { %7187 = vmatprep.subr.bf16.mxu1 %v7536_v48  ;;  %7209 = vmatprep.subr.bf16.mxu0 %v7537_v40 }
 0x2e8   :  { %7188 = vmatpush3.bf16.msra.mxu1 %v7538_v11  ;;  %7210 = vmatpush3.bf16.msra.mxu0 %v7539_v37 }
 0x2e9   :  { %7189 = vmatprep.subr.bf16.mxu1 %v7540_v7  ;;  %7211 = vmatprep.subr.bf16.mxu0 %v7541_v1 }
 0x2ea   :  { %3289 = vmatmul.mubr.bf16.gmra.mxu1 %v8838_v31  ;;  %3402 = vmatmul.mubr.bf16.gmra.mxu0 %v8838_v31 }
 0x2eb   :  { %3298 = vmatprep.mubr.bf16.mxu1 %v10181_v13  ;;  %3411 = vmatprep.mubr.bf16.mxu0 %v10181_v13 }
 0x2ec   :  { %7190 = vmatpush3.bf16.msra.mxu1 %v7542_v14  ;;  %7212 = vmatpush3.bf16.msra.mxu0 %v7543_v15 }
 0x2f2   :  { %3299 = vmatmul.mubr.bf16.gmra.mxu1 %v8875_v44  ;;  %3412 = vmatmul.mubr.bf16.gmra.mxu0 %v8875_v44 }
 0x2f3   :  { %3308 = vmatprep.mubr.bf16.mxu1 %v10181_v13  ;;  %3421 = vmatprep.mubr.bf16.mxu0 %v10181_v13 }
 0x2fa   :  { %3309 = vmatmul.mubr.bf16.gmra.mxu1 %v8886_v43  ;;  %3422 = vmatmul.mubr.bf16.gmra.mxu0 %v8886_v43 }
 0x2fb   :  { %3318 = vmatprep.mubr.bf16.mxu1 %v10181_v13  ;;  %3431 = vmatprep.mubr.bf16.mxu0 %v10181_v13 }
 0x302   :  { %3319 = vmatmul.mubr.bf16.gmra.mxu1 %v8898_v10  ;;  %3432 = vmatmul.mubr.bf16.gmra.mxu0 %v8898_v10 }
 0x303   :  { %3328 = vmatprep.mubr.bf16.mxu1 %v10181_v13  ;;  %3441 = vmatprep.mubr.bf16.mxu0 %v10181_v13 }
 0x30a   :  { %3329 = vmatmul.mubr.bf16.gmra.mxu1 %v8909_v23  ;;  %3442 = vmatmul.mubr.bf16.gmra.mxu0 %v8909_v23 }
 0x30b   :  { %3338 = vmatprep.mubr.bf16.mxu1 %v10181_v13  ;;  %3451 = vmatprep.mubr.bf16.mxu0 %v10181_v13 }
 0x312   :  { %3339 = vmatmul.mubr.bf16.gmra.mxu1 %v8915_v18  ;;  %3452 = vmatmul.mubr.bf16.gmra.mxu0 %v8915_v18 }
 0x35a   :  { %v2525_v16 = vpop.f32.mrf.mxu1  ;;  %v2638_v21 = vpop.f32.mrf.mxu0 }
 0x35b   :  { %v2526_v60 = vadd.f32 %v2525_v16, %v9005_v53  ;;  %v2639_v17 = vadd.f32 %v2638_v21, %v9008_v24 }
 0x35c   :  { %v2527_v27 = vpop.f32.mrf.mxu1  ;;  %v2640_v58 = vpop.f32.mrf.mxu0 }
 0x35d   :  { %v2717_v62 = vmax.f32 %v2526_v60, 0.0  ;;  %v2719_v39 = vmax.f32 %v2639_v17, 0.0  ;;  %v2528_v56 = vadd.f32 %v2527_v27, %v9025_v12  ;;  %v2641_v19 = vadd.f32 %v2640_v58, %v9028_v28 }
 0x35e   :  { %v2529_v6 = vpop.f32.mrf.mxu1  ;;  %v2642_v55 = vpop.f32.mrf.mxu0 }
 0x35f   :  { %v2530_v34 = vadd.f32 %v2529_v6, %v9005_v53  ;;  %v2643_v57 = vadd.f32 %v2642_v55, %v9008_v24  ;;  %v2718_v36 = vmax.f32 %v2528_v56, 0.0  ;;  %v2720_v49 = vmax.f32 %v2641_v19, 0.0 }
 0x360   :  { %v2531_v47 = vpop.f32.mrf.mxu1  ;;  %v2644_v50 = vpop.f32.mrf.mxu0 }
 0x361   :  { %v2721_v46 = vmax.f32 %v2530_v34, 0.0  ;;  %v2723_v52 = vmax.f32 %v2643_v57, 0.0  ;;  %v2532_v32 = vadd.f32 %v2531_v47, %v9025_v12  ;;  %v2645_v35 = vadd.f32 %v2644_v50, %v9028_v28 }
 0x362   :  { %v2535_v2 = vpop.f32.mrf.mxu1  ;;  %v2648_v51 = vpop.f32.mrf.mxu0 }
 0x363   :  { %v2781_v0 = vadd.f32 %v2721_v46, %v2717_v62  ;;  %v2807_v41 = vadd.f32 %v2723_v52, %v2719_v39  ;;  %v2722_v54 = vmax.f32 %v2532_v32, 0.0  ;;  %v2724_v45 = vmax.f32 %v2645_v35, 0.0  ;;  %v7544_v32 = vld [vmem:[%s10161_s7 + $0x150] sm:$0xff]  }
 0x364   :  { %v2536_v3 = vadd.f32 %v2535_v2, %v9005_v53  ;;  %v2649_v38 = vadd.f32 %v2648_v51, %v9008_v24  ;;  %v2537_v63 = vpop.f32.mrf.mxu1  ;;  %v2650_v9 = vpop.f32.mrf.mxu0  ;;  %v7545_v35 = vld [vmem:[%s10161_s7 + $0x1d0] sm:$0xff]   ;;  %7191 = vmatprep.subr.bf16.mxu1 %v7544_v32  ;;  %v7556_v32 = vld [vmem:[%s10161_s7 + $0x78] sm:$0xff]  }
 0x365   :  { %v2538_v30 = vadd.f32 %v2537_v63, %v9025_v12  ;;  %v2651_v42 = vadd.f32 %v2650_v9, %v9028_v28  ;;  %v2794_v20 = vadd.f32 %v2722_v54, %v2718_v36  ;;  %v2820_v26 = vadd.f32 %v2724_v45, %v2720_v49  ;;  %v7546_v54 = vld [vmem:[%s10161_s7 + $0x110] sm:$0xff]   ;;  %7213 = vmatprep.subr.bf16.mxu0 %v7545_v35  ;;  %v7557_v35 = vld [vmem:[%s10161_s7 + $0xf8] sm:$0xff]  }
 0x366   :  { %v2725_v33 = vmax.f32 %v2536_v3, 0.0  ;;  %v2727_v61 = vmax.f32 %v2649_v38, 0.0  ;;  %v2539_v48 = vpop.f32.mrf.mxu1  ;;  %v2652_v40 = vpop.f32.mrf.mxu0  ;;  %v7547_v45 = vld [vmem:[%s10161_s7 + $0x190] sm:$0xff]   ;;  %7192 = vmatpush3.bf16.msra.mxu1 %v7546_v54  ;;  %v7699_v54 = vmov 1983009808  }
 0x367   :  { %v2726_v11 = vmax.f32 %v2538_v30, 0.0  ;;  %v2728_v37 = vmax.f32 %v2651_v42, 0.0  ;;  %v2540_v16 = vadd.f32 %v2539_v48, %v9005_v53  ;;  %v2653_v21 = vadd.f32 %v2652_v40, %v9008_v24  ;;  %7214 = vmatpush3.bf16.msra.mxu0 %v7547_v45  ;;  %v7548_v48 = vld [vmem:[%s10161_s7 + $0x148] sm:$0xff]  }
 0x368   :  { %v2782_v60 = vadd.f32 %v2781_v0, %v2725_v33  ;;  %v2808_v17 = vadd.f32 %v2807_v41, %v2727_v61  ;;  %v2541_v27 = vpop.f32.mrf.mxu1  ;;  %v2654_v58 = vpop.f32.mrf.mxu0  ;;  %v7549_v40 = vld [vmem:[%s10161_s7 + $0x1c8] sm:$0xff]   ;;  %7193 = vmatprep.subr.bf16.mxu1 %v7548_v48  ;;  %v2904_v45 = vunpack.c.l.s4 %v7699_v54 }
 0x369   :  { %v2795_v7 = vadd.f32 %v2794_v20, %v2726_v11  ;;  %v2821_v1 = vadd.f32 %v2820_v26, %v2728_v37  ;;  %v2729_v14 = vmax.f32 %v2540_v16, 0.0  ;;  %v2731_v15 = vmax.f32 %v2653_v21, 0.0  ;;  %7215 = vmatprep.subr.bf16.mxu0 %v7549_v40 }
 0x36a   :  { %v2542_v6 = vadd.f32 %v2541_v27, %v9025_v12  ;;  %v2655_v55 = vadd.f32 %v2654_v58, %v9028_v28  ;;  %v2545_v34 = vpop.f32.mrf.mxu1  ;;  %v2658_v57 = vpop.f32.mrf.mxu0 }
 0x36b   :  { %v2783_v62 = vadd.f32 %v2782_v60, %v2729_v14  ;;  %v2809_v39 = vadd.f32 %v2808_v17, %v2731_v15  ;;  %v2546_v56 = vadd.f32 %v2545_v34, %v9005_v53  ;;  %v2659_v19 = vadd.f32 %v2658_v57, %v9008_v24  ;;  %v7550_v60 = vld [vmem:[%s10161_s7 + $0x108] sm:$0xff]   ;;  %v7552_v14 = vld [vmem:[%s10161_s7 + $0x140] sm:$0xff]  }
 0x36c   :  { %v2730_v47 = vmax.f32 %v2542_v6, 0.0  ;;  %v2732_v50 = vmax.f32 %v2655_v55, 0.0  ;;  %v2547_v46 = vpop.f32.mrf.mxu1  ;;  %v2660_v52 = vpop.f32.mrf.mxu0  ;;  %v7551_v17 = vld [vmem:[%s10161_s7 + $0x188] sm:$0xff]   ;;  %v7553_v15 = vld [vmem:[%s10161_s7 + $0x1c0] sm:$0xff]   ;;  %7194 = vmatpush3.bf16.msra.mxu1 %v7550_v60  ;;  %v2905_v60 = vunpack.c.0.s8 %v2904_v45 }
 0x36d   :  { %v2733_v2 = vmax.f32 %v2546_v56, 0.0  ;;  %v2735_v51 = vmax.f32 %v2659_v19, 0.0  ;;  %v2548_v0 = vadd.f32 %v2547_v46, %v9025_v12  ;;  %v2661_v41 = vadd.f32 %v2660_v52, %v9028_v28  ;;  %7216 = vmatpush3.bf16.msra.mxu0 %v7551_v17  ;;  %v7554_v34 = vld [vmem:[%s10161_s7 + $0x100] sm:$0xff]   ;;  %7195 = vmatprep.subr.bf16.mxu1 %v7552_v14 }
 0x36e   :  { %v2796_v36 = vadd.f32 %v2795_v7, %v2730_v47  ;;  %v2822_v49 = vadd.f32 %v2821_v1, %v2732_v50  ;;  %v2549_v3 = vpop.f32.mrf.mxu1  ;;  %v2662_v38 = vpop.f32.mrf.mxu0  ;;  %7217 = vmatprep.subr.bf16.mxu0 %v7553_v15  ;;  %v7555_v50 = vld [vmem:[%s10161_s7 + $0x180] sm:$0xff]  }
 0x36f   :  { %v2784_v63 = vadd.f32 %v2783_v62, %v2733_v2  ;;  %v2810_v9 = vadd.f32 %v2809_v39, %v2735_v51  ;;  %v2734_v30 = vmax.f32 %v2548_v0, 0.0  ;;  %v2736_v42 = vmax.f32 %v2661_v41, 0.0 }
 0x370   :  { %v2550_v20 = vadd.f32 %v2549_v3, %v9005_v53  ;;  %v2663_v26 = vadd.f32 %v2662_v38, %v9008_v24  ;;  %v2551_v33 = vpop.f32.mrf.mxu1  ;;  %v2664_v61 = vpop.f32.mrf.mxu0  ;;  %7196 = vmatpush3.bf16.msra.mxu1 %v7554_v34 }
 0x371   :  { %v2797_v11 = vadd.f32 %v2796_v36, %v2734_v30  ;;  %v2823_v37 = vadd.f32 %v2822_v49, %v2736_v42  ;;  %v2552_v16 = vadd.f32 %v2551_v33, %v9025_v12  ;;  %v2665_v21 = vadd.f32 %v2664_v61, %v9028_v28  ;;  %7218 = vmatpush3.bf16.msra.mxu0 %v7555_v50 }
 0x372   :  { %v2737_v27 = vmax.f32 %v2550_v20, 0.0  ;;  %v2739_v58 = vmax.f32 %v2663_v26, 0.0  ;;  %v2555_v7 = vpop.f32.mrf.mxu1  ;;  %v2668_v1 = vpop.f32.mrf.mxu0  ;;  %7225 = vmatprep.subr.bf16.mxu1 %v7556_v32  ;;  %7247 = vmatprep.subr.bf16.mxu0 %v7557_v35 }
 0x373   :  { %v2556_v6 = vadd.f32 %v2555_v7, %v9005_v53  ;;  %v2669_v55 = vadd.f32 %v2668_v1, %v9008_v24  ;;  %v2738_v39 = vmax.f32 %v2552_v16, 0.0  ;;  %v2740_v56 = vmax.f32 %v2665_v21, 0.0 }
 0x374   :  { %v2785_v57 = vadd.f32 %v2784_v63, %v2737_v27  ;;  %v2811_v62 = vadd.f32 %v2810_v9, %v2739_v58  ;;  %v2557_v19 = vpop.f32.mrf.mxu1  ;;  %v2670_v47 = vpop.f32.mrf.mxu0 }
 0x375   :  { %v2741_v46 = vmax.f32 %v2556_v6, 0.0  ;;  %v2743_v52 = vmax.f32 %v2669_v55, 0.0  ;;  %v2558_v2 = vadd.f32 %v2557_v19, %v9025_v12  ;;  %v2671_v51 = vadd.f32 %v2670_v47, %v9028_v28 }
 0x376   :  { %v2559_v0 = vpop.f32.mrf.mxu1  ;;  %v2672_v41 = vpop.f32.mrf.mxu0  ;;  %v2798_v63 = vadd.f32 %v2797_v11, %v2738_v39  ;;  %v2824_v9 = vadd.f32 %v2823_v37, %v2740_v56  ;;  %v9117_v39 = vsub.s32 %v2905_v60, %v8963_v4 }
 0x377   :  { %v2786_v36 = vadd.f32 %v2785_v57, %v2741_v46  ;;  %v2812_v49 = vadd.f32 %v2811_v62, %v2743_v52  ;;  %v2560_v3 = vadd.f32 %v2559_v0, %v9005_v53  ;;  %v2673_v38 = vadd.f32 %v2672_v41, %v9008_v24 }
 0x378   :  { %v2742_v30 = vmax.f32 %v2558_v2, 0.0  ;;  %v2744_v42 = vmax.f32 %v2671_v51, 0.0  ;;  %v2561_v20 = vpop.f32.mrf.mxu1  ;;  %v2674_v26 = vpop.f32.mrf.mxu0 }
 0x379   :  { %v2745_v33 = vmax.f32 %v2560_v3, 0.0  ;;  %v2747_v61 = vmax.f32 %v2673_v38, 0.0  ;;  %v2562_v48 = vadd.f32 %v2561_v20, %v9025_v12  ;;  %v2675_v40 = vadd.f32 %v2674_v26, %v9028_v28 }
 0x37a   :  { %v2799_v16 = vadd.f32 %v2798_v63, %v2742_v30  ;;  %v2825_v21 = vadd.f32 %v2824_v9, %v2744_v42  ;;  %v2565_v17 = vpop.f32.mrf.mxu1  ;;  %v2678_v27 = vpop.f32.mrf.mxu0 }
 0x37b   :  { %v2787_v11 = vadd.f32 %v2786_v36, %v2745_v33  ;;  %v2813_v37 = vadd.f32 %v2812_v49, %v2747_v61  ;;  %v2746_v58 = vmax.f32 %v2562_v48, 0.0  ;;  %v2748_v7 = vmax.f32 %v2675_v40, 0.0 }
 0x37c   :  { %v2566_v1 = vadd.f32 %v2565_v17, %v9005_v53  ;;  %v2679_v14 = vadd.f32 %v2678_v27, %v9008_v24  ;;  %v2567_v15 = vpop.f32.mrf.mxu1  ;;  %v2680_v6 = vpop.f32.mrf.mxu0 }
 0x37d   :  { %v2788_v55 = vrot.slane %v2787_v11, 4  ;;  %v2814_v34 = vrot.slane %v2813_v37, 4  ;;  %v2800_v57 = vadd.f32 %v2799_v16, %v2746_v58  ;;  %v2826_v62 = vadd.f32 %v2825_v21, %v2748_v7 }
 0x37e   :  { %v2749_v56 = vmax.f32 %v2566_v1, 0.0  ;;  %v2751_v19 = vmax.f32 %v2679_v14, 0.0  ;;  %v2569_v47 = vpop.f32.mrf.mxu1  ;;  %v2682_v50 = vpop.f32.mrf.mxu0  ;;  %v2568_v2 = vadd.f32 %v2567_v15, %v9025_v12  ;;  %v2681_v51 = vadd.f32 %v2680_v6, %v9028_v28 }
 0x37f   :  { %v2789_v46 = vadd.f32 %v2788_v55, %v2787_v11  ;;  %v2815_v52 = vadd.f32 %v2814_v34, %v2813_v37  ;;  %v2801_v32 = vrot.slane %v2800_v57, 4  ;;  %v2827_v35 = vrot.slane %v2826_v62, 4 }
 0x380   :  { %v2570_v0 = vadd.f32 %v2569_v47, %v9005_v53  ;;  %v2683_v41 = vadd.f32 %v2682_v50, %v9008_v24  ;;  %v2571_v54 = vpop.f32.mrf.mxu1  ;;  %v2684_v45 = vpop.f32.mrf.mxu0  ;;  %v2750_v1 = vmax.f32 %v2568_v2, 0.0  ;;  %v2752_v14 = vmax.f32 %v2681_v51, 0.0 }
 0x381   :  { %v2790_v4 = vrot.slane %v2789_v46, 2  ;;  %v2816_v36 = vrot.slane %v2815_v52, 2  ;;  %v2802_v49 = vadd.f32 %v2801_v32, %v2800_v57  ;;  %v2828_v3 = vadd.f32 %v2827_v35, %v2826_v62 }
 0x382   :  { %v2753_v38 = vmax.f32 %v2570_v0, 0.0  ;;  %v2755_v63 = vmax.f32 %v2683_v41, 0.0  ;;  %v2572_v9 = vadd.f32 %v2571_v54, %v9025_v12  ;;  %v2685_v30 = vadd.f32 %v2684_v45, %v9028_v28  ;;  %v2575_v42 = vpop.f32.mrf.mxu1  ;;  %v2688_v20 = vpop.f32.mrf.mxu0 }
 0x383   :  { %v2791_v26 = vadd.f32 %v2790_v4, %v2789_v46  ;;  %v2817_v33 = vadd.f32 %v2816_v36, %v2815_v52  ;;  %v2803_v61 = vrot.slane %v2802_v49, 2  ;;  %v2829_v48 = vrot.slane %v2828_v3, 2 }
 0x384   :  { %v2833_v40 = vadd.f32 %v2753_v38, %v2749_v56  ;;  %v2859_v16 = vadd.f32 %v2755_v63, %v2751_v19  ;;  %v2754_v21 = vmax.f32 %v2572_v9, 0.0  ;;  %v2756_v60 = vmax.f32 %v2685_v30, 0.0  ;;  %v2577_v17 = vpop.f32.mrf.mxu1  ;;  %v2690_v27 = vpop.f32.mrf.mxu0  ;;  %v9132_v38 = vld [vmem:[%s10160_s6 + $0x4] sm:$0xf] }
 0x385   :  { %v2792_v11 = vrot.slane %v2791_v26, 1  ;;  %v2818_v37 = vrot.slane %v2817_v33, 1  ;;  %v2804_v58 = vadd.f32 %v2803_v61, %v2802_v49  ;;  %v2830_v7 = vadd.f32 %v2829_v48, %v2828_v3 }
 0x386   :  { %v2576_v15 = vadd.f32 %v2575_v42, %v9005_v53  ;;  %v2689_v6 = vadd.f32 %v2688_v20, %v9008_v24  ;;  %v2579_v55 = vpop.f32.mrf.mxu1  ;;  %v2692_v34 = vpop.f32.mrf.mxu0  ;;  %v2578_v46 = vadd.f32 %v2577_v17, %v9025_v12  ;;  %v2691_v52 = vadd.f32 %v2690_v27, %v9028_v28 }
 0x387   :  { %v2793_v57 = vadd.f32 %v2792_v11, %v2791_v26  ;;  %v2819_v62 = vadd.f32 %v2818_v37, %v2817_v33  ;;  %v2805_v56 = vrot.slane %v2804_v58, 1  ;;  %v2831_v19 = vrot.slane %v2830_v7, 1 }
 0x388   :  { %v2757_v47 = vmax.f32 %v2576_v15, 0.0  ;;  %v2759_v50 = vmax.f32 %v2689_v6, 0.0  ;;  %v2581_v32 = vpop.f32.mrf.mxu1  ;;  %v2694_v35 = vpop.f32.mrf.mxu0  ;;  %v2846_v0 = vadd.f32 %v2754_v21, %v2750_v1  ;;  %v2872_v41 = vadd.f32 %v2756_v60, %v2752_v14 }
 0x389   :  { %v2806_v2 = vadd.f32 %v2805_v56, %v2804_v58  ;;  %v2832_v51 = vadd.f32 %v2831_v19, %v2830_v7  ;;  %v2758_v4 = vmax.f32 %v2578_v46, 0.0  ;;  %v2760_v36 = vmax.f32 %v2691_v52, 0.0 }
 0x38a   :  { %v2834_v54 = vadd.f32 %v2833_v40, %v2757_v47  ;;  %v2860_v45 = vadd.f32 %v2859_v16, %v2759_v50  ;;  %v2585_v49 = vpop.f32.mrf.mxu1  ;;  %v2698_v3 = vpop.f32.mrf.mxu0  ;;  %v9134_v63 = vmul.f32 0.015625, %v2793_v57  ;;  %v9136_v9 = vmul.f32 0.015625, %v2819_v62 }
 0x38b   :  { %v9138_v30 = vmul.f32 0.015625, %v2806_v2  ;;  %v9140_v42 = vmul.f32 0.015625, %v2832_v51  ;;  %v2847_v20 = vadd.f32 %v2846_v0, %v2758_v4  ;;  %v2873_v26 = vadd.f32 %v2872_v41, %v2760_v36 }
 0x38c   :  { %v2580_v33 = vadd.f32 %v2579_v55, %v9005_v53  ;;  %v2693_v61 = vadd.f32 %v2692_v34, %v9008_v24  ;;  %v2587_v48 = vpop.f32.mrf.mxu1  ;;  %v2700_v40 = vpop.f32.mrf.mxu0  ;;  %v9150_v60 = vrot.slane %v9132_v38, %v8984_v25  ;;  %v9154_v17 = vrot.slane %v9132_v38, %v8987_v8 }
 0x38d   :  { %v2901_v16 = vcombine.low %v9134_v63, %v9138_v30  ;;  %v2902_v21 = vcombine.low %v9136_v9, %v9140_v42  ;;  %v2582_v37 = vadd.f32 %v2581_v32, %v9025_v12  ;;  %v2695_v58 = vadd.f32 %v2694_v35, %v9028_v28 }
 0x38e   :  { %v2761_v27 = vmax.f32 %v2580_v33, 0.0  ;;  %v2763_v11 = vmax.f32 %v2693_v61, 0.0  ;;  %v2589_v7 = vpop.f32.mrf.mxu1  ;;  %v2702_v1 = vpop.f32.mrf.mxu0  ;;  %v2586_v6 = vadd.f32 %v2585_v49, %v9005_v53  ;;  %v2699_v55 = vadd.f32 %v2698_v3, %v9008_v24 }
 0x38f   :  { %v9159_v14 = vrot.slane %v2901_v16, %v9117_v39  ;;  %v9162_v15 = vrot.slane %v2902_v21, %v9117_v39  ;;  %v2762_v62 = vmax.f32 %v2582_v37, 0.0  ;;  %v2764_v56 = vmax.f32 %v2695_v58, 0.0 }
 0x390   :  { %v2835_v34 = vadd.f32 %v2834_v54, %v2761_v27  ;;  %v2861_v57 = vadd.f32 %v2860_v45, %v2763_v11  ;;  %v2591_v19 = vpop.f32.mrf.mxu1  ;;  %v2704_v47 = vpop.f32.mrf.mxu0  ;;  %v2765_v46 = vmax.f32 %v2586_v6, 0.0  ;;  %v2767_v52 = vmax.f32 %v2699_v55, 0.0 }
 0x391   :  { %v2588_v32 = vadd.f32 %v2587_v48, %v9025_v12  ;;  %v2848_v35 = vadd.f32 %v2847_v20, %v2762_v62  ;;  %v2874_v2 = vadd.f32 %v2873_v26, %v2764_v56  ;;  %v2701_v51 = vadd.f32 %v2700_v40, %v9028_v28 }
 0x392   :  { %v2590_v0 = vadd.f32 %v2589_v7, %v9005_v53  ;;  %v2595_v41 = vpop.f32.mrf.mxu1  ;;  %v2708_v54 = vpop.f32.mrf.mxu0  ;;  %v2836_v45 = vadd.f32 %v2835_v34, %v2765_v46  ;;  %v2862_v4 = vadd.f32 %v2861_v57, %v2767_v52  ;;  %v2703_v49 = vadd.f32 %v2702_v1, %v9008_v24 }
 0x393   :  { %v2766_v36 = vmax.f32 %v2588_v32, 0.0  ;;  %v2768_v3 = vmax.f32 %v2701_v51, 0.0  ;;  %v2592_v61 = vadd.f32 %v2591_v19, %v9025_v12  ;;  %v2705_v16 = vadd.f32 %v2704_v47, %v9028_v28 }
 0x394   :  { %v2769_v33 = vmax.f32 %v2590_v0, 0.0  ;;  %v2597_v48 = vpop.f32.mrf.mxu1  ;;  %v2710_v20 = vpop.f32.mrf.mxu0  ;;  %v2771_v21 = vmax.f32 %v2703_v49, 0.0  ;;  %v2596_v40 = vadd.f32 %v2595_v41, %v9005_v53  ;;  %v2709_v27 = vadd.f32 %v2708_v54, %v9008_v24 }
 0x395   :  { %v2849_v26 = vadd.f32 %v2848_v35, %v2766_v36  ;;  %v2875_v11 = vadd.f32 %v2874_v2, %v2768_v3  ;;  %v2770_v58 = vmax.f32 %v2592_v61, 0.0  ;;  %v2772_v7 = vmax.f32 %v2705_v16, 0.0 }
 0x396   :  { %v2837_v37 = vadd.f32 %v2836_v45, %v2769_v33  ;;  %v2599_v6 = vpop.f32.mrf.mxu1  ;;  %v2712_v1 = vpop.f32.mrf.mxu0  ;;  %v2863_v55 = vadd.f32 %v2862_v4, %v2771_v21  ;;  %v2773_v34 = vmax.f32 %v2596_v40, 0.0  ;;  %v2775_v57 = vmax.f32 %v2709_v27, 0.0 }
 0x397   :  { %v2598_v62 = vadd.f32 %v2597_v48, %v9025_v12  ;;  %v2850_v56 = vadd.f32 %v2849_v26, %v2770_v58  ;;  %v2876_v19 = vadd.f32 %v2875_v11, %v2772_v7  ;;  %v2711_v47 = vadd.f32 %v2710_v20, %v9028_v28 }
 0x398   :  { %v2600_v46 = vadd.f32 %v2599_v6, %v9005_v53  ;;  %v2601_v52 = vpop.f32.mrf.mxu1  ;;  %v2714_v32 = vpop.f32.mrf.mxu0  ;;  %v2838_v35 = vadd.f32 %v2837_v37, %v2773_v34  ;;  %v2864_v2 = vadd.f32 %v2863_v55, %v2775_v57  ;;  %v2713_v0 = vadd.f32 %v2712_v1, %v9008_v24 }
 0x399   :  { %v2774_v51 = vmax.f32 %v2598_v62, 0.0  ;;  %v2776_v41 = vmax.f32 %v2711_v47, 0.0  ;;  %v2602_v45 = vadd.f32 %v2601_v52, %v9025_v12  ;;  %v2715_v4 = vadd.f32 %v2714_v32, %v9028_v28 }
 0x39a   :  { %v2777_v54 = vmax.f32 %v2600_v46, 0.0  ;;  %v3270_v36 = vpop.f32.mrf.mxu1  ;;  %v3383_v49 = vpop.f32.mrf.mxu0  ;;  %v2779_v33 = vmax.f32 %v2713_v0, 0.0  ;;  %v9184_v53 = vrot.slane %v9132_v38, %v9011_v5  ;;  %v9191_v1 = vrot.slane %v9132_v38, %v9014_v59 }
 0x39b   :  { %v2851_v3 = vadd.f32 %v2850_v56, %v2774_v51  ;;  %v2877_v61 = vadd.f32 %v2876_v19, %v2776_v41  ;;  %v2778_v48 = vmax.f32 %v2602_v45, 0.0  ;;  %v2780_v20 = vmax.f32 %v2715_v4, 0.0 }
 0x39c   :  { %v2839_v16 = vadd.f32 %v2838_v35, %v2777_v54  ;;  %v3272_v26 = vpop.f32.mrf.mxu1  ;;  %v3385_v24 = vpop.f32.mrf.mxu0  ;;  %v2865_v21 = vadd.f32 %v2864_v2, %v2779_v33  ;;  %v3271_v40 = vadd.f32 %v3270_v36, %v9150_v60  ;;  %v3384_v11 = vadd.f32 %v3383_v49, %v9154_v17 }
 0x39d   :  { %v2852_v27 = vadd.f32 %v2851_v3, %v2778_v48  ;;  %v2878_v28 = vadd.f32 %v2877_v61, %v2780_v20  ;;  %v3273_v6 = vadd.f32 %v3272_v26, %v9184_v53  ;;  %v3386_v4 = vadd.f32 %v3385_v24, %v9191_v1 }
 0x39e   :  { %v2840_v12 = vrot.slane %v2839_v16, 4  ;;  %v3274_v37 = vpop.f32.mrf.mxu1  ;;  %v3387_v58 = vpop.f32.mrf.mxu0  ;;  %v2866_v7 = vrot.slane %v2865_v21, 4  ;;  %v3462_v52 = vmax.f32 %v3271_v40, 0.0  ;;  %v3464_v0 = vmax.f32 %v3384_v11, 0.0 }
 0x39f   :  { %v3275_v55 = vadd.f32 %v3274_v37, %v9150_v60  ;;  %v2853_v57 = vrot.slane %v2852_v27, 4  ;;  %v2879_v62 = vrot.slane %v2878_v28, 4  ;;  %v3388_v56 = vadd.f32 %v3387_v58, %v9154_v17 }
 0x3a0   :  { %v2841_v34 = vadd.f32 %v2840_v12, %v2839_v16  ;;  %v3276_v19 = vpop.f32.mrf.mxu1  ;;  %v3389_v47 = vpop.f32.mrf.mxu0  ;;  %v2867_v46 = vadd.f32 %v2866_v7, %v2865_v21  ;;  %v3463_v45 = vmax.f32 %v3273_v6, 0.0  ;;  %v3465_v7 = vmax.f32 %v3386_v4, 0.0 }
 0x3a1   :  { %v3277_v32 = vadd.f32 %v3276_v19, %v9184_v53  ;;  %v2854_v2 = vadd.f32 %v2853_v57, %v2852_v27  ;;  %v2880_v51 = vadd.f32 %v2879_v62, %v2878_v28  ;;  %v3466_v36 = vmax.f32 %v3275_v55, 0.0 }
 0x3a2   :  { %v2842_v35 = vrot.slane %v2841_v34, 2  ;;  %v3280_v41 = vpop.f32.mrf.mxu1  ;;  %v3393_v38 = vpop.f32.mrf.mxu0  ;;  %v2868_v54 = vrot.slane %v2867_v46, 2  ;;  %v3468_v61 = vmax.f32 %v3388_v56, 0.0  ;;  %v3390_v21 = vadd.f32 %v3389_v47, %v9191_v1 }
 0x3a3   :  { %v2855_v3 = vrot.slane %v2854_v2, 2  ;;  %v2881_v33 = vrot.slane %v2880_v51, 2  ;;  %v3467_v26 = vmax.f32 %v3277_v32, 0.0  ;;  %v3281_v40 = vadd.f32 %v3280_v41, %v9150_v60 }
 0x3a4   :  { %v2843_v49 = vadd.f32 %v2842_v35, %v2841_v34  ;;  %v3282_v16 = vpop.f32.mrf.mxu1  ;;  %v3395_v48 = vpop.f32.mrf.mxu0  ;;  %v2869_v20 = vadd.f32 %v2868_v54, %v2867_v46  ;;  %v3394_v11 = vadd.f32 %v3393_v38, %v9154_v17  ;;  %v3526_v6 = vadd.f32 %v3466_v36, %v3462_v52 }
 0x3a5   :  { %v2856_v27 = vadd.f32 %v2855_v3, %v2854_v2  ;;  %v2882_v28 = vadd.f32 %v2881_v33, %v2880_v51  ;;  %v3283_v55 = vadd.f32 %v3282_v16, %v9184_v53  ;;  %v3396_v56 = vadd.f32 %v3395_v48, %v9191_v1 }
 0x3a6   :  { %v2844_v12 = vrot.slane %v2843_v49, 1  ;;  %v3284_v37 = vpop.f32.mrf.mxu1  ;;  %v3397_v24 = vpop.f32.mrf.mxu0  ;;  %v2870_v58 = vrot.slane %v2869_v20, 1  ;;  %v3552_v32 = vadd.f32 %v3468_v61, %v3464_v0  ;;  %v3539_v35 = vadd.f32 %v3467_v26, %v3463_v45 }
 0x3a7   :  { %v2857_v57 = vrot.slane %v2856_v27, 1  ;;  %v2883_v62 = vrot.slane %v2882_v28, 1  ;;  %v3469_v2 = vmax.f32 %v3390_v21, 0.0  ;;  %v3470_v38 = vmax.f32 %v3281_v40, 0.0 }
 0x3a8   :  { %v2845_v34 = vadd.f32 %v2844_v12, %v2843_v49  ;;  %v3286_v19 = vpop.f32.mrf.mxu1  ;;  %v3399_v47 = vpop.f32.mrf.mxu0  ;;  %v2871_v46 = vadd.f32 %v2870_v58, %v2869_v20  ;;  %v3472_v54 = vmax.f32 %v3394_v11, 0.0  ;;  %v3471_v36 = vmax.f32 %v3283_v55, 0.0 }
 0x3a9   :  { %v2858_v51 = vadd.f32 %v2857_v57, %v2856_v27  ;;  %v2884_v41 = vadd.f32 %v2883_v62, %v2882_v28  ;;  %v3285_v49 = vadd.f32 %v3284_v37, %v9150_v60  ;;  %v3398_v33 = vadd.f32 %v3397_v24, %v9154_v17 }
 0x3aa   :  { %v3290_v3 = vpop.f32.mrf.mxu1  ;;  %v3403_v4 = vpop.f32.mrf.mxu0  ;;  %v9202_v52 = vmul.f32 0.015625, %v2845_v34  ;;  %v9206_v16 = vmul.f32 0.015625, %v2871_v46  ;;  %v3473_v45 = vmax.f32 %v3396_v56, 0.0  ;;  %v3565_v26 = vadd.f32 %v3469_v2, %v3465_v7 }
 0x3ab   :  { %v9208_v48 = vmul.f32 0.015625, %v2858_v51  ;;  %v9210_v0 = vmul.f32 0.015625, %v2884_v41  ;;  %v3474_v21 = vmax.f32 %v3285_v49, 0.0  ;;  %v3476_v40 = vmax.f32 %v3398_v33, 0.0 }
 0x3ac   :  { %v3292_v61 = vpop.f32.mrf.mxu1  ;;  %v3405_v20 = vpop.f32.mrf.mxu0  ;;  %v3287_v12 = vadd.f32 %v3286_v19, %v9184_v53  ;;  %v3527_v11 = vadd.f32 %v3526_v6, %v3470_v38  ;;  %v3400_v37 = vadd.f32 %v3399_v47, %v9191_v1  ;;  %v3553_v55 = vadd.f32 %v3552_v32, %v3472_v54 }
 0x3ad   :  { %v3540_v34 = vadd.f32 %v3539_v35, %v3471_v36  ;;  %v3566_v62 = vadd.f32 %v3565_v26, %v3473_v45  ;;  %v3291_v46 = vadd.f32 %v3290_v3, %v9150_v60  ;;  %v3404_v41 = vadd.f32 %v3403_v4, %v9154_v17 }
 0x3ae   :  { %v3294_v24 = vpop.f32.mrf.mxu1  ;;  %v3407_v58 = vpop.f32.mrf.mxu0  ;;  %v3475_v57 = vmax.f32 %v3287_v12, 0.0  ;;  %v3528_v7 = vadd.f32 %v3527_v11, %v3474_v21  ;;  %v3477_v56 = vmax.f32 %v3400_v37, 0.0  ;;  %v3554_v51 = vadd.f32 %v3553_v55, %v3476_v40 }
 0x3af   :  { %v3293_v49 = vadd.f32 %v3292_v61, %v9184_v53  ;;  %v3406_v6 = vadd.f32 %v3405_v20, %v9191_v1  ;;  %v3478_v38 = vmax.f32 %v3291_v46, 0.0  ;;  %v3295_v32 = vadd.f32 %v3294_v24, %v9150_v60 }
 0x3b0   :  { %v3296_v19 = vpop.f32.mrf.mxu1  ;;  %v3409_v2 = vpop.f32.mrf.mxu0  ;;  %v3541_v47 = vadd.f32 %v3540_v34, %v3475_v57  ;;  %v3408_v35 = vadd.f32 %v3407_v58, %v9154_v17  ;;  %v3480_v33 = vmax.f32 %v3404_v41, 0.0  ;;  %v3567_v21 = vadd.f32 %v3566_v62, %v3477_v56 }
 0x3b1   :  { %v3479_v45 = vmax.f32 %v3293_v49, 0.0  ;;  %v3481_v3 = vmax.f32 %v3406_v6, 0.0  ;;  %v3297_v26 = vadd.f32 %v3296_v19, %v9184_v53  ;;  %v3482_v40 = vmax.f32 %v3295_v32, 0.0 }
 0x3b2   :  { %v3300_v54 = vpop.f32.mrf.mxu1  ;;  %v3413_v36 = vpop.f32.mrf.mxu0  ;;  %v3484_v4 = vmax.f32 %v3408_v35, 0.0  ;;  %v3410_v61 = vadd.f32 %v3409_v2, %v9191_v1  ;;  %v3529_v11 = vadd.f32 %v3528_v7, %v3478_v38  ;;  %v3555_v37 = vadd.f32 %v3554_v51, %v3480_v33 }
 0x3b3   :  { %v3542_v55 = vadd.f32 %v3541_v47, %v3479_v45  ;;  %v3483_v24 = vmax.f32 %v3297_v26, 0.0  ;;  %v3568_v34 = vadd.f32 %v3567_v21, %v3481_v3  ;;  %v3301_v57 = vadd.f32 %v3300_v54, %v9150_v60 }
 0x3b4   :  { %v3302_v12 = vpop.f32.mrf.mxu1  ;;  %v3415_v20 = vpop.f32.mrf.mxu0  ;;  %v3485_v58 = vmax.f32 %v3410_v61, 0.0  ;;  %v3414_v46 = vadd.f32 %v3413_v36, %v9154_v17  ;;  %v3530_v19 = vadd.f32 %v3529_v11, %v3482_v40  ;;  %v3556_v62 = vadd.f32 %v3555_v37, %v3484_v4 }
 0x3b5   :  { %v3303_v56 = vadd.f32 %v3302_v12, %v9184_v53  ;;  %v3416_v2 = vadd.f32 %v3415_v20, %v9191_v1  ;;  %v3543_v6 = vadd.f32 %v3542_v55, %v3483_v24  ;;  %v3486_v32 = vmax.f32 %v3301_v57, 0.0 }
 0x3b6   :  { %v3304_v41 = vpop.f32.mrf.mxu1  ;;  %v3417_v49 = vpop.f32.mrf.mxu0  ;;  %v3488_v7 = vmax.f32 %v3414_v46, 0.0  ;;  %v3569_v45 = vadd.f32 %v3568_v34, %v3485_v58  ;;  %v2950_v34 = vpack.c.bf16 %v9134_v63, %v9134_v63 }
 0x3b7   :  { %v3305_v51 = vadd.f32 %v3304_v41, %v9150_v60  ;;  %v3487_v35 = vmax.f32 %v3303_v56, 0.0  ;;  %v3489_v33 = vmax.f32 %v3416_v2, 0.0  ;;  %v3418_v54 = vadd.f32 %v3417_v49, %v9154_v17 }
 0x3b8   :  { %v3306_v47 = vpop.f32.mrf.mxu1  ;;  %v3419_v38 = vpop.f32.mrf.mxu0  ;;  %v3531_v3 = vadd.f32 %v3530_v19, %v3486_v32  ;;  %v3557_v61 = vadd.f32 %v3556_v62, %v3488_v7  ;;  %v2952_v62 = vpack.c.bf16 %v9136_v9, %v9136_v9 }
 0x3b9   :  { %v3307_v36 = vadd.f32 %v3306_v47, %v9184_v53  ;;  %v3490_v26 = vmax.f32 %v3305_v51, 0.0  ;;  %v3420_v21 = vadd.f32 %v3419_v38, %v9191_v1  ;;  %v3544_v12 = vadd.f32 %v3543_v6, %v3487_v35 }
 0x3ba   :  { %v3310_v40 = vpop.f32.mrf.mxu1  ;;  %v3423_v4 = vpop.f32.mrf.mxu0  ;;  %v3492_v20 = vmax.f32 %v3418_v54, 0.0  ;;  %v3570_v37 = vadd.f32 %v3569_v45, %v3489_v33  ;;  %v2954_v6 = vpack.c.bf16 %v9202_v52, %v9202_v52  ;;  %v2956_v51 = vpack.c.bf16 %v9206_v16, %v9206_v16 }
 0x3bb   :  { %v3491_v11 = vmax.f32 %v3307_v36, 0.0  ;;  %v3532_v55 = vadd.f32 %v3531_v3, %v3490_v26  ;;  %v3493_v24 = vmax.f32 %v3420_v21, 0.0  ;;  %v9242_v33 = vunpack.c.l.b16 %v2950_v34 }
 0x3bc   :  { %v3312_v57 = vpop.f32.mrf.mxu1  ;;  %v3425_v46 = vpop.f32.mrf.mxu0  ;;  %v3558_v41 = vadd.f32 %v3557_v61, %v3492_v20  ;;  %v9246_v3 = vunpack.c.l.b16 %v2952_v62  ;;  %v9248_v26 = vunpack.c.l.b16 %v2954_v6  ;;  %v3311_v20 = vadd.f32 %v3310_v40, %v9150_v60 }
 0x3bd   :  { %v3545_v49 = vadd.f32 %v3544_v12, %v3491_v11  ;;  %v3533_v58 = vrot.slane %v3532_v55, 4  ;;  %v3571_v19 = vadd.f32 %v3570_v37, %v3493_v24  ;;  %v9250_v12 = vunpack.c.l.b16 %v2956_v51 }
 0x3be   :  { %v3314_v56 = vpop.f32.mrf.mxu1  ;;  %v3427_v2 = vpop.f32.mrf.mxu0  ;;  %v3559_v32 = vrot.slane %v3558_v41, 4  ;;  %v3424_v11 = vadd.f32 %v3423_v4, %v9154_v17  ;;  %v3494_v50 = vmax.f32 %v3311_v20, 0.0 }
 0x3bf   :  { %v3546_v7 = vrot.slane %v3545_v49, 4  ;;  %v3534_v35 = vadd.f32 %v3533_v58, %v3532_v55  ;;  %v3572_v63 = vrot.slane %v3571_v19, 4  ;;  %v3315_v54 = vadd.f32 %v3314_v56, %v9150_v60 }
 0x3c0   :  { %v3316_v47 = vpop.f32.mrf.mxu1  ;;  %v3429_v38 = vpop.f32.mrf.mxu0  ;;  %v3428_v36 = vadd.f32 %v3427_v2, %v9154_v17  ;;  %v3560_v21 = vadd.f32 %v3559_v32, %v3558_v41  ;;  %v3313_v58 = vadd.f32 %v3312_v57, %v9184_v53  ;;  %v3426_v56 = vadd.f32 %v3425_v46, %v9191_v1 }
 0x3c1   :  { %v3547_v61 = vadd.f32 %v3546_v7, %v3545_v49  ;;  %v3317_v37 = vadd.f32 %v3316_v47, %v9184_v53  ;;  %v3535_v34 = vrot.slane %v3534_v35, 2  ;;  %v3430_v2 = vadd.f32 %v3429_v38, %v9191_v1 }
 0x3c2   :  { %v3320_v45 = vpop.f32.mrf.mxu1  ;;  %v3433_v9 = vpop.f32.mrf.mxu0  ;;  %v3573_v62 = vadd.f32 %v3572_v63, %v3571_v19  ;;  %v3498_v41 = vmax.f32 %v3315_v54, 0.0  ;;  %v3500_v49 = vmax.f32 %v3428_v36, 0.0  ;;  %v3561_v7 = vrot.slane %v3560_v21, 2 }
 0x3c3   :  { %v3321_v6 = vadd.f32 %v3320_v45, %v9150_v60  ;;  %v3548_v4 = vrot.slane %v3547_v61, 2  ;;  %v3434_v51 = vadd.f32 %v3433_v9, %v9154_v17  ;;  %v3496_v28 = vmax.f32 %v3424_v11, 0.0 }
 0x3c4   :  { %v3322_v55 = vpop.f32.mrf.mxu1  ;;  %v3435_v24 = vpop.f32.mrf.mxu0  ;;  %v3499_v57 = vmax.f32 %v3317_v37, 0.0  ;;  %v9262_v19 = vadd.f32 %v3535_v34, %v3534_v35  ;;  %v3495_v63 = vmax.f32 %v3313_v58, 0.0  ;;  %v3497_v54 = vmax.f32 %v3426_v56, 0.0 }
 0x3c5   :  { %v3323_v47 = vadd.f32 %v3322_v55, %v9184_v53  ;;  %v3436_v46 = vadd.f32 %v3435_v24, %v9191_v1  ;;  %v3501_v36 = vmax.f32 %v3430_v2, 0.0  ;;  %v3574_v45 = vrot.slane %v3573_v62, 2 }
 0x3c6   :  { %v3324_v32 = vpop.f32.mrf.mxu1  ;;  %v3437_v40 = vpop.f32.mrf.mxu0  ;;  %v3578_v59 = vadd.f32 %v3498_v41, %v3494_v50  ;;  %v3604_v5 = vadd.f32 %v3500_v49, %v3496_v28  ;;  %v3502_v8 = vmax.f32 %v3321_v6, 0.0  ;;  %v9264_v18 = vadd.f32 %v3561_v7, %v3560_v21 }
 0x3c7   :  { %v9266_v20 = vadd.f32 %v3548_v4, %v3547_v61  ;;  %v3504_v11 = vmax.f32 %v3434_v51, 0.0  ;;  %v3503_v37 = vmax.f32 %v3323_v47, 0.0  ;;  %v3591_v55 = vadd.f32 %v3499_v57, %v3495_v63 }
 0x3c8   :  { %v3326_v27 = vpop.f32.mrf.mxu1  ;;  %v3439_v38 = vpop.f32.mrf.mxu0  ;;  %v3505_v24 = vmax.f32 %v3436_v46, 0.0  ;;  %v3325_v35 = vadd.f32 %v3324_v32, %v9150_v60  ;;  %v3438_v34 = vadd.f32 %v3437_v40, %v9154_v17  ;;  %v3537_v50 = vrot.slane %v9262_v19, 1 }
 0x3c9   :  { %v3617_v28 = vadd.f32 %v3501_v36, %v3497_v54  ;;  %v3327_v2 = vadd.f32 %v3326_v27, %v9184_v53  ;;  %v3440_v21 = vadd.f32 %v3439_v38, %v9191_v1  ;;  %v9273_v41 = vadd.f32 %v3574_v45, %v3573_v62 }
 0x3ca   :  { %v3330_v25 = vpop.f32.mrf.mxu1  ;;  %v3443_v9 = vpop.f32.mrf.mxu0  ;;  %v3579_v61 = vadd.f32 %v3578_v59, %v3502_v8  ;;  %v3506_v49 = vmax.f32 %v3325_v35, 0.0  ;;  %v3508_v6 = vmax.f32 %v3438_v34, 0.0  ;;  %v3605_v51 = vadd.f32 %v3604_v5, %v3504_v11 }
 0x3cb   :  { %v3592_v32 = vadd.f32 %v3591_v55, %v3503_v37  ;;  %v3507_v47 = vmax.f32 %v3327_v2, 0.0  ;;  %v3509_v40 = vmax.f32 %v3440_v21, 0.0  ;;  %v3563_v57 = vrot.slane %v9264_v18, 1 }
 0x3cc   :  { %v3332_v58 = vpop.f32.mrf.mxu1  ;;  %v3445_v56 = vpop.f32.mrf.mxu0  ;;  %v3618_v46 = vadd.f32 %v3617_v28, %v3505_v24  ;;  %v3580_v63 = vadd.f32 %v3579_v61, %v3506_v49  ;;  %v3331_v54 = vadd.f32 %v3330_v25, %v9150_v60  ;;  %v3606_v38 = vadd.f32 %v3605_v51, %v3508_v6 }
 0x3cd   :  { %v3593_v62 = vadd.f32 %v3592_v32, %v3507_v47  ;;  %v3444_v8 = vadd.f32 %v3443_v9, %v9154_v17  ;;  %v3333_v59 = vadd.f32 %v3332_v58, %v9184_v53  ;;  %v3446_v5 = vadd.f32 %v3445_v56, %v9191_v1 }
 0x3ce   :  { %v3334_v7 = vpop.f32.mrf.mxu1  ;;  %v3447_v4 = vpop.f32.mrf.mxu0  ;;  %v3619_v45 = vadd.f32 %v3618_v46, %v3509_v40  ;;  %v3510_v35 = vmax.f32 %v3331_v54, 0.0 }
 0x3cf   :  { %v3335_v11 = vadd.f32 %v3334_v7, %v9150_v60  ;;  %v3512_v24 = vmax.f32 %v3444_v8, 0.0  ;;  %v3511_v34 = vmax.f32 %v3333_v59, 0.0  ;;  %v3448_v25 = vadd.f32 %v3447_v4, %v9154_v17 }
 0x3d0   :  { %v3336_v27 = vpop.f32.mrf.mxu1  ;;  %v3449_v36 = vpop.f32.mrf.mxu0  ;;  %v3581_v2 = vadd.f32 %v3580_v63, %v3510_v35  ;;  %v3513_v21 = vmax.f32 %v3446_v5, 0.0 }
 0x3d1   :  { %v3337_v28 = vadd.f32 %v3336_v27, %v9184_v53  ;;  %v3514_v61 = vmax.f32 %v3335_v11, 0.0  ;;  %v3450_v9 = vadd.f32 %v3449_v36, %v9191_v1  ;;  %v3607_v6 = vadd.f32 %v3606_v38, %v3512_v24 }
 0x3d2   :  { %v3340_v37 = vpop.f32.mrf.mxu1  ;;  %v3453_v55 = vpop.f32.mrf.mxu0  ;;  %v3594_v51 = vadd.f32 %v3593_v62, %v3511_v34  ;;  %v3516_v56 = vmax.f32 %v3448_v25, 0.0  ;;  %v3620_v7 = vadd.f32 %v3619_v45, %v3513_v21 }
 0x3d3   :  { %v3515_v32 = vmax.f32 %v3337_v28, 0.0  ;;  %v3582_v47 = vadd.f32 %v3581_v2, %v3514_v61  ;;  %v3517_v40 = vmax.f32 %v3450_v9, 0.0  ;;  %v3341_v46 = vadd.f32 %v3340_v37, %v9150_v60 }
 0x3d4   :  { %v3342_v58 = vpop.f32.mrf.mxu1  ;;  %v3455_v49 = vpop.f32.mrf.mxu0  ;;  %v3608_v27 = vadd.f32 %v3607_v6, %v3516_v56  ;;  %v3454_v8 = vadd.f32 %v3453_v55, %v9154_v17 }
 0x3d5   :  { %v3595_v63 = vadd.f32 %v3594_v51, %v3515_v32  ;;  %v3343_v36 = vadd.f32 %v3342_v58, %v9184_v53  ;;  %v3621_v59 = vadd.f32 %v3620_v7, %v3517_v40  ;;  %v3518_v35 = vmax.f32 %v3341_v46, 0.0 }
 0x3d6   :  { %v3344_v4 = vpop.f32.mrf.mxu1  ;;  %v3457_v54 = vpop.f32.mrf.mxu0  ;;  %v3456_v38 = vadd.f32 %v3455_v49, %v9191_v1  ;;  %v3520_v11 = vmax.f32 %v3454_v8, 0.0  ;;  %v3550_v49 = vrot.slane %v9266_v20, 1  ;;  %v2951_v32 = vpack.c.bf16 %v9138_v30, %v9138_v30 }
 0x3d7   :  { %v3345_v62 = vadd.f32 %v3344_v4, %v9150_v60  ;;  %v3519_v24 = vmax.f32 %v3343_v36, 0.0  ;;  %v3458_v37 = vadd.f32 %v3457_v54, %v9154_v17  ;;  %v3583_v25 = vadd.f32 %v3582_v47, %v3518_v35 }
 0x3d8   :  { %v3346_v45 = vpop.f32.mrf.mxu1  ;;  %v3459_v5 = vpop.f32.mrf.mxu0  ;;  %v3521_v28 = vmax.f32 %v3456_v38, 0.0  ;;  %v3609_v21 = vadd.f32 %v3608_v27, %v3520_v11  ;;  %v3538_v17 = vadd.f32 %v3537_v50, %v9262_v19  ;;  %v2955_v40 = vpack.c.bf16 %v9208_v48, %v9208_v48 }
 0x3d9   :  { %v3347_v34 = vadd.f32 %v3346_v45, %v9184_v53  ;;  %v3522_v2 = vmax.f32 %v3345_v62, 0.0  ;;  %v3460_v55 = vadd.f32 %v3459_v5, %v9191_v1  ;;  %v3596_v61 = vadd.f32 %v3595_v63, %v3519_v24 }
 0x3da   :  { %v3524_v9 = vmax.f32 %v3458_v37, 0.0  ;;  %v3622_v60 = vadd.f32 %v3621_v59, %v3521_v28  ;;  %v3576_v1 = vrot.slane %v9273_v41, 1  ;;  %v3564_v46 = vadd.f32 %v3563_v57, %v9264_v18 }
 0x3db   :  { %v3523_v58 = vmax.f32 %v3347_v34, 0.0  ;;  %v3584_v6 = vadd.f32 %v3583_v25, %v3522_v2  ;;  %v3525_v51 = vmax.f32 %v3460_v55, 0.0  ;;  %v4070_v27 = vunpack.c.l.b16 %v2951_v32 }
 0x3dc   :  { %v3610_v56 = vadd.f32 %v3609_v21, %v3524_v9  ;;  %v4074_v63 = vunpack.c.l.b16 %v2955_v40  ;;  %v2953_v30 = vpack.c.bf16 %v9140_v42, %v9140_v42  ;;  %v2957_v59 = vpack.c.bf16 %v9210_v0, %v9210_v0 }
 0x3dd   :  { %v3597_v53 = vadd.f32 %v3596_v61, %v3523_v58  ;;  %v3585_v7 = vrot.slane %v3584_v6, 4  ;;  %v3623_v47 = vadd.f32 %v3622_v60, %v3525_v51  ;;  %v9311_v35 = vsel %vm2940_vm5, %v9248_v26, %v9242_v33 }
 0x3de   :  { %v3611_v4 = vrot.slane %v3610_v56, 4  ;;  %v3551_v18 = vadd.f32 %v3550_v49, %v9266_v20  ;;  %v9315_v62 = vsel %vm2940_vm5, %v4074_v63, %v4070_v27  ;;  %v4072_v42 = vunpack.c.l.b16 %v2953_v30 }
 0x3df   :  { %v3598_v54 = vrot.slane %v3597_v53, 4  ;;  %v3586_v19 = vadd.f32 %v3585_v7, %v3584_v6  ;;  %v3624_v50 = vrot.slane %v3623_v47, 4  ;;  %v4076_v11 = vunpack.c.l.b16 %v2957_v59 }
 0x3e0   :  { %v3612_v8 = vadd.f32 %v3611_v4, %v3610_v56  ;;  %v3577_v24 = vadd.f32 %v3576_v1, %v9273_v41  ;;  %v9321_v33 = vsel %vm2940_vm5, %v9250_v12, %v9246_v3  ;;  %v3630_v26 = vmul.f32 0.015625, %v3538_v17 }
 0x3e1   :  { %v3599_v36 = vadd.f32 %v3598_v54, %v3597_v53  ;;  %v3587_v57 = vrot.slane %v3586_v19, 2  ;;  %v3625_v38 = vadd.f32 %v3624_v50, %v3623_v47  ;;  %v9324_v28 = vsel %vm2940_vm5, %v4076_v11, %v4072_v42 }
 0x3e2   :  { %v3613_v45 = vrot.slane %v3612_v8, 2  ;;  %v3632_v2 = vmul.f32 0.015625, %v3564_v46  ;;  %v3631_v55 = vmul.f32 0.015625, %v3551_v18  ;;  %v3633_v41 = vmul.f32 0.015625, %v3577_v24 }
 0x3e3   :  { %v3600_v5 = vrot.slane %v3599_v36, 2  ;;  %v3588_v37 = vadd.f32 %v3587_v57, %v3586_v19  ;;  %v3626_v34 = vrot.slane %v3625_v38, 2  ;;  %v3689_v6 = vpack.c.bf16 %v3630_v26, %v3630_v26 }
 0x3e4   :  { %v3614_v20 = vadd.f32 %v3613_v45, %v3612_v8  ;;  %v3691_v3 = vpack.c.bf16 %v3632_v2, %v3632_v2  ;;  %v3690_v53 = vpack.c.bf16 %v3631_v55, %v3631_v55  ;;  %v3692_v40 = vpack.c.bf16 %v3633_v41, %v3633_v41 }
 0x3e5   :  { %v3601_v25 = vadd.f32 %v3600_v5, %v3599_v36  ;;  %v3589_v21 = vrot.slane %v3588_v37, 1  ;;  %v3627_v61 = vadd.f32 %v3626_v34, %v3625_v38  ;;  %v3769_v46 = vunpack.c.l.b16 %v3689_v6  ;;  %v7562_v6 = vld [vmem:[%s10161_s7 + $0x30] sm:$0xff]  }
 0x3e6   :  { %v3615_v9 = vrot.slane %v3614_v20, 1  ;;  %v3771_v27 = vunpack.c.l.b16 %v3691_v3  ;;  %v3770_v50 = vunpack.c.l.b16 %v3690_v53  ;;  %v3772_v57 = vunpack.c.l.b16 %v3692_v40 }
 0x3e7   :  { %v3602_v58 = vrot.slane %v3601_v25, 1  ;;  %v3590_v49 = vadd.f32 %v3589_v21, %v3588_v37  ;;  %v3628_v60 = vrot.slane %v3627_v61, 1  ;;  %v3646_v45 = vcombine.low %v3630_v26, %v3631_v55  ;;  %v7558_v26 = vld [vmem:[%s10161_s7 + $0x38] sm:$0xff]  }
 0x3e8   :  { %v3616_v51 = vadd.f32 %v3615_v9, %v3614_v20  ;;  %v3647_v5 = vcombine.low %v3632_v2, %v3633_v41  ;;  %v10189_v24 = vcombine.low %v9202_v52, %v9208_v48  ;;  %v10190_v34 = vcombine.low %v9206_v16, %v9210_v0  ;;  %v7559_v52 = vld [vmem:[%s10161_s7 + $0xb8] sm:$0xff]   ;;  %v7560_v16 = vld [vmem:[%s10161_s7 + $0x70] sm:$0xff]  }
 0x3e9   :  { %v3603_v56 = vadd.f32 %v3602_v58, %v3601_v25  ;;  %v3634_v12 = vmul.f32 0.015625, %v3590_v49  ;;  %v3629_v17 = vadd.f32 %v3628_v60, %v3627_v61  ;;  %v3654_v0 = vrot.slane %v3646_v45, %v9117_v39  ;;  %v7561_v49 = vld [vmem:[%s10161_s7 + $0xf0] sm:$0xff]  }
 0x3ea   :  { %v3636_v32 = vmul.f32 0.015625, %v3616_v51  ;;  %v2926_v37 = vrot.slane %v10189_v24, %v9117_v39  ;;  %v2933_v20 = vrot.slane %v10190_v34, %v9117_v39  ;;  %v3661_v58 = vrot.slane %v3647_v5, %v9117_v39  ;;  %v7563_v51 = vld [vmem:[%s10161_s7 + $0xb0] sm:$0xff]   ;;  %v7582_v24 = vld [vmem:[%s10161_s7 + $0x8] sm:$0xff]   ;;  %v7584_v34 = vld [vmem:[%s10161_s7 + $0x40] sm:$0xff]  }
 0x3eb   :  { %v3635_v1 = vmul.f32 0.015625, %v3603_v56  ;;  %v3693_v7 = vpack.c.bf16 %v3634_v12, %v3634_v12  ;;  %v3637_v47 = vmul.f32 0.015625, %v3629_v17  ;;  %v4082_v41 = vpack.c.b16 %v9315_v62, %v9315_v62  ;;  %v7564_v62 = vld [vmem:[%s10161_s7 + $0x68] sm:$0xff]   ;;  %v7578_v45 = vld [vmem:[%s10161_s7 + $0x10] sm:$0xff]  }
 0x3ec   :  { %v3695_v4 = vpack.c.bf16 %v3636_v32, %v3636_v32  ;;  %v4084_v60 = vpack.c.b16 %v9324_v28, %v9324_v28  ;;  %v2934_v56 = vcombine.low %v2926_v37, %v2933_v20  ;;  %v7565_v28 = vld [vmem:[%s10161_s7 + $0xe8] sm:$0xff]   ;;  %v7579_v5 = vld [vmem:[%s10161_s7 + $0x90] sm:$0xff]   ;;  %v7585_v20 = vld [vmem:[%s10161_s7 + $0xc0] sm:$0xff]  }
 0x3ed   :  { %v3694_v54 = vpack.c.bf16 %v3635_v1, %v3635_v1  ;;  %v3773_v19 = vunpack.c.l.b16 %v3693_v7  ;;  %v3696_v63 = vpack.c.bf16 %v3637_v47, %v3637_v47  ;;  %v3663_v8 = vcombine.low %v3634_v12, %v3635_v1  ;;  %v7567_v1 = vld [vmem:[%s10161_s7 + $0xa8] sm:$0xff]   ;;  %v7568_v7 = vld [vmem:[%s10161_s7 + $0x60] sm:$0xff]  }
 0x3ee   :  { %v3775_v30 = vunpack.c.l.b16 %v3695_v4  ;;  %v3664_v36 = vcombine.low %v3636_v32, %v3637_v47  ;;  %v3662_v12 = vcombine.low %v3654_v0, %v3661_v58  ;;  %v2939_v17 = vrot.slane %v2934_v56, 7  ;;  %v7566_v32 = vld [vmem:[%s10161_s7 + $0x28] sm:$0xff]   ;;  %v7569_v4 = vld [vmem:[%s10161_s7 + $0xe0] sm:$0xff]  }
 0x3ef   :  { %v3774_v59 = vunpack.c.l.b16 %v3694_v54  ;;  %v3777_v18 = vsel %vm2940_vm5, %v3773_v19, %v3769_v46  ;;  %v3776_v38 = vunpack.c.l.b16 %v3696_v63  ;;  %v3671_v55 = vrot.slane %v3663_v8, %v9117_v39  ;;  %v7572_v8 = vld [vmem:[%s10161_s7 + $0x58] sm:$0xff]   ;;  %v7583_v37 = vld [vmem:[%s10161_s7 + $0x88] sm:$0xff]   ;;  %v4381_v56 = vld [vmem:[%s10159_s5 + $0x2a0] sm:$0xff] }
 0x3f0   :  { %v3779_v42 = vsel %vm2940_vm5, %v3775_v30, %v3771_v27  ;;  %v3781_v2 = vpack.c.b16 %v3777_v18, %v3777_v18  ;;  %v3678_v61 = vrot.slane %v3664_v36, %v9117_v39  ;;  %v10191_v47 = vcombine.low %v9159_v14, %v9162_v15  ;;  %v7570_v14 = vld [vmem:[%s10161_s7 + $0x20] sm:$0xff]   ;;  %v7573_v36 = vld [vmem:[%s10161_s7 + $0xd8] sm:$0xff]   ;;  %v4386_v0 = vld [vmem:[%s10159_s5 + $0x328] sm:$0xff] }
 0x3f1   :  { %v3778_v11 = vsel %vm2940_vm5, %v3774_v59, %v3770_v50  ;;  %v3780_v21 = vsel %vm2940_vm5, %v3776_v38, %v3772_v57  ;;  %v3783_v48 = vpack.c.b16 %v3779_v42, %v3779_v42  ;;  %v7571_v30 = vld [vmem:[%s10161_s7 + $0xa0] sm:$0xff]   ;;  %v7574_v59 = vld [vmem:[%s10161_s7 + $0x18] sm:$0xff]   ;;  %v7576_v57 = vld [vmem:[%s10161_s7 + $0x50] sm:$0xff]  }
 0x3f2   :  { %v3782_v25 = vpack.c.b16 %v3778_v11, %v3778_v11  ;;  %v3784_v9 = vpack.c.b16 %v3780_v21, %v3780_v21  ;;  %v3679_v3 = vcombine.low %v3671_v55, %v3678_v61  ;;  %v2941_v40 = vsel %vm2940_vm5, %v2939_v17, %v10191_v47  ;;  %v7575_v18 = vld [vmem:[%s10161_s7 + $0x98] sm:$0xff]   ;;  %v7577_v38 = vld [vmem:[%s10161_s7 + $0xd0] sm:$0xff]   ;;  %v7580_v42 = vld [vmem:[%s10161_s7 + $0x48] sm:$0xff]  }
 0x3f3   :  { %v2943_v54 = vsel %vm2942_vm6, %v2939_v17, %v2941_v40  ;;  %v7581_v11 = vld [vmem:[%s10161_s7 + $0xc8] sm:$0xff]   ;;  %v4391_v21 = vld [vmem:[%s10159_s5 + $0x3e0] sm:$0xff] }
 0x3f4   :  { %4013 = vmatprep.mubr.bf16.mxu1 %v3782_v25  ;;  %4053 = vmatprep.mubr.bf16.mxu0 %v3784_v9  ;;  %v3682_v53 = vrot.slane %v3679_v3, 7  ;;  %v2945_v19 = vsel %vm2944_vm7, %v2939_v17, %v2943_v54  ;;  %v4389_v25 = vld [vmem:[%s10159_s5 + $0x3a0] sm:$0xff]  ;;  %v4388_v58 = vld [vmem:[%s10159_s5 + $0x368] sm:$0xff] }
 0x3f5   :  { %4014 = vmatmul.mubr.bf16.vlgmr.msra.gmra.mxu1 %v3781_v2  ;;  %4054 = vmatmul.mubr.bf16.vlgmr.msra.gmra.mxu0 %v3783_v48  ;;  %v2947_v15 = vsel %vm2946_vm8, %v2939_v17, %v2945_v19  ;;  %v4392_v2 = vld [vmem:[%s10159_s5 + $0x3e8] sm:$0xff]  ;;  %v7586_v55 = vld [vmem:[%s10161_s7] sm:$0xff]   ;;  %v6843_v9 = vcombine.high %v4389_v25, %v4391_v21 }
 0x3f6   :  { %7226 = vmatpush3.bf16.msra.mxu1 %v7558_v26  ;;  %7248 = vmatpush3.bf16.msra.mxu0 %v7559_v52  ;;  %v3683_v46 = vsel %vm2940_vm5, %v3682_v53, %v3662_v12  ;;  %2949 = vst [vmem:[#allocation2] sm:$0xff] %v2947_v15  ;;  %v4390_v26 = vld [vmem:[%s10159_s5 + $0x3a8] sm:$0xff]  ;;  %v7587_v61 = vld [vmem:[%s10161_s7 + $0x80] sm:$0xff]   ;;  %v6840_v12 = vcombine.low %v4386_v0, %v4388_v58 }
 0x3f7   :  { %4313 = vmatprep.mubr.bf16.mxu1 %v4082_v41  ;;  %4353 = vmatprep.mubr.bf16.mxu0 %v4084_v60  ;;  %v3684_v27 = vsel %vm2942_vm6, %v3682_v53, %v3683_v46  ;;  %v6845_v52 = vcombine.high %v4390_v26, %v4392_v2  ;;  %v4385_v48 = vld [vmem:[%s10159_s5 + $0x320] sm:$0xff]  ;;  %v6842_v41 = vcombine.low %v4389_v25, %v4391_v21  ;;  %v4380_v47 = vld [vmem:[%s10159_s5 + $0x268] sm:$0xff] }
 0x3f8   :  { %7227 = vmatprep.subr.bf16.mxu1 %v7560_v16  ;;  %7249 = vmatprep.subr.bf16.mxu0 %v7561_v49  ;;  %v3685_v50 = vsel %vm2944_vm7, %v3682_v53, %v3684_v27  ;;  %v4387_v16 = vld [vmem:[%s10159_s5 + $0x360] sm:$0xff]  ;;  %v4081_v49 = vpack.c.b16 %v9311_v35, %v9311_v35  ;;  %v6844_v60 = vcombine.low %v4390_v26, %v4392_v2  ;;  %v4382_v35 = vld [vmem:[%s10159_s5 + $0x2a8] sm:$0xff] }
 0x3f9   :  { %v3686_v63 = vsel %vm2946_vm8, %v3682_v53, %v3685_v50  ;;  %v4383_v3 = vld [vmem:[%s10159_s5 + $0x2e0] sm:$0xff]  ;;  %v4374_v50 = vld [vmem:[%s10159_s5 + $0x1a8] sm:$0xff] }
 0x3fa   :  { %7228 = vmatpush3.bf16.msra.mxu1 %v7562_v6  ;;  %7250 = vmatpush3.bf16.msra.mxu0 %v7563_v51  ;;  %3688 = vst [vmem:[#allocation2 + $0x8] sm:$0xff] %v3686_v63  ;;  %v6839_v6 = vcombine.high %v4385_v48, %v4387_v16  ;;  %v4083_v51 = vpack.c.b16 %v9321_v33, %v9321_v33  ;;  %v4373_v27 = vld [vmem:[%s10159_s5 + $0x1a0] sm:$0xff] }
 0x3fb   :  { %7229 = vmatprep.subr.bf16.mxu1 %v7564_v62  ;;  %7251 = vmatprep.subr.bf16.mxu0 %v7565_v28  ;;  %v6841_v62 = vcombine.high %v4386_v0, %v4388_v58  ;;  %v4384_v28 = vld [vmem:[%s10159_s5 + $0x2e8] sm:$0xff]  ;;  %v6838_v33 = vcombine.low %v4385_v48, %v4387_v16  ;;  %v6835_v17 = vcombine.high %v4381_v56, %v4383_v3  ;;  %v4375_v19 = vld [vmem:[%s10159_s5 + $0x1e0] sm:$0xff] }
 0x3fc   :  { %v6837_v53 = vcombine.high %v4382_v35, %v4384_v28  ;;  %v6834_v40 = vcombine.low %v4381_v56, %v4383_v3  ;;  %v6836_v46 = vcombine.low %v4382_v35, %v4384_v28  ;;  %v4361_v2 = vld [vmem:[%s10159_s5 + $0x20] sm:$0xff]  ;;  %v7592_v56 = vld [vmem:[%s10161_s7 + $0x270] sm:$0xff]  }
 0x3fd   :  { %v7593_v3 = vld [vmem:[%s10161_s7 + $0x2f0] sm:$0xff]  }
 0x3fe   :  { %7230 = vmatpush3.bf16.msra.mxu1 %v7566_v32  ;;  %7252 = vmatpush3.bf16.msra.mxu0 %v7567_v1  ;;  %v4377_v32 = vld [vmem:[%s10159_s5 + $0x220] sm:$0xff]  ;;  %v7594_v35 = vld [vmem:[%s10161_s7 + $0x230] sm:$0xff]  }
 0x3ff   :  { %7231 = vmatprep.subr.bf16.mxu1 %v7568_v7  ;;  %7253 = vmatprep.subr.bf16.mxu0 %v7569_v4  ;;  %v4379_v1 = vld [vmem:[%s10159_s5 + $0x260] sm:$0xff]  ;;  %v4378_v7 = vld [vmem:[%s10159_s5 + $0x228] sm:$0xff]  ;;  %v7595_v28 = vld [vmem:[%s10161_s7 + $0x2b0] sm:$0xff]  }
 0x400   :  { %v6831_v4 = vcombine.high %v4377_v32, %v4379_v1  ;;  %v6833_v54 = vcombine.high %v4378_v7, %v4380_v47  ;;  %v6830_v15 = vcombine.low %v4377_v32, %v4379_v1  ;;  %v6832_v63 = vcombine.low %v4378_v7, %v4380_v47  ;;  %v7600_v32 = vld [vmem:[%s10161_s7 + $0x260] sm:$0xff]  }
 0x401   :  { %v7601_v1 = vld [vmem:[%s10161_s7 + $0x2e0] sm:$0xff]  }
 0x402   :  { %7232 = vmatpush3.bf16.msra.mxu1 %v7570_v14  ;;  %7254 = vmatpush3.bf16.msra.mxu0 %v7571_v30  ;;  %v4376_v14 = vld [vmem:[%s10159_s5 + $0x1e8] sm:$0xff]  ;;  %v6827_v30 = vcombine.high %v4373_v27, %v4375_v19  ;;  %v7602_v7 = vld [vmem:[%s10161_s7 + $0x220] sm:$0xff]  }
 0x403   :  { %7233 = vmatprep.subr.bf16.mxu1 %v7572_v8  ;;  %7255 = vmatprep.subr.bf16.mxu0 %v7573_v36  ;;  %v6829_v8 = vcombine.high %v4374_v50, %v4376_v14  ;;  %v4369_v36 = vld [vmem:[%s10159_s5 + $0x120] sm:$0xff] }
 0x404   :  { %v7603_v47 = vld [vmem:[%s10161_s7 + $0x2a0] sm:$0xff]  }
 0x406   :  { %7234 = vmatpush3.bf16.msra.mxu1 %v7574_v59  ;;  %7256 = vmatpush3.bf16.msra.mxu0 %v7575_v18  ;;  %v4371_v59 = vld [vmem:[%s10159_s5 + $0x160] sm:$0xff]  ;;  %v4370_v18 = vld [vmem:[%s10159_s5 + $0x128] sm:$0xff] }
 0x407   :  { %7235 = vmatprep.subr.bf16.mxu1 %v7576_v57  ;;  %7257 = vmatprep.subr.bf16.mxu0 %v7577_v38  ;;  %v4372_v57 = vld [vmem:[%s10159_s5 + $0x168] sm:$0xff]  ;;  %v6826_v38 = vcombine.low %v4373_v27, %v4375_v19 }
 0x408   :  { %v6824_v25 = vcombine.low %v4370_v18, %v4372_v57 }
 0x40a   :  { %7236 = vmatpush3.bf16.msra.mxu1 %v7578_v45  ;;  %7258 = vmatpush3.bf16.msra.mxu0 %v7579_v5  ;;  %v6828_v45 = vcombine.low %v4374_v50, %v4376_v14  ;;  %v6823_v5 = vcombine.high %v4369_v36, %v4371_v59  ;;  %v7606_v14 = vld [vmem:[%s10161_s7 + $0x218] sm:$0xff]  }
 0x40b   :  { %7237 = vmatprep.subr.bf16.mxu1 %v7580_v42  ;;  %7259 = vmatprep.subr.bf16.mxu0 %v7581_v11  ;;  %v6825_v42 = vcombine.high %v4370_v18, %v4372_v57  ;;  %v4365_v11 = vld [vmem:[%s10159_s5 + $0xa0] sm:$0xff]  ;;  %v7608_v57 = vld [vmem:[%s10161_s7 + $0x250] sm:$0xff]  }
 0x40e   :  { %7238 = vmatpush3.bf16.msra.mxu1 %v7582_v24  ;;  %7260 = vmatpush3.bf16.msra.mxu0 %v7583_v37  ;;  %v4367_v24 = vld [vmem:[%s10159_s5 + $0xe0] sm:$0xff]  ;;  %v4366_v37 = vld [vmem:[%s10159_s5 + $0xa8] sm:$0xff] }
 0x40f   :  { %7239 = vmatprep.subr.bf16.mxu1 %v7584_v34  ;;  %7261 = vmatprep.subr.bf16.mxu0 %v7585_v20  ;;  %v4368_v34 = vld [vmem:[%s10159_s5 + $0xe8] sm:$0xff]  ;;  %v6822_v20 = vcombine.low %v4369_v36, %v4371_v59  ;;  %v6819_v21 = vcombine.high %v4365_v11, %v4367_v24 }
 0x410   :  { %v6821_v26 = vcombine.high %v4366_v37, %v4368_v34  ;;  %v6820_v48 = vcombine.low %v4366_v37, %v4368_v34  ;;  %v7615_v37 = vld [vmem:[%s10161_s7 + $0x288] sm:$0xff]   ;;  %v7616_v34 = vld [vmem:[%s10161_s7 + $0x240] sm:$0xff]  }
 0x412   :  { %7240 = vmatpush3.bf16.msra.mxu1 %v7586_v55  ;;  %7262 = vmatpush3.bf16.msra.mxu0 %v7587_v61  ;;  %v4363_v55 = vld [vmem:[%s10159_s5 + $0x60] sm:$0xff]  ;;  %v4362_v61 = vld [vmem:[%s10159_s5 + $0x28] sm:$0xff] }
 0x413   :  { %4575 = vmatprep.subr.bf16.mxu1 %v6843_v9  ;;  %4688 = vmatprep.subr.bf16.mxu0 %v6845_v52  ;;  %v4364_v9 = vld [vmem:[%s10159_s5 + $0x68] sm:$0xff]  ;;  %v6818_v52 = vcombine.low %v4365_v11, %v4367_v24  ;;  %v6815_v16 = vcombine.high %v4361_v2, %v4363_v55  ;;  %v6814_v58 = vcombine.low %v4361_v2, %v4363_v55  ;;  %v9689_v55 = vld [vmem:[%s10159_s5 + $0x3f8] sm:$0xff] }
 0x414   :  { %v6817_v0 = vcombine.high %v4362_v61, %v4364_v9  ;;  %v7613_v11 = vld [vmem:[%s10161_s7 + $0x2c8] sm:$0xff]  }
 0x415   :  { %4314 = vmatmul.mubr.bf16.vlgmr.msra.gmra.mxu1 %v4081_v49  ;;  %4354 = vmatmul.mubr.bf16.vlgmr.msra.gmra.mxu0 %v4083_v51  ;;  %v10192_v49 = vld [vmem:[#allocation8_spill] sm:$0xff]  ;;  %v7590_v51 = vld [vmem:[%s10161_s7 + $0x238] sm:$0xff]  }
 0x416   :  { %4576 = vmatpush1.bf16.msra.mxu1 %v6842_v41  ;;  %4689 = vmatpush1.bf16.msra.mxu0 %v6844_v60  ;;  %v6816_v41 = vcombine.low %v4362_v61, %v4364_v9  ;;  %v7588_v60 = vld [vmem:[%s10161_s7 + $0x278] sm:$0xff]   ;;  %v7614_v24 = vld [vmem:[%s10161_s7 + $0x208] sm:$0xff]   ;;  %v7618_v9 = vld [vmem:[%s10161_s7 + $0x200] sm:$0xff]  }
 0x417   :  { %4577 = vmatprep.subr.bf16.mxu1 %v6839_v6  ;;  %4690 = vmatprep.subr.bf16.mxu0 %v6841_v62  ;;  %v7589_v6 = vld [vmem:[%s10161_s7 + $0x2f8] sm:$0xff]  }
 0x418   :  { %4607 = vmatprep.mubr.bf16.mxu1 %v10181_v13  ;;  %4720 = vmatprep.mubr.bf16.mxu0 %v10181_v13  ;;  %v7591_v62 = vld [vmem:[%s10161_s7 + $0x2b8] sm:$0xff]  }
 0x41a   :  { %4578 = vmatpush1.bf16.msra.mxu1 %v6838_v33  ;;  %4691 = vmatpush1.bf16.msra.mxu0 %v6840_v12  ;;  %v7596_v33 = vld [vmem:[%s10161_s7 + $0x268] sm:$0xff]  }
 0x41b   :  { %4579 = vmatprep.subr.bf16.mxu1 %v6835_v17  ;;  %4692 = vmatprep.subr.bf16.mxu0 %v6837_v53  ;;  %v7597_v12 = vld [vmem:[%s10161_s7 + $0x2e8] sm:$0xff]  }
 0x41c   :  { %v7598_v17 = vld [vmem:[%s10161_s7 + $0x228] sm:$0xff]  }
 0x41d   :  { %v7599_v53 = vld [vmem:[%s10161_s7 + $0x2a8] sm:$0xff]  }
 0x41e   :  { %4580 = vmatpush1.bf16.msra.mxu1 %v6834_v40  ;;  %4693 = vmatpush1.bf16.msra.mxu0 %v6836_v46 }
 0x41f   :  { %4581 = vmatprep.subr.bf16.mxu1 %v6831_v4  ;;  %4694 = vmatprep.subr.bf16.mxu0 %v6833_v54  ;;  %v7604_v4 = vld [vmem:[%s10161_s7 + $0x258] sm:$0xff]  }
 0x420   :  { %v7605_v54 = vld [vmem:[%s10161_s7 + $0x2d8] sm:$0xff]  }
 0x422   :  { %4582 = vmatpush1.bf16.msra.mxu1 %v6830_v15  ;;  %4695 = vmatpush1.bf16.msra.mxu0 %v6832_v63  ;;  %v7607_v15 = vld [vmem:[%s10161_s7 + $0x298] sm:$0xff]  }
 0x423   :  { %4583 = vmatprep.subr.bf16.mxu1 %v6827_v30  ;;  %4696 = vmatprep.subr.bf16.mxu0 %v6829_v8 }
 0x426   :  { %4584 = vmatpush1.bf16.msra.mxu1 %v6826_v38  ;;  %4697 = vmatpush1.bf16.msra.mxu0 %v6828_v45  ;;  %v7609_v38 = vld [vmem:[%s10161_s7 + $0x2d0] sm:$0xff]  }
 0x427   :  { %4585 = vmatprep.subr.bf16.mxu1 %v6823_v5  ;;  %4698 = vmatprep.subr.bf16.mxu0 %v6825_v42  ;;  %v7610_v45 = vld [vmem:[%s10161_s7 + $0x210] sm:$0xff]   ;;  %v7612_v42 = vld [vmem:[%s10161_s7 + $0x248] sm:$0xff]  }
 0x428   :  { %v7611_v5 = vld [vmem:[%s10161_s7 + $0x290] sm:$0xff]  }
 0x42a   :  { %4586 = vmatpush1.bf16.msra.mxu1 %v6822_v20  ;;  %4699 = vmatpush1.bf16.msra.mxu0 %v6824_v25  ;;  %v7617_v20 = vld [vmem:[%s10161_s7 + $0x2c0] sm:$0xff]   ;;  %v9672_v25 = vld [vmem:[%s10159_s5 + $0x3b0] sm:$0xff] }
 0x42b   :  { %4587 = vmatprep.subr.bf16.mxu1 %v6819_v21  ;;  %4700 = vmatprep.subr.bf16.mxu0 %v6821_v26  ;;  %v9677_v21 = vld [vmem:[%s10159_s5 + $0x3f0] sm:$0xff]  ;;  %v9682_v26 = vld [vmem:[%s10159_s5 + $0x3b8] sm:$0xff] }
 0x42c   :  { %v6906_v2 = vcombine.low %v9672_v25, %v9677_v21 }
 0x42e   :  { %4588 = vmatpush1.bf16.msra.mxu1 %v6818_v52  ;;  %4701 = vmatpush1.bf16.msra.mxu0 %v6820_v48  ;;  %v7619_v52 = vld [vmem:[%s10161_s7 + $0x280] sm:$0xff]  }
 0x42f   :  { %4589 = vmatprep.subr.bf16.mxu1 %v6815_v16  ;;  %4702 = vmatprep.subr.bf16.mxu0 %v6817_v0  ;;  %v6907_v16 = vcombine.high %v9672_v25, %v9677_v21  ;;  %v6909_v0 = vcombine.high %v9682_v26, %v9689_v55  ;;  %v5419_v25 = vld [vmem:[%s10159_s5 + $0x270] sm:$0xff] }
 0x432   :  { %4590 = vmatpush1.bf16.msra.mxu1 %v6814_v58  ;;  %4703 = vmatpush1.bf16.msra.mxu0 %v6816_v41 }
 0x433   :  { %7269 = vmatprep.subr.bf16.mxu1 %v7588_v60  ;;  %7291 = vmatprep.subr.bf16.mxu0 %v7589_v6 }
 0x435   :  { %4608 = vmatmul.mubr.bf16.vlgmr.msra.gmra.mxu1 %v8743_v29  ;;  %4721 = vmatmul.mubr.bf16.vlgmr.msra.gmra.mxu0 %v8743_v29 }
 0x436   :  { %4617 = vmatprep.mubr.bf16.mxu1 %v10181_v13  ;;  %4730 = vmatprep.mubr.bf16.mxu0 %v10181_v13 }
 0x437   :  { %7270 = vmatpush3.bf16.msra.mxu1 %v7590_v51  ;;  %7292 = vmatpush3.bf16.msra.mxu0 %v7591_v62 }
 0x438   :  { %7271 = vmatprep.subr.bf16.mxu1 %v7592_v56  ;;  %7293 = vmatprep.subr.bf16.mxu0 %v7593_v3 }
 0x43b   :  { %7272 = vmatpush3.bf16.msra.mxu1 %v7594_v35  ;;  %7294 = vmatpush3.bf16.msra.mxu0 %v7595_v28 }
 0x43c   :  { %7273 = vmatprep.subr.bf16.mxu1 %v7596_v33  ;;  %7295 = vmatprep.subr.bf16.mxu0 %v7597_v12 }
 0x43d   :  { %4618 = vmatmul.mubr.bf16.gmra.mxu1 %v8797_v22  ;;  %4731 = vmatmul.mubr.bf16.gmra.mxu0 %v8797_v22 }
 0x43e   :  { %4627 = vmatprep.mubr.bf16.mxu1 %v10181_v13  ;;  %4740 = vmatprep.mubr.bf16.mxu0 %v10181_v13 }
 0x43f   :  { %7274 = vmatpush3.bf16.msra.mxu1 %v7598_v17  ;;  %7296 = vmatpush3.bf16.msra.mxu0 %v7599_v53 }
 0x440   :  { %7275 = vmatprep.subr.bf16.mxu1 %v7600_v32  ;;  %7297 = vmatprep.subr.bf16.mxu0 %v7601_v1 }
 0x443   :  { %7276 = vmatpush3.bf16.msra.mxu1 %v7602_v7  ;;  %7298 = vmatpush3.bf16.msra.mxu0 %v7603_v47  ;;  %v4393_v7 = vld [vmem:[%s10160_s6 + $0x8] sm:$0xf] }
 0x444   :  { %7277 = vmatprep.subr.bf16.mxu1 %v7604_v4  ;;  %7299 = vmatprep.subr.bf16.mxu0 %v7605_v54  ;;  %v10193_v4 = vld [vmem:[#allocation9_spill] sm:$0xff] }
 0x445   :  { %4628 = vmatmul.mubr.bf16.gmra.mxu1 %v8838_v31  ;;  %4741 = vmatmul.mubr.bf16.gmra.mxu0 %v8838_v31  ;;  %v9709_v54 = vrot.slane %v4393_v7, %v10193_v4 }
 0x446   :  { %4637 = vmatprep.mubr.bf16.mxu1 %v10181_v13  ;;  %4750 = vmatprep.mubr.bf16.mxu0 %v10181_v13 }
 0x447   :  { %7278 = vmatpush3.bf16.msra.mxu1 %v7606_v14  ;;  %7300 = vmatpush3.bf16.msra.mxu0 %v7607_v15  ;;  %v10195_v14 = vld [vmem:[#allocation11_spill] sm:$0xff] }
 0x448   :  { %7279 = vmatprep.subr.bf16.mxu1 %v7608_v57  ;;  %7301 = vmatprep.subr.bf16.mxu0 %v7609_v38  ;;  %v9715_v15 = vrot.slane %v4393_v7, %v10195_v14 }
 0x44b   :  { %7280 = vmatpush3.bf16.msra.mxu1 %v7610_v45  ;;  %7302 = vmatpush3.bf16.msra.mxu0 %v7611_v5 }
 0x44c   :  { %7281 = vmatprep.subr.bf16.mxu1 %v7612_v42  ;;  %7303 = vmatprep.subr.bf16.mxu0 %v7613_v11 }
 0x44d   :  { %4638 = vmatmul.mubr.bf16.gmra.mxu1 %v8875_v44  ;;  %4751 = vmatmul.mubr.bf16.gmra.mxu0 %v8875_v44 }
 0x44e   :  { %4647 = vmatprep.mubr.bf16.mxu1 %v10181_v13  ;;  %4760 = vmatprep.mubr.bf16.mxu0 %v10181_v13 }
 0x44f   :  { %7282 = vmatpush3.bf16.msra.mxu1 %v7614_v24  ;;  %7304 = vmatpush3.bf16.msra.mxu0 %v7615_v37 }
 0x450   :  { %7283 = vmatprep.subr.bf16.mxu1 %v7616_v34  ;;  %7305 = vmatprep.subr.bf16.mxu0 %v7617_v20 }
 0x453   :  { %7284 = vmatpush3.bf16.msra.mxu1 %v7618_v9  ;;  %7306 = vmatpush3.bf16.msra.mxu0 %v7619_v52 }
 0x454   :  { %5615 = vmatprep.subr.bf16.mxu1 %v6907_v16  ;;  %5728 = vmatprep.subr.bf16.mxu0 %v6909_v0 }
 0x455   :  { %4648 = vmatmul.mubr.bf16.gmra.mxu1 %v8886_v43  ;;  %4761 = vmatmul.mubr.bf16.gmra.mxu0 %v8886_v43 }
 0x456   :  { %4657 = vmatprep.mubr.bf16.mxu1 %v10181_v13  ;;  %4770 = vmatprep.mubr.bf16.mxu0 %v10181_v13 }
 0x45d   :  { %4658 = vmatmul.mubr.bf16.gmra.mxu1 %v8898_v10  ;;  %4771 = vmatmul.mubr.bf16.gmra.mxu0 %v8898_v10 }
 0x45e   :  { %4667 = vmatprep.mubr.bf16.mxu1 %v10181_v13  ;;  %4780 = vmatprep.mubr.bf16.mxu0 %v10181_v13 }
 0x465   :  { %4668 = vmatmul.mubr.bf16.gmra.mxu1 %v8909_v23  ;;  %4781 = vmatmul.mubr.bf16.gmra.mxu0 %v8909_v23 }
 0x466   :  { %4677 = vmatprep.mubr.bf16.mxu1 %v10181_v13  ;;  %4790 = vmatprep.mubr.bf16.mxu0 %v10181_v13 }
 0x46d   :  { %4678 = vmatmul.mubr.bf16.gmra.mxu1 %v10192_v49  ;;  %4791 = vmatmul.mubr.bf16.gmra.mxu0 %v10192_v49 }
 0x4b5   :  { %v7197_v40 = vpop.f32.mrf.mxu1  ;;  %v7219_v46 = vpop.f32.mrf.mxu0 }
 0x4b7   :  { %v7198_v27 = vpop.f32.mrf.mxu1  ;;  %v7220_v50 = vpop.f32.mrf.mxu0 }
 0x4b8   :  { %v7199_v19 = vadd.f32 %v7198_v27, %v7197_v40  ;;  %v7221_v63 = vadd.f32 %v7220_v50, %v7219_v46  ;;  %v10194_v27 = vld [vmem:[#allocation10_spill] sm:$0xff] }
 0x4b9   :  { %v7200_v30 = vpop.f32.mrf.mxu1  ;;  %v7222_v8 = vpop.f32.mrf.mxu0 }
 0x4ba   :  { %v4056_v36 = vadd.f32 %v7221_v63, %v7199_v19  ;;  %v9712_v19 = vrot.slane %v4393_v7, %v10194_v27  ;;  %v10196_v63 = vld [vmem:[#allocation12_spill] sm:$0xff] }
 0x4bb   :  { %v7201_v59 = vpop.f32.mrf.mxu1  ;;  %v7223_v18 = vpop.f32.mrf.mxu0  ;;  %v9718_v30 = vrot.slane %v4393_v7, %v10196_v63 }
 0x4d5   :  { %v7241_v48 = vpop.f32.mrf.mxu1  ;;  %v7263_v58 = vpop.f32.mrf.mxu0 }
 0x4d7   :  { %v7242_v41 = vpop.f32.mrf.mxu1  ;;  %v7264_v6 = vpop.f32.mrf.mxu0 }
 0x4d8   :  { %v7243_v60 = vadd.f32 %v7242_v41, %v7241_v48  ;;  %v7265_v51 = vadd.f32 %v7264_v6, %v7263_v58 }
 0x4d9   :  { %v7244_v62 = vpop.f32.mrf.mxu1  ;;  %v7266_v3 = vpop.f32.mrf.mxu0 }
 0x4da   :  { %v4316_v56 = vadd.f32 %v7243_v60, %v4056_v36 }
 0x4db   :  { %v7245_v35 = vpop.f32.mrf.mxu1  ;;  %v7267_v33 = vpop.f32.mrf.mxu0 }
 0x4dc   :  { %v9703_v28 = vadd.f32 %v7265_v51, %v4316_v56 }
 0x4f5   :  { %v4609_v12 = vpop.f32.mrf.mxu1  ;;  %v4722_v17 = vpop.f32.mrf.mxu0 }
 0x4f6   :  { %v4610_v45 = vadd.f32 %v4609_v12, %v9709_v54  ;;  %v4723_v5 = vadd.f32 %v4722_v17, %v9712_v19 }
 0x4f7   :  { %v4611_v53 = vpop.f32.mrf.mxu1  ;;  %v4724_v32 = vpop.f32.mrf.mxu0 }
 0x4f8   :  { %v4612_v11 = vadd.f32 %v4611_v53, %v9715_v15  ;;  %v4725_v24 = vadd.f32 %v4724_v32, %v9718_v30  ;;  %v4801_v6 = vmax.f32 %v4610_v45, 0.0  ;;  %v4803_v51 = vmax.f32 %v4723_v5, 0.0 }
 0x4f9   :  { %v4613_v1 = vpop.f32.mrf.mxu1  ;;  %v4726_v47 = vpop.f32.mrf.mxu0 }
 0x4fa   :  { %v4614_v36 = vadd.f32 %v4613_v1, %v9709_v54  ;;  %v4727_v59 = vadd.f32 %v4726_v47, %v9712_v19  ;;  %v4802_v35 = vmax.f32 %v4612_v11, 0.0  ;;  %v4804_v33 = vmax.f32 %v4725_v24, 0.0 }
 0x4fb   :  { %v4615_v40 = vpop.f32.mrf.mxu1  ;;  %v4728_v46 = vpop.f32.mrf.mxu0 }
 0x4fc   :  { %v4616_v57 = vadd.f32 %v4615_v40, %v9715_v15  ;;  %v4729_v37 = vadd.f32 %v4728_v46, %v9718_v30  ;;  %v4805_v20 = vmax.f32 %v4614_v36, 0.0  ;;  %v4807_v9 = vmax.f32 %v4727_v59, 0.0 }
 0x4fd   :  { %v4619_v50 = vpop.f32.mrf.mxu1  ;;  %v4732_v8 = vpop.f32.mrf.mxu0 }
 0x4fe   :  { %v4620_v52 = vadd.f32 %v4619_v50, %v9709_v54  ;;  %v4733_v48 = vadd.f32 %v4732_v8, %v9712_v19  ;;  %v4806_v0 = vmax.f32 %v4616_v57, 0.0  ;;  %v4808_v12 = vmax.f32 %v4729_v37, 0.0 }
 0x4ff   :  { %v4621_v18 = vpop.f32.mrf.mxu1  ;;  %v4734_v38 = vpop.f32.mrf.mxu0  ;;  %v4865_v32 = vadd.f32 %v4805_v20, %v4801_v6  ;;  %v4891_v1 = vadd.f32 %v4807_v9, %v4803_v51 }
 0x500   :  { %v4622_v58 = vadd.f32 %v4621_v18, %v9715_v15  ;;  %v4735_v41 = vadd.f32 %v4734_v38, %v9718_v30  ;;  %v4809_v7 = vmax.f32 %v4620_v52, 0.0  ;;  %v4811_v47 = vmax.f32 %v4733_v48, 0.0 }
 0x501   :  { %v4623_v42 = vpop.f32.mrf.mxu1  ;;  %v4736_v34 = vpop.f32.mrf.mxu0  ;;  %v4878_v46 = vadd.f32 %v4806_v0, %v4802_v35 }
 0x502   :  { %v4624_v62 = vadd.f32 %v4623_v42, %v9709_v54  ;;  %v4737_v56 = vadd.f32 %v4736_v34, %v9712_v19  ;;  %v4810_v50 = vmax.f32 %v4622_v58, 0.0  ;;  %v4812_v8 = vmax.f32 %v4735_v41, 0.0 }
 0x503   :  { %v4625_v16 = vpop.f32.mrf.mxu1  ;;  %v4738_v60 = vpop.f32.mrf.mxu0  ;;  %v4904_v42 = vadd.f32 %v4808_v12, %v4804_v33  ;;  %v4866_v20 = vadd.f32 %v4865_v32, %v4809_v7  ;;  %v4892_v9 = vadd.f32 %v4891_v1, %v4811_v47 }
 0x504   :  { %v4626_v17 = vadd.f32 %v4625_v16, %v9715_v15  ;;  %v4813_v18 = vmax.f32 %v4624_v62, 0.0  ;;  %v4815_v57 = vmax.f32 %v4737_v56, 0.0  ;;  %v4739_v38 = vadd.f32 %v4738_v60, %v9718_v30 }
 0x505   :  { %v4629_v3 = vpop.f32.mrf.mxu1  ;;  %v4742_v53 = vpop.f32.mrf.mxu0  ;;  %v4879_v0 = vadd.f32 %v4878_v46, %v4810_v50  ;;  %v4905_v58 = vadd.f32 %v4904_v42, %v4812_v8 }
 0x506   :  { %v4630_v36 = vadd.f32 %v4629_v3, %v9709_v54  ;;  %v4743_v45 = vadd.f32 %v4742_v53, %v9712_v19  ;;  %v4814_v11 = vmax.f32 %v4626_v17, 0.0  ;;  %v4867_v51 = vadd.f32 %v4866_v20, %v4813_v18 }
 0x507   :  { %v4631_v40 = vpop.f32.mrf.mxu1  ;;  %v4744_v59 = vpop.f32.mrf.mxu0  ;;  %v4893_v62 = vadd.f32 %v4892_v9, %v4815_v57  ;;  %v4816_v56 = vmax.f32 %v4739_v38, 0.0 }
 0x508   :  { %v4632_v24 = vadd.f32 %v4631_v40, %v9715_v15  ;;  %v4745_v52 = vadd.f32 %v4744_v59, %v9718_v30  ;;  %v4817_v41 = vmax.f32 %v4630_v36, 0.0  ;;  %v4819_v3 = vmax.f32 %v4743_v45, 0.0 }
 0x509   :  { %v4633_v5 = vpop.f32.mrf.mxu1  ;;  %v4746_v34 = vpop.f32.mrf.mxu0  ;;  %v4880_v33 = vadd.f32 %v4879_v0, %v4814_v11  ;;  %v4906_v57 = vadd.f32 %v4905_v58, %v4816_v56 }
 0x50a   :  { %v4634_v37 = vadd.f32 %v4633_v5, %v9709_v54  ;;  %v4747_v48 = vadd.f32 %v4746_v34, %v9712_v19  ;;  %v4818_v12 = vmax.f32 %v4632_v24, 0.0  ;;  %v4820_v1 = vmax.f32 %v4745_v52, 0.0 }
 0x50b   :  { %v4635_v16 = vpop.f32.mrf.mxu1  ;;  %v4748_v6 = vpop.f32.mrf.mxu0  ;;  %v4868_v50 = vadd.f32 %v4867_v51, %v4817_v41  ;;  %v4894_v38 = vadd.f32 %v4893_v62, %v4819_v3 }
 0x50c   :  { %v4636_v60 = vadd.f32 %v4635_v16, %v9715_v15  ;;  %v4821_v17 = vmax.f32 %v4634_v37, 0.0  ;;  %v4823_v7 = vmax.f32 %v4747_v48, 0.0  ;;  %v4749_v47 = vadd.f32 %v4748_v6, %v9718_v30 }
 0x50d   :  { %v4639_v35 = vpop.f32.mrf.mxu1  ;;  %v4752_v32 = vpop.f32.mrf.mxu0  ;;  %v4881_v11 = vadd.f32 %v4880_v33, %v4818_v12  ;;  %v4907_v9 = vadd.f32 %v4906_v57, %v4820_v1 }
 0x50e   :  { %v4640_v53 = vadd.f32 %v4639_v35, %v9709_v54  ;;  %v4753_v40 = vadd.f32 %v4752_v32, %v9712_v19  ;;  %v4822_v8 = vmax.f32 %v4636_v60, 0.0  ;;  %v4869_v24 = vadd.f32 %v4868_v50, %v4821_v17 }
 0x50f   :  { %v4641_v46 = vpop.f32.mrf.mxu1  ;;  %v4754_v18 = vpop.f32.mrf.mxu0  ;;  %v4895_v52 = vadd.f32 %v4894_v38, %v4823_v7  ;;  %v4824_v48 = vmax.f32 %v4749_v47, 0.0 }
 0x510   :  { %v4825_v36 = vmax.f32 %v4640_v53, 0.0  ;;  %v4642_v59 = vadd.f32 %v4641_v46, %v9715_v15  ;;  %v4827_v45 = vmax.f32 %v4753_v40, 0.0  ;;  %v4755_v5 = vadd.f32 %v4754_v18, %v9718_v30 }
 0x511   :  { %v4643_v42 = vpop.f32.mrf.mxu1  ;;  %v4756_v20 = vpop.f32.mrf.mxu0  ;;  %v4882_v41 = vadd.f32 %v4881_v11, %v4822_v8  ;;  %v4908_v1 = vadd.f32 %v4907_v9, %v4824_v48 }
 0x512   :  { %v4826_v37 = vmax.f32 %v4642_v59, 0.0  ;;  %v4644_v34 = vadd.f32 %v4643_v42, %v9709_v54  ;;  %v4757_v16 = vadd.f32 %v4756_v20, %v9712_v19  ;;  %v4870_v60 = vadd.f32 %v4869_v24, %v4825_v36 }
 0x513   :  { %v4645_v0 = vpop.f32.mrf.mxu1  ;;  %v4758_v51 = vpop.f32.mrf.mxu0  ;;  %v4896_v62 = vadd.f32 %v4895_v52, %v4827_v45  ;;  %v4828_v56 = vmax.f32 %v4755_v5, 0.0 }
 0x514   :  { %v4829_v58 = vmax.f32 %v4644_v34, 0.0  ;;  %v4646_v6 = vadd.f32 %v4645_v0, %v9715_v15  ;;  %v4831_v3 = vmax.f32 %v4757_v16, 0.0  ;;  %v4759_v35 = vadd.f32 %v4758_v51, %v9718_v30 }
 0x515   :  { %v4649_v33 = vpop.f32.mrf.mxu1  ;;  %v4883_v12 = vadd.f32 %v4882_v41, %v4826_v37  ;;  %v4762_v32 = vpop.f32.mrf.mxu0  ;;  %v4909_v8 = vadd.f32 %v4908_v1, %v4828_v56 }
 0x516   :  { %v4871_v17 = vadd.f32 %v4870_v60, %v4829_v58  ;;  %v4830_v53 = vmax.f32 %v4646_v6, 0.0  ;;  %v4897_v7 = vadd.f32 %v4896_v62, %v4831_v3  ;;  %v4832_v47 = vmax.f32 %v4759_v35, 0.0 }
 0x517   :  { %v4651_v40 = vpop.f32.mrf.mxu1  ;;  %v4764_v50 = vpop.f32.mrf.mxu0  ;;  %v4650_v20 = vadd.f32 %v4649_v33, %v9709_v54  ;;  %v4763_v48 = vadd.f32 %v4762_v32, %v9712_v19 }
 0x518   :  { %v4884_v46 = vadd.f32 %v4883_v12, %v4830_v53  ;;  %v4872_v36 = vrot.slane %v4871_v17, 4  ;;  %v4898_v18 = vrot.slane %v4897_v7, 4  ;;  %v4910_v38 = vadd.f32 %v4909_v8, %v4832_v47 }
 0x519   :  { %v4653_v59 = vpop.f32.mrf.mxu1  ;;  %v4766_v57 = vpop.f32.mrf.mxu0  ;;  %v4652_v41 = vadd.f32 %v4651_v40, %v9715_v15  ;;  %v4765_v60 = vadd.f32 %v4764_v50, %v9718_v30  ;;  %v4833_v12 = vmax.f32 %v4650_v20, 0.0 }
 0x51a   :  { %v4885_v5 = vrot.slane %v4884_v46, 4  ;;  %v4873_v11 = vadd.f32 %v4872_v36, %v4871_v17  ;;  %v4654_v24 = vadd.f32 %v4653_v59, %v9709_v54  ;;  %v4899_v34 = vadd.f32 %v4898_v18, %v4897_v7 }
 0x51b   :  { %v4655_v45 = vpop.f32.mrf.mxu1  ;;  %v4768_v42 = vpop.f32.mrf.mxu0  ;;  %v4911_v52 = vrot.slane %v4910_v38, 4  ;;  %v4767_v58 = vadd.f32 %v4766_v57, %v9712_v19  ;;  %v4835_v7 = vmax.f32 %v4763_v48, 0.0  ;;  %v4834_v8 = vmax.f32 %v4652_v41, 0.0 }
 0x51c   :  { %v4886_v0 = vadd.f32 %v4885_v5, %v4884_v46  ;;  %v4874_v51 = vrot.slane %v4873_v11, 2  ;;  %v4837_v62 = vmax.f32 %v4654_v24, 0.0  ;;  %v4656_v56 = vadd.f32 %v4655_v45, %v9715_v15 }
 0x51d   :  { %v4659_v37 = vpop.f32.mrf.mxu1  ;;  %v4772_v9 = vpop.f32.mrf.mxu0  ;;  %v4769_v3 = vadd.f32 %v4768_v42, %v9718_v30  ;;  %v4900_v33 = vrot.slane %v4899_v34, 2  ;;  %v9762_v1 = vadd.f32 %v4911_v52, %v4910_v38  ;;  %v4836_v36 = vmax.f32 %v4765_v60, 0.0 }
 0x51e   :  { %v4660_v17 = vadd.f32 %v4659_v37, %v9709_v54  ;;  %v4773_v53 = vadd.f32 %v4772_v9, %v9712_v19  ;;  %v4887_v50 = vrot.slane %v4886_v0, 2  ;;  %v4839_v59 = vmax.f32 %v4767_v58, 0.0 }
 0x51f   :  { %v4661_v16 = vpop.f32.mrf.mxu1  ;;  %v4774_v6 = vpop.f32.mrf.mxu0  ;;  %v9766_v57 = vadd.f32 %v4874_v51, %v4873_v11  ;;  %v4917_v45 = vadd.f32 %v4837_v62, %v4833_v12  ;;  %v4838_v5 = vmax.f32 %v4656_v56, 0.0  ;;  %v4840_v42 = vmax.f32 %v4769_v3, 0.0 }
 0x520   :  { %v4662_v47 = vadd.f32 %v4661_v16, %v9715_v15  ;;  %v4775_v40 = vadd.f32 %v4774_v6, %v9718_v30  ;;  %v9768_v37 = vadd.f32 %v4900_v33, %v4899_v34  ;;  %v4841_v38 = vmax.f32 %v4660_v17, 0.0 }
 0x521   :  { %v4663_v35 = vpop.f32.mrf.mxu1  ;;  %v4776_v32 = vpop.f32.mrf.mxu0  ;;  %v4843_v20 = vmax.f32 %v4773_v53, 0.0  ;;  %v4913_v48 = vrot.slane %v9762_v1, 2  ;;  %v9773_v11 = vadd.f32 %v4887_v50, %v4886_v0  ;;  %v4943_v6 = vadd.f32 %v4839_v59, %v4835_v7 }
 0x522   :  { %v4664_v9 = vadd.f32 %v4663_v35, %v9709_v54  ;;  %v4842_v16 = vmax.f32 %v4662_v47, 0.0  ;;  %v4844_v41 = vmax.f32 %v4775_v40, 0.0  ;;  %v4777_v60 = vadd.f32 %v4776_v32, %v9712_v19 }
 0x523   :  { %v4665_v46 = vpop.f32.mrf.mxu1  ;;  %v4778_v18 = vpop.f32.mrf.mxu0  ;;  %v4930_v56 = vadd.f32 %v4838_v5, %v4834_v8  ;;  %v4956_v3 = vadd.f32 %v4840_v42, %v4836_v36  ;;  %v4918_v17 = vadd.f32 %v4917_v45, %v4841_v38  ;;  %v4944_v53 = vadd.f32 %v4943_v6, %v4843_v20 }
 0x524   :  { %v4845_v51 = vmax.f32 %v4664_v9, 0.0  ;;  %v4666_v62 = vadd.f32 %v4665_v46, %v9715_v15  ;;  %v4847_v33 = vmax.f32 %v4777_v60, 0.0  ;;  %v4779_v35 = vadd.f32 %v4778_v18, %v9718_v30 }
 0x525   :  { %v4669_v24 = vpop.f32.mrf.mxu1  ;;  %v4782_v52 = vpop.f32.mrf.mxu0  ;;  %v4931_v61 = vadd.f32 %v4930_v56, %v4842_v16  ;;  %v4957_v0 = vadd.f32 %v4956_v3, %v4844_v41 }
 0x526   :  { %v4846_v47 = vmax.f32 %v4666_v62, 0.0  ;;  %v4670_v40 = vadd.f32 %v4669_v24, %v9709_v54  ;;  %v4848_v50 = vmax.f32 %v4779_v35, 0.0  ;;  %v4783_v7 = vadd.f32 %v4782_v52, %v9712_v19 }
 0x527   :  { %v4671_v58 = vpop.f32.mrf.mxu1  ;;  %v4784_v34 = vpop.f32.mrf.mxu0  ;;  %v4919_v46 = vadd.f32 %v4918_v17, %v4845_v51  ;;  %v4945_v5 = vadd.f32 %v4944_v53, %v4847_v33 }
 0x528   :  { %v4849_v9 = vmax.f32 %v4670_v40, 0.0  ;;  %v4672_v8 = vadd.f32 %v4671_v58, %v9715_v15  ;;  %v4785_v36 = vadd.f32 %v4784_v34, %v9718_v30  ;;  %v4932_v45 = vadd.f32 %v4931_v61, %v4846_v47 }
 0x529   :  { %v4673_v12 = vpop.f32.mrf.mxu1  ;;  %v4786_v32 = vpop.f32.mrf.mxu0  ;;  %v4851_v42 = vmax.f32 %v4783_v7, 0.0  ;;  %v4958_v20 = vadd.f32 %v4957_v0, %v4848_v50 }
 0x52a   :  { %v4674_v38 = vadd.f32 %v4673_v12, %v9709_v54  ;;  %v4850_v16 = vmax.f32 %v4672_v8, 0.0  ;;  %v4852_v41 = vmax.f32 %v4785_v36, 0.0  ;;  %v4787_v60 = vadd.f32 %v4786_v32, %v9712_v19 }
 0x52b   :  { %v4675_v59 = vpop.f32.mrf.mxu1  ;;  %v4788_v18 = vpop.f32.mrf.mxu0  ;;  %v4920_v6 = vadd.f32 %v4919_v46, %v4849_v9  ;;  %v4946_v56 = vadd.f32 %v4945_v5, %v4851_v42 }
 0x52c   :  { %v4853_v51 = vmax.f32 %v4674_v38, 0.0  ;;  %v4676_v62 = vadd.f32 %v4675_v59, %v9715_v15  ;;  %v4789_v58 = vadd.f32 %v4788_v18, %v9718_v30  ;;  %v4933_v3 = vadd.f32 %v4932_v45, %v4850_v16 }
 0x52d   :  { %v4679_v24 = vpop.f32.mrf.mxu1  ;;  %v4792_v52 = vpop.f32.mrf.mxu0  ;;  %v4855_v61 = vmax.f32 %v4787_v60, 0.0  ;;  %v4959_v12 = vadd.f32 %v4958_v20, %v4852_v41 }
 0x52e   :  { %v4680_v33 = vadd.f32 %v4679_v24, %v9709_v54  ;;  %v4854_v17 = vmax.f32 %v4676_v62, 0.0  ;;  %v4856_v53 = vmax.f32 %v4789_v58, 0.0  ;;  %v4793_v47 = vadd.f32 %v4792_v52, %v9712_v19 }
 0x52f   :  { %v4681_v34 = vpop.f32.mrf.mxu1  ;;  %v4794_v35 = vpop.f32.mrf.mxu0  ;;  %v4921_v32 = vadd.f32 %v4920_v6, %v4853_v51  ;;  %v4947_v46 = vadd.f32 %v4946_v56, %v4855_v61  ;;  %v4914_v52 = vadd.f32 %v4913_v48, %v9762_v1 }
 0x530   :  { %v4857_v0 = vmax.f32 %v4680_v33, 0.0  ;;  %v4682_v50 = vadd.f32 %v4681_v34, %v9715_v15  ;;  %v4795_v7 = vadd.f32 %v4794_v35, %v9718_v30  ;;  %v4934_v9 = vadd.f32 %v4933_v3, %v4854_v17 }
 0x531   :  { %v4683_v40 = vpop.f32.mrf.mxu1  ;;  %v4796_v59 = vpop.f32.mrf.mxu0  ;;  %v4859_v8 = vmax.f32 %v4793_v47, 0.0  ;;  %v4960_v5 = vadd.f32 %v4959_v12, %v4856_v53  ;;  %v4902_v3 = vrot.slane %v9768_v37, 1  ;;  %v4915_v12 = vrot.slane %v4914_v52, 1 }
 0x532   :  { %v4684_v36 = vadd.f32 %v4683_v40, %v9709_v54  ;;  %v4858_v45 = vmax.f32 %v4682_v50, 0.0  ;;  %v4860_v42 = vmax.f32 %v4795_v7, 0.0  ;;  %v4797_v38 = vadd.f32 %v4796_v59, %v9712_v19 }
 0x533   :  { %v4685_v18 = vpop.f32.mrf.mxu1  ;;  %v4798_v24 = vpop.f32.mrf.mxu0  ;;  %v4922_v20 = vadd.f32 %v4921_v32, %v4857_v0  ;;  %v4948_v6 = vadd.f32 %v4947_v46, %v4859_v8  ;;  %v4876_v19 = vrot.slane %v9766_v57, 1  ;;  %v4903_v40 = vadd.f32 %v4902_v3, %v9768_v37 }
 0x534   :  { %v4861_v16 = vmax.f32 %v4684_v36, 0.0  ;;  %v4686_v41 = vadd.f32 %v4685_v18, %v9715_v15  ;;  %v4799_v60 = vadd.f32 %v4798_v24, %v9718_v30  ;;  %v4935_v51 = vadd.f32 %v4934_v9, %v4858_v45 }
 0x535   :  { %v4863_v54 = vmax.f32 %v4797_v38, 0.0  ;;  %v4961_v62 = vadd.f32 %v4960_v5, %v4860_v42  ;;  %v4889_v30 = vrot.slane %v9773_v11, 1  ;;  %v4877_v47 = vadd.f32 %v4876_v19, %v9766_v57 }
 0x536   :  { %v4923_v58 = vadd.f32 %v4922_v20, %v4861_v16  ;;  %v4862_v34 = vmax.f32 %v4686_v41, 0.0  ;;  %v4864_v56 = vmax.f32 %v4799_v60, 0.0  ;;  %v4916_v46 = vadd.f32 %v4915_v12, %v4914_v52 }
 0x537   :  { %v4949_v61 = vadd.f32 %v4948_v6, %v4863_v54  ;;  %v4890_v59 = vadd.f32 %v4889_v30, %v9773_v11  ;;  %v4969_v5 = vmul.f32 0.015625, %v4877_v47  ;;  %v4971_v45 = vmul.f32 0.015625, %v4903_v40 }
 0x538   :  { %v4924_v33 = vrot.slane %v4923_v58, 4  ;;  %v4936_v15 = vadd.f32 %v4935_v51, %v4862_v34  ;;  %v4962_v35 = vadd.f32 %v4961_v62, %v4864_v56  ;;  %v4972_v16 = vmul.f32 0.015625, %v4916_v46 }
 0x539   :  { %v4950_v17 = vrot.slane %v4949_v61, 4  ;;  %v4970_v57 = vmul.f32 0.015625, %v4890_v59  ;;  %v5028_v51 = vpack.c.bf16 %v4969_v5, %v4969_v5  ;;  %v5030_v54 = vpack.c.bf16 %v4971_v45, %v4971_v45 }
 0x53a   :  { %v4925_v1 = vadd.f32 %v4924_v33, %v4923_v58  ;;  %v4937_v48 = vrot.slane %v4936_v15, 4  ;;  %v4963_v53 = vrot.slane %v4962_v35, 4  ;;  %v4986_v56 = vcombine.low %v4971_v45, %v4972_v16 }
 0x53b   :  { %v4951_v32 = vadd.f32 %v4950_v17, %v4949_v61  ;;  %v4985_v34 = vcombine.low %v4969_v5, %v4970_v57  ;;  %v5110_v30 = vunpack.c.l.b16 %v5030_v54  ;;  %v5031_v17 = vpack.c.bf16 %v4972_v16, %v4972_v16 }
 0x53c   :  { %v4926_v0 = vrot.slane %v4925_v1, 2  ;;  %v4938_v50 = vadd.f32 %v4937_v48, %v4936_v15  ;;  %v4964_v7 = vadd.f32 %v4963_v53, %v4962_v35  ;;  %v5029_v15 = vpack.c.bf16 %v4970_v57, %v4970_v57 }
 0x53d   :  { %v4952_v9 = vrot.slane %v4951_v32, 2  ;;  %v5108_v35 = vunpack.c.l.b16 %v5028_v51  ;;  %v4993_v40 = vrot.slane %v4985_v34, %v9117_v39  ;;  %v5111_v5 = vunpack.c.l.b16 %v5031_v17  ;;  %v5422_v34 = vld [vmem:[%s10159_s5 + $0x2b8] sm:$0xff]  ;;  %v5417_v17 = vld [vmem:[%s10159_s5 + $0x230] sm:$0xff] }
 0x53e   :  { %v4927_v8 = vadd.f32 %v4926_v0, %v4925_v1  ;;  %v4939_v36 = vrot.slane %v4938_v50, 2  ;;  %v4965_v18 = vrot.slane %v4964_v7, 2  ;;  %v5109_v46 = vunpack.c.l.b16 %v5029_v15 }
 0x53f   :  { %v4953_v42 = vadd.f32 %v4952_v9, %v4951_v32  ;;  %v5000_v32 = vrot.slane %v4986_v56, %v9117_v39  ;;  %v5424_v56 = vld [vmem:[%s10159_s5 + $0x2f8] sm:$0xff] }
 0x540   :  { %v4928_v38 = vrot.slane %v4927_v8, 1  ;;  %v4940_v24 = vadd.f32 %v4939_v36, %v4938_v50  ;;  %v4966_v20 = vadd.f32 %v4965_v18, %v4964_v7  ;;  %v5427_v36 = vld [vmem:[%s10159_s5 + $0x370] sm:$0xff] }
 0x541   :  { %v4954_v37 = vrot.slane %v4953_v42, 1 }
 0x542   :  { %v4929_v41 = vadd.f32 %v4928_v38, %v4927_v8  ;;  %v4941_v60 = vrot.slane %v4940_v24, 1  ;;  %v4967_v6 = vrot.slane %v4966_v20, 1  ;;  %v5425_v8 = vld [vmem:[%s10159_s5 + $0x330] sm:$0xff] }
 0x543   :  { %v4955_v11 = vadd.f32 %v4954_v37, %v4953_v42 }
 0x544   :  { %v4973_v52 = vmul.f32 0.015625, %v4929_v41  ;;  %v4942_v62 = vadd.f32 %v4941_v60, %v4940_v24  ;;  %v4968_v58 = vadd.f32 %v4967_v6, %v4966_v20  ;;  %v5426_v24 = vld [vmem:[%s10159_s5 + $0x338] sm:$0xff]  ;;  %v6903_v41 = vcombine.high %v5425_v8, %v5427_v36 }
 0x545   :  { %v4975_v19 = vmul.f32 0.015625, %v4955_v11  ;;  %v5428_v20 = vld [vmem:[%s10159_s5 + $0x378] sm:$0xff]  ;;  %v5001_v60 = vcombine.low %v4993_v40, %v5000_v32  ;;  %v5415_v40 = vld [vmem:[%s10159_s5 + $0x1f0] sm:$0xff] }
 0x546   :  { %v5032_v3 = vpack.c.bf16 %v4973_v52, %v4973_v52  ;;  %v4974_v61 = vmul.f32 0.015625, %v4942_v62  ;;  %v4976_v33 = vmul.f32 0.015625, %v4968_v58  ;;  %v5421_v62 = vld [vmem:[%s10159_s5 + $0x2b0] sm:$0xff]  ;;  %v6904_v15 = vcombine.low %v5426_v24, %v5428_v20  ;;  %v5414_v32 = vld [vmem:[%s10159_s5 + $0x1b8] sm:$0xff] }
 0x547   :  { %v5034_v12 = vpack.c.bf16 %v4975_v19, %v4975_v19  ;;  %v5423_v58 = vld [vmem:[%s10159_s5 + $0x2f0] sm:$0xff] }
 0x548   :  { %v5112_v1 = vunpack.c.l.b16 %v5032_v3  ;;  %v5002_v48 = vcombine.low %v4973_v52, %v4974_v61  ;;  %v5003_v53 = vcombine.low %v4975_v19, %v4976_v33  ;;  %v5033_v47 = vpack.c.bf16 %v4974_v61, %v4974_v61 }
 0x549   :  { %v5114_v0 = vunpack.c.l.b16 %v5034_v12  ;;  %v5035_v50 = vpack.c.bf16 %v4976_v33, %v4976_v33  ;;  %v6905_v52 = vcombine.high %v5426_v24, %v5428_v20  ;;  %v6902_v3 = vcombine.low %v5425_v8, %v5427_v36  ;;  %v5411_v8 = vld [vmem:[%s10159_s5 + $0x170] sm:$0xff]  ;;  %v5410_v36 = vld [vmem:[%s10159_s5 + $0x138] sm:$0xff] }
 0x54a   :  { %v5010_v7 = vrot.slane %v5002_v48, %v9117_v39  ;;  %v5017_v59 = vrot.slane %v5003_v53, %v9117_v39  ;;  %v5113_v9 = vunpack.c.l.b16 %v5033_v47  ;;  %v5116_v18 = vsel %vm2940_vm5, %v5112_v1, %v5108_v35  ;;  %v5413_v47 = vld [vmem:[%s10159_s5 + $0x1b0] sm:$0xff] }
 0x54b   :  { %v5115_v45 = vunpack.c.l.b16 %v5035_v50  ;;  %v5118_v42 = vsel %vm2940_vm5, %v5114_v0, %v5110_v30  ;;  %v5120_v6 = vpack.c.b16 %v5116_v18, %v5116_v18  ;;  %v10197_v33 = vcombine.low %v9682_v26, %v9689_v55  ;;  %v5418_v26 = vld [vmem:[%s10159_s5 + $0x238] sm:$0xff]  ;;  %v5405_v24 = vld [vmem:[%s10159_s5 + $0xb0] sm:$0xff] }
 0x54c   :  { %v5117_v38 = vsel %vm2940_vm5, %v5113_v9, %v5109_v46  ;;  %v5018_v57 = vcombine.low %v5010_v7, %v5017_v59  ;;  %v5122_v11 = vpack.c.b16 %v5118_v42, %v5118_v42  ;;  %v6899_v35 = vcombine.high %v5421_v62, %v5423_v58  ;;  %v5416_v0 = vld [vmem:[%s10159_s5 + $0x1f8] sm:$0xff]  ;;  %v5409_v9 = vld [vmem:[%s10159_s5 + $0x130] sm:$0xff] }
 0x54d   :  { %v5121_v16 = vpack.c.b16 %v5117_v38, %v5117_v38  ;;  %v5119_v37 = vsel %vm2940_vm5, %v5115_v45, %v5111_v5  ;;  %v6901_v12 = vcombine.high %v5422_v34, %v5424_v56  ;;  %v6898_v55 = vcombine.low %v5421_v62, %v5423_v58  ;;  %v5412_v18 = vld [vmem:[%s10159_s5 + $0x178] sm:$0xff]  ;;  %v5407_v20 = vld [vmem:[%s10159_s5 + $0xf0] sm:$0xff] }
 0x54e   :  { %v5123_v51 = vpack.c.b16 %v5119_v37, %v5119_v37  ;;  %v5021_v54 = vrot.slane %v5018_v57, 7  ;;  %v6900_v1 = vcombine.low %v5422_v34, %v5424_v56  ;;  %v6895_v48 = vcombine.high %v5417_v17, %v5419_v25  ;;  %v5406_v57 = vld [vmem:[%s10159_s5 + $0xb8] sm:$0xff] }
 0x54f   :  { %5352 = vmatprep.mubr.bf16.mxu1 %v5121_v16  ;;  %v6894_v50 = vcombine.low %v5417_v17, %v5419_v25  ;;  %v6891_v59 = vcombine.high %v5413_v47, %v5415_v40  ;;  %v6893_v46 = vcombine.high %v5414_v32, %v5416_v0  ;;  %v6890_v5 = vcombine.low %v5413_v47, %v5415_v40  ;;  %v5408_v16 = vld [vmem:[%s10159_s5 + $0xf8] sm:$0xff]  ;;  %v7635_v17 = vld [vmem:[%s10161_s7 + $0x3a0] sm:$0xff]   ;;  %v7644_v47 = vld [vmem:[%s10161_s7 + $0x348] sm:$0xff]  }
 0x550   :  { %5392 = vmatprep.mubr.bf16.mxu0 %v5123_v51  ;;  %5353 = vmatmul.mubr.bf16.vlgmr.msra.gmra.mxu1 %v5120_v6  ;;  %v5022_v19 = vsel %vm2940_vm5, %v5021_v54, %v5001_v60  ;;  %v6892_v45 = vcombine.low %v5414_v32, %v5416_v0  ;;  %v6887_v42 = vcombine.high %v5409_v9, %v5411_v8  ;;  %v5401_v51 = vld [vmem:[%s10159_s5 + $0x30] sm:$0xff]  ;;  %v7636_v25 = vld [vmem:[%s10161_s7 + $0x358] sm:$0xff]   ;;  %v7645_v40 = vld [vmem:[%s10161_s7 + $0x3c8] sm:$0xff]  }
 0x551   :  { %5393 = vmatmul.mubr.bf16.vlgmr.msra.gmra.mxu0 %v5122_v11  ;;  %5616 = vmatpush1.bf16.msra.mxu1 %v6906_v2  ;;  %v5023_v61 = vsel %vm2942_vm6, %v5021_v54, %v5022_v19  ;;  %v5420_v2 = vld [vmem:[%s10159_s5 + $0x278] sm:$0xff]  ;;  %v6889_v38 = vcombine.high %v5410_v36, %v5412_v18  ;;  %v6886_v37 = vcombine.low %v5409_v9, %v5411_v8  ;;  %v7646_v32 = vld [vmem:[%s10161_s7 + $0x308] sm:$0xff]  }
 0x552   :  { %5729 = vmatpush1.bf16.msra.mxu0 %v10197_v33  ;;  %5617 = vmatprep.subr.bf16.mxu1 %v6903_v41  ;;  %v5024_v30 = vsel %vm2944_vm7, %v5021_v54, %v5023_v61  ;;  %v6897_v53 = vcombine.high %v5418_v26, %v5420_v2  ;;  %v6896_v7 = vcombine.low %v5418_v26, %v5420_v2  ;;  %v5402_v11 = vld [vmem:[%s10159_s5 + $0x38] sm:$0xff]  ;;  %v7629_v61 = vld [vmem:[%s10161_s7 + $0x3e8] sm:$0xff]  }
 0x553   :  { %5730 = vmatprep.subr.bf16.mxu0 %v6905_v52  ;;  %5647 = vmatprep.mubr.bf16.mxu1 %v10181_v13  ;;  %v5025_v21 = vsel %vm2946_vm8, %v5021_v54, %v5024_v30  ;;  %v6888_v41 = vcombine.low %v5410_v36, %v5412_v18  ;;  %v6883_v60 = vcombine.high %v5405_v24, %v5407_v20  ;;  %v5403_v54 = vld [vmem:[%s10159_s5 + $0x70] sm:$0xff]  ;;  %v5404_v52 = vld [vmem:[%s10159_s5 + $0x78] sm:$0xff]  ;;  %v7630_v33 = vld [vmem:[%s10161_s7 + $0x328] sm:$0xff]  }
 0x554   :  { %5760 = vmatprep.mubr.bf16.mxu0 %v10181_v13  ;;  %5027 = vst [vmem:[#allocation2 + $0x10] sm:$0xff] %v5025_v21  ;;  %v6885_v6 = vcombine.high %v5406_v57, %v5408_v16  ;;  %v6882_v62 = vcombine.low %v5405_v24, %v5407_v20  ;;  %v6884_v58 = vcombine.low %v5406_v57, %v5408_v16  ;;  %v7633_v30 = vld [vmem:[%s10161_s7 + $0x3e0] sm:$0xff]   ;;  %v7637_v21 = vld [vmem:[%s10161_s7 + $0x3d8] sm:$0xff]   ;;  %v7647_v0 = vld [vmem:[%s10161_s7 + $0x388] sm:$0xff]  }
 0x555   :  { %5618 = vmatpush1.bf16.msra.mxu1 %v6902_v3  ;;  %v6879_v34 = vcombine.high %v5401_v51, %v5403_v54  ;;  %v6881_v56 = vcombine.high %v5402_v11, %v5404_v52  ;;  %v6878_v19 = vcombine.low %v5401_v51, %v5403_v54  ;;  %v6880_v3 = vcombine.low %v5402_v11, %v5404_v52  ;;  %v7638_v26 = vld [vmem:[%s10161_s7 + $0x318] sm:$0xff]   ;;  %v5433_v54 = vld [vmem:[%s10160_s6 + $0xc] sm:$0xf]  ;;  %s7700_s6 = smov [#allocation2]  }
 0x556   :  { %5731 = vmatpush1.bf16.msra.mxu0 %v6904_v15  ;;  %5619 = vmatprep.subr.bf16.mxu1 %v6899_v35  ;;  %v7631_v15 = vld [vmem:[%s10161_s7 + $0x3a8] sm:$0xff]   ;;  %v7632_v35 = vld [vmem:[%s10161_s7 + $0x360] sm:$0xff]   ;;  %v7639_v2 = vld [vmem:[%s10161_s7 + $0x398] sm:$0xff]   ;;  %s6456_s26 = sshll.u32 %s7700_s6, 4  ;;  %s6457_s26 = int_to_ptr.vmem [resolvable:$true] %s6456_s26 }
 0x557   :  { %5732 = vmatprep.subr.bf16.mxu0 %v6901_v12  ;;  %v7634_v12 = vld [vmem:[%s10161_s7 + $0x320] sm:$0xff]   ;;  %s7653_s27 = scalar_lea.vmem %s6457_s26, 512  ;;  %p7658_p1 = scmp.lt.s32.totalorder %s6457_s26, %s6457_s26 }
 0x558   :  { %p7654_p0 = scmp.ne.s32.totalorder %s6457_s26, %s7653_s27  ;;  %p7659_p2 = scmp.lt.s32.totalorder %s7653_s27, %s7653_s27 }
 0x559   :  { %5620 = vmatpush1.bf16.msra.mxu1 %v6898_v55  ;;  %v7640_v55 = vld [vmem:[%s10161_s7 + $0x350] sm:$0xff]  }
 0x55a   :  { %5733 = vmatpush1.bf16.msra.mxu0 %v6900_v1  ;;  %5621 = vmatprep.subr.bf16.mxu1 %v6895_v48  ;;  %v7641_v1 = vld [vmem:[%s10161_s7 + $0x3d0] sm:$0xff]   ;;  %p7660_p3 = por %p7659_p2, %p7658_p1 }
 0x55b   :  { %5734 = vmatprep.subr.bf16.mxu0 %v6897_v53  ;;  %v7642_v48 = vld [vmem:[%s10161_s7 + $0x310] sm:$0xff]  }
 0x55c   :  { %v7643_v53 = vld [vmem:[%s10161_s7 + $0x390] sm:$0xff]   ;;  %p7661_p4 = pnand %p7660_p3, %p7654_p0 }
 0x55d   :  { %5622 = vmatpush1.bf16.msra.mxu1 %v6894_v50  ;;  %v7648_v50 = vld [vmem:[%s10161_s7 + $0x340] sm:$0xff]  }
 0x55e   :  { %5735 = vmatpush1.bf16.msra.mxu0 %v6896_v7  ;;  %5623 = vmatprep.subr.bf16.mxu1 %v6891_v59  ;;  %v7649_v7 = vld [vmem:[%s10161_s7 + $0x3c0] sm:$0xff]  }
 0x55f   :  { %5736 = vmatprep.subr.bf16.mxu0 %v6893_v46  ;;  %v7650_v59 = vld [vmem:[%s10161_s7 + $0x300] sm:$0xff]  }
 0x560   :  { %v7651_v46 = vld [vmem:[%s10161_s7 + $0x380] sm:$0xff]  }
 0x561   :  { %5624 = vmatpush1.bf16.msra.mxu1 %v6890_v5 }
 0x562   :  { %5737 = vmatpush1.bf16.msra.mxu0 %v6892_v45  ;;  %5625 = vmatprep.subr.bf16.mxu1 %v6887_v42 }
 0x563   :  { %5738 = vmatprep.subr.bf16.mxu0 %v6889_v38 }
 0x565   :  { %5626 = vmatpush1.bf16.msra.mxu1 %v6886_v37 }
 0x566   :  { %5739 = vmatpush1.bf16.msra.mxu0 %v6888_v41  ;;  %5627 = vmatprep.subr.bf16.mxu1 %v6883_v60 }
 0x567   :  { %5740 = vmatprep.subr.bf16.mxu0 %v6885_v6 }
 0x569   :  { %5628 = vmatpush1.bf16.msra.mxu1 %v6882_v62 }
 0x56a   :  { %5741 = vmatpush1.bf16.msra.mxu0 %v6884_v58  ;;  %5629 = vmatprep.subr.bf16.mxu1 %v6879_v34  ;;  %v10039_v58 = vrot.slane %v5433_v54, %v10193_v4  ;;  %v10042_v34 = vrot.slane %v5433_v54, %v10194_v27 }
 0x56b   :  { %5742 = vmatprep.subr.bf16.mxu0 %v6881_v56  ;;  %v10045_v56 = vrot.slane %v5433_v54, %v10195_v14 }
 0x56d   :  { %5630 = vmatpush1.bf16.msra.mxu1 %v6878_v19  ;;  %v10048_v19 = vrot.slane %v5433_v54, %v10196_v63 }
 0x56e   :  { %5743 = vmatpush1.bf16.msra.mxu0 %v6880_v3 }
 0x570   :  { %5648 = vmatmul.mubr.bf16.vlgmr.msra.gmra.mxu1 %v8743_v29 }
 0x571   :  { %5761 = vmatmul.mubr.bf16.vlgmr.msra.gmra.mxu0 %v8743_v29  ;;  %5657 = vmatprep.mubr.bf16.mxu1 %v10181_v13  ;;  %v7620_v29 = vld [vmem:[%s10161_s7 + $0x378] sm:$0xff]  }
 0x572   :  { %5770 = vmatprep.mubr.bf16.mxu0 %v10181_v13  ;;  %7313 = vmatprep.subr.bf16.mxu1 %v7620_v29 }
 0x578   :  { %5658 = vmatmul.mubr.bf16.gmra.mxu1 %v8797_v22 }
 0x579   :  { %5771 = vmatmul.mubr.bf16.gmra.mxu0 %v8797_v22  ;;  %5667 = vmatprep.mubr.bf16.mxu1 %v10181_v13  ;;  %v7621_v22 = vld [vmem:[%s10161_s7 + $0x3f8] sm:$0xff]  }
 0x57a   :  { %5780 = vmatprep.mubr.bf16.mxu0 %v10181_v13  ;;  %7335 = vmatprep.subr.bf16.mxu0 %v7621_v22 }
 0x580   :  { %5668 = vmatmul.mubr.bf16.gmra.mxu1 %v8838_v31 }
 0x581   :  { %5781 = vmatmul.mubr.bf16.gmra.mxu0 %v8838_v31  ;;  %5677 = vmatprep.mubr.bf16.mxu1 %v10181_v13  ;;  %v7622_v31 = vld [vmem:[%s10161_s7 + $0x338] sm:$0xff]  }
 0x582   :  { %5790 = vmatprep.mubr.bf16.mxu0 %v10181_v13  ;;  %7314 = vmatpush3.bf16.msra.mxu1 %v7622_v31 }
 0x588   :  { %5678 = vmatmul.mubr.bf16.gmra.mxu1 %v8875_v44 }
 0x589   :  { %5791 = vmatmul.mubr.bf16.gmra.mxu0 %v8875_v44  ;;  %5687 = vmatprep.mubr.bf16.mxu1 %v10181_v13  ;;  %v7624_v44 = vld [vmem:[%s10161_s7 + $0x370] sm:$0xff]  }
 0x58a   :  { %5800 = vmatprep.mubr.bf16.mxu0 %v10181_v13  ;;  %7315 = vmatprep.subr.bf16.mxu1 %v7624_v44 }
 0x590   :  { %5688 = vmatmul.mubr.bf16.gmra.mxu1 %v8886_v43 }
 0x591   :  { %5801 = vmatmul.mubr.bf16.gmra.mxu0 %v8886_v43  ;;  %5697 = vmatprep.mubr.bf16.mxu1 %v10181_v13  ;;  %v7625_v43 = vld [vmem:[%s10161_s7 + $0x3f0] sm:$0xff]  }
 0x592   :  { %5810 = vmatprep.mubr.bf16.mxu0 %v10181_v13 }
 0x598   :  { %5698 = vmatmul.mubr.bf16.gmra.mxu1 %v8898_v10 }
 0x599   :  { %5811 = vmatmul.mubr.bf16.gmra.mxu0 %v8898_v10  ;;  %5707 = vmatprep.mubr.bf16.mxu1 %v10181_v13  ;;  %v7626_v10 = vld [vmem:[%s10161_s7 + $0x330] sm:$0xff]  }
 0x59a   :  { %5820 = vmatprep.mubr.bf16.mxu0 %v10181_v13  ;;  %7316 = vmatpush3.bf16.msra.mxu1 %v7626_v10 }
 0x5a0   :  { %5708 = vmatmul.mubr.bf16.gmra.mxu1 %v8909_v23 }
 0x5a1   :  { %5821 = vmatmul.mubr.bf16.gmra.mxu0 %v8909_v23  ;;  %5717 = vmatprep.mubr.bf16.mxu1 %v10181_v13  ;;  %v7627_v23 = vld [vmem:[%s10161_s7 + $0x3b0] sm:$0xff]  }
 0x5a2   :  { %5830 = vmatprep.mubr.bf16.mxu0 %v10181_v13  ;;  %v7623_v13 = vld [vmem:[%s10161_s7 + $0x3b8] sm:$0xff]  }
 0x5a3   :  { %7336 = vmatpush3.bf16.msra.mxu0 %v7623_v13 }
 0x5a4   :  { %7337 = vmatprep.subr.bf16.mxu0 %v7625_v43 }
 0x5a7   :  { %7338 = vmatpush3.bf16.msra.mxu0 %v7627_v23 }
 0x5a8   :  { %5718 = vmatmul.mubr.bf16.gmra.mxu1 %v10192_v49  ;;  %7339 = vmatprep.subr.bf16.mxu0 %v7629_v61 }
 0x5a9   :  { %5831 = vmatmul.mubr.bf16.gmra.mxu0 %v10192_v49  ;;  %v7628_v49 = vld [vmem:[%s10161_s7 + $0x368] sm:$0xff]  }
 0x5aa   :  { %7317 = vmatprep.subr.bf16.mxu1 %v7628_v49 }
 0x5ab   :  { %7318 = vmatpush3.bf16.msra.mxu1 %v7630_v33  ;;  %7340 = vmatpush3.bf16.msra.mxu0 %v7631_v15 }
 0x5ac   :  { %7319 = vmatprep.subr.bf16.mxu1 %v7632_v35  ;;  %7341 = vmatprep.subr.bf16.mxu0 %v7633_v30 }
 0x5af   :  { %7320 = vmatpush3.bf16.msra.mxu1 %v7634_v12  ;;  %7342 = vmatpush3.bf16.msra.mxu0 %v7635_v17 }
 0x5b0   :  { %7321 = vmatprep.subr.bf16.mxu1 %v7636_v25  ;;  %7343 = vmatprep.subr.bf16.mxu0 %v7637_v21 }
 0x5b3   :  { %7322 = vmatpush3.bf16.msra.mxu1 %v7638_v26  ;;  %7344 = vmatpush3.bf16.msra.mxu0 %v7639_v2 }
 0x5b4   :  { %7323 = vmatprep.subr.bf16.mxu1 %v7640_v55  ;;  %7345 = vmatprep.subr.bf16.mxu0 %v7641_v1 }
 0x5b7   :  { %7324 = vmatpush3.bf16.msra.mxu1 %v7642_v48  ;;  %7346 = vmatpush3.bf16.msra.mxu0 %v7643_v53 }
 0x5b8   :  { %7325 = vmatprep.subr.bf16.mxu1 %v7644_v47  ;;  %7347 = vmatprep.subr.bf16.mxu0 %v7645_v40 }
 0x5bb   :  { %7326 = vmatpush3.bf16.msra.mxu1 %v7646_v32  ;;  %7348 = vmatpush3.bf16.msra.mxu0 %v7647_v0 }
 0x5bc   :  { %7327 = vmatprep.subr.bf16.mxu1 %v7648_v50  ;;  %7349 = vmatprep.subr.bf16.mxu0 %v7649_v7 }
 0x5bf   :  { %7328 = vmatpush3.bf16.msra.mxu1 %v7650_v59  ;;  %7350 = vmatpush3.bf16.msra.mxu0 %v7651_v46 }
 0x610   :  { %v7285_v9 = vpop.f32.mrf.mxu1 }
 0x611   :  { %v7307_v8 = vpop.f32.mrf.mxu0 }
 0x612   :  { %v7286_v36 = vpop.f32.mrf.mxu1 }
 0x613   :  { %v7287_v18 = vadd.f32 %v7286_v36, %v7285_v9  ;;  %v7308_v5 = vpop.f32.mrf.mxu0 }
 0x614   :  { %v7309_v45 = vadd.f32 %v7308_v5, %v7307_v8  ;;  %v7288_v42 = vpop.f32.mrf.mxu1 }
 0x615   :  { %v7310_v38 = vpop.f32.mrf.mxu0 }
 0x616   :  { %v5395_v24 = vadd.f32 %v7309_v45, %v7287_v18  ;;  %v7289_v20 = vpop.f32.mrf.mxu1 }
 0x617   :  { %v7311_v57 = vpop.f32.mrf.mxu0 }
 0x618   :  { %v10033_v16 = vadd.f32 %v5395_v24, %v9703_v28 }
 0x630   :  { %v5649_v37 = vpop.f32.mrf.mxu1 }
 0x631   :  { %v5762_v41 = vpop.f32.mrf.mxu0  ;;  %v5650_v44 = vadd.f32 %v5649_v37, %v10039_v58 }
 0x632   :  { %v5651_v60 = vpop.f32.mrf.mxu1  ;;  %v5763_v27 = vadd.f32 %v5762_v41, %v10042_v34 }
 0x633   :  { %v5764_v6 = vpop.f32.mrf.mxu0  ;;  %v5652_v14 = vadd.f32 %v5651_v60, %v10045_v56  ;;  %v5841_v21 = vmax.f32 %v5650_v44, 0.0 }
 0x634   :  { %v5653_v51 = vpop.f32.mrf.mxu1  ;;  %v5765_v10 = vadd.f32 %v5764_v6, %v10048_v19  ;;  %v5843_v26 = vmax.f32 %v5763_v27, 0.0 }
 0x635   :  { %v5766_v11 = vpop.f32.mrf.mxu0  ;;  %v5654_v29 = vadd.f32 %v5653_v51, %v10039_v58  ;;  %v5842_v48 = vmax.f32 %v5652_v14, 0.0 }
 0x636   :  { %v5655_v52 = vpop.f32.mrf.mxu1  ;;  %v5767_v22 = vadd.f32 %v5766_v11, %v10042_v34  ;;  %v5844_v53 = vmax.f32 %v5765_v10, 0.0 }
 0x637   :  { %v5768_v62 = vpop.f32.mrf.mxu0  ;;  %v5656_v13 = vadd.f32 %v5655_v52, %v10045_v56  ;;  %v5845_v49 = vmax.f32 %v5654_v29, 0.0 }
 0x638   :  { %v5659_v28 = vpop.f32.mrf.mxu1  ;;  %v5769_v63 = vadd.f32 %v5768_v62, %v10048_v19  ;;  %v5847_v61 = vmax.f32 %v5767_v22, 0.0 }
 0x639   :  { %v5772_v3 = vpop.f32.mrf.mxu0  ;;  %v5660_v33 = vadd.f32 %v5659_v28, %v10039_v58  ;;  %v5846_v30 = vmax.f32 %v5656_v13, 0.0  ;;  %v5905_v0 = vadd.f32 %v5845_v49, %v5841_v21 }
 0x63a   :  { %v5661_v31 = vpop.f32.mrf.mxu1  ;;  %v5773_v15 = vadd.f32 %v5772_v3, %v10042_v34  ;;  %v5848_v47 = vmax.f32 %v5769_v63, 0.0  ;;  %v5931_v50 = vadd.f32 %v5847_v61, %v5843_v26 }
 0x63b   :  { %v5774_v4 = vpop.f32.mrf.mxu0  ;;  %v5662_v12 = vadd.f32 %v5661_v31, %v10045_v56  ;;  %v5849_v7 = vmax.f32 %v5660_v33, 0.0  ;;  %v5918_v9 = vadd.f32 %v5846_v30, %v5842_v48 }
 0x63c   :  { %v5663_v43 = vpop.f32.mrf.mxu1  ;;  %v5775_v17 = vadd.f32 %v5774_v4, %v10048_v19  ;;  %v5851_v59 = vmax.f32 %v5773_v15, 0.0  ;;  %v5944_v57 = vadd.f32 %v5848_v47, %v5844_v53 }
 0x63d   :  { %v5776_v23 = vpop.f32.mrf.mxu0  ;;  %v5664_v2 = vadd.f32 %v5663_v43, %v10039_v58  ;;  %v5850_v8 = vmax.f32 %v5662_v12, 0.0  ;;  %v5906_v51 = vadd.f32 %v5905_v0, %v5849_v7 }
 0x63e   :  { %v5665_v35 = vpop.f32.mrf.mxu1  ;;  %v5777_v55 = vadd.f32 %v5776_v23, %v10042_v34  ;;  %v5852_v36 = vmax.f32 %v5775_v17, 0.0  ;;  %v5932_v54 = vadd.f32 %v5931_v50, %v5851_v59 }
 0x63f   :  { %v5778_v25 = vpop.f32.mrf.mxu0  ;;  %v5666_v40 = vadd.f32 %v5665_v35, %v10045_v56  ;;  %v5853_v45 = vmax.f32 %v5664_v2, 0.0  ;;  %v5919_v28 = vadd.f32 %v5918_v9, %v5850_v8 }
 0x640   :  { %v5669_v1 = vpop.f32.mrf.mxu1  ;;  %v5855_v42 = vmax.f32 %v5777_v55, 0.0  ;;  %v5779_v38 = vadd.f32 %v5778_v25, %v10048_v19  ;;  %v5945_v3 = vadd.f32 %v5944_v57, %v5852_v36 }
 0x641   :  { %v5782_v32 = vpop.f32.mrf.mxu0  ;;  %v5670_v18 = vadd.f32 %v5669_v1, %v10039_v58  ;;  %v5854_v37 = vmax.f32 %v5666_v40, 0.0  ;;  %v5907_v13 = vadd.f32 %v5906_v51, %v5853_v45 }
 0x642   :  { %v5671_v46 = vpop.f32.mrf.mxu1  ;;  %v5783_v24 = vadd.f32 %v5782_v32, %v10042_v34  ;;  %v5933_v4 = vadd.f32 %v5932_v54, %v5855_v42  ;;  %v5856_v44 = vmax.f32 %v5779_v38, 0.0 }
 0x643   :  { %v5784_v5 = vpop.f32.mrf.mxu0  ;;  %v5672_v41 = vadd.f32 %v5671_v46, %v10045_v56  ;;  %v5857_v29 = vmax.f32 %v5670_v18, 0.0  ;;  %v5920_v14 = vadd.f32 %v5919_v28, %v5854_v37 }
 0x644   :  { %v5673_v20 = vpop.f32.mrf.mxu1  ;;  %v5785_v11 = vadd.f32 %v5784_v5, %v10048_v19  ;;  %v5859_v27 = vmax.f32 %v5783_v24, 0.0  ;;  %v5946_v2 = vadd.f32 %v5945_v3, %v5856_v44 }
 0x645   :  { %v5674_v60 = vadd.f32 %v5673_v20, %v10039_v58  ;;  %v5786_v6 = vpop.f32.mrf.mxu0  ;;  %v5858_v10 = vmax.f32 %v5672_v41, 0.0  ;;  %v5908_v12 = vadd.f32 %v5907_v13, %v5857_v29 }
 0x646   :  { %v5787_v52 = vadd.f32 %v5786_v6, %v10042_v34  ;;  %v5675_v62 = vpop.f32.mrf.mxu1  ;;  %v5860_v61 = vmax.f32 %v5785_v11, 0.0  ;;  %v5934_v55 = vadd.f32 %v5933_v4, %v5859_v27 }
 0x647   :  { %v5676_v22 = vadd.f32 %v5675_v62, %v10045_v56  ;;  %v5788_v31 = vpop.f32.mrf.mxu0  ;;  %v5861_v63 = vmax.f32 %v5674_v60, 0.0  ;;  %v5921_v47 = vadd.f32 %v5920_v14, %v5858_v10 }
 0x648   :  { %v5679_v43 = vpop.f32.mrf.mxu1  ;;  %v5863_v33 = vmax.f32 %v5787_v52, 0.0  ;;  %v5789_v15 = vadd.f32 %v5788_v31, %v10048_v19  ;;  %v5947_v7 = vadd.f32 %v5946_v2, %v5860_v61 }
 0x649   :  { %v5680_v23 = vadd.f32 %v5679_v43, %v10039_v58  ;;  %v5792_v49 = vpop.f32.mrf.mxu0  ;;  %v5862_v17 = vmax.f32 %v5676_v22, 0.0  ;;  %v5909_v40 = vadd.f32 %v5908_v12, %v5861_v63 }
 0x64a   :  { %v5793_v35 = vadd.f32 %v5792_v49, %v10042_v34  ;;  %v5681_v30 = vpop.f32.mrf.mxu1  ;;  %v5935_v59 = vadd.f32 %v5934_v55, %v5863_v33  ;;  %v5864_v46 = vmax.f32 %v5789_v15, 0.0 }
 0x64b   :  { %v5865_v25 = vmax.f32 %v5680_v23, 0.0  ;;  %v5682_v21 = vadd.f32 %v5681_v30, %v10045_v56  ;;  %v5794_v26 = vpop.f32.mrf.mxu0  ;;  %v5922_v36 = vadd.f32 %v5921_v47, %v5862_v17 }
 0x64c   :  { %v5867_v1 = vmax.f32 %v5793_v35, 0.0  ;;  %v5795_v48 = vadd.f32 %v5794_v26, %v10048_v19  ;;  %v5683_v53 = vpop.f32.mrf.mxu1  ;;  %v5948_v54 = vadd.f32 %v5947_v7, %v5864_v46 }
 0x64d   :  { %v5866_v32 = vmax.f32 %v5682_v21, 0.0  ;;  %v5684_v0 = vadd.f32 %v5683_v53, %v10039_v58  ;;  %v5796_v50 = vpop.f32.mrf.mxu0  ;;  %v5910_v18 = vadd.f32 %v5909_v40, %v5865_v25 }
 0x64e   :  { %v5797_v9 = vadd.f32 %v5796_v50, %v10042_v34  ;;  %v5685_v8 = vpop.f32.mrf.mxu1  ;;  %v5936_v38 = vadd.f32 %v5935_v59, %v5867_v1  ;;  %v5868_v24 = vmax.f32 %v5795_v48, 0.0 }
 0x64f   :  { %v5869_v5 = vmax.f32 %v5684_v0, 0.0  ;;  %v5686_v45 = vadd.f32 %v5685_v8, %v10045_v56  ;;  %v5798_v42 = vpop.f32.mrf.mxu0  ;;  %v5923_v41 = vadd.f32 %v5922_v36, %v5866_v32 }
 0x650   :  { %v5871_v20 = vmax.f32 %v5797_v9, 0.0  ;;  %v5799_v57 = vadd.f32 %v5798_v42, %v10048_v19  ;;  %v5689_v37 = vpop.f32.mrf.mxu1  ;;  %v5949_v29 = vadd.f32 %v5948_v54, %v5868_v24 }
 0x651   :  { %v5911_v60 = vadd.f32 %v5910_v18, %v5869_v5  ;;  %v5870_v6 = vmax.f32 %v5686_v45, 0.0  ;;  %v5802_v51 = vpop.f32.mrf.mxu0  ;;  %v5690_v61 = vadd.f32 %v5689_v37, %v10039_v58 }
 0x652   :  { %v5937_v11 = vadd.f32 %v5936_v38, %v5871_v20  ;;  %v5872_v52 = vmax.f32 %v5799_v57, 0.0  ;;  %v5691_v62 = vpop.f32.mrf.mxu1  ;;  %v5803_v35 = vadd.f32 %v5802_v51, %v10042_v34 }
 0x653   :  { %v5924_v28 = vadd.f32 %v5923_v41, %v5870_v6  ;;  %v5804_v3 = vpop.f32.mrf.mxu0  ;;  %v5912_v22 = vrot.slane %v5911_v60, 4  ;;  %v5692_v17 = vadd.f32 %v5691_v62, %v10045_v56  ;;  %v5873_v40 = vmax.f32 %v5690_v61, 0.0 }
 0x654   :  { %v5693_v31 = vpop.f32.mrf.mxu1  ;;  %v5938_v13 = vrot.slane %v5937_v11, 4  ;;  %v5950_v44 = vadd.f32 %v5949_v29, %v5872_v52  ;;  %v5805_v25 = vadd.f32 %v5804_v3, %v10048_v19  ;;  %v5875_v59 = vmax.f32 %v5803_v35, 0.0 }
 0x655   :  { %v5806_v4 = vpop.f32.mrf.mxu0  ;;  %v5925_v43 = vrot.slane %v5924_v28, 4  ;;  %v5913_v10 = vadd.f32 %v5912_v22, %v5911_v60  ;;  %v5694_v63 = vadd.f32 %v5693_v31, %v10039_v58  ;;  %v5874_v18 = vmax.f32 %v5692_v17, 0.0 }
 0x656   :  { %v5695_v27 = vpop.f32.mrf.mxu1  ;;  %v5939_v49 = vadd.f32 %v5938_v13, %v5937_v11  ;;  %v5951_v15 = vrot.slane %v5950_v44, 4  ;;  %v5807_v21 = vadd.f32 %v5806_v4, %v10042_v34  ;;  %v5876_v5 = vmax.f32 %v5805_v25, 0.0 }
 0x657   :  { %v5808_v14 = vpop.f32.mrf.mxu0  ;;  %v5926_v12 = vadd.f32 %v5925_v43, %v5924_v28  ;;  %v5914_v2 = vrot.slane %v5913_v10, 2  ;;  %v5877_v55 = vmax.f32 %v5694_v63, 0.0  ;;  %v5696_v1 = vadd.f32 %v5695_v27, %v10045_v56 }
 0x658   :  { %v5699_v23 = vpop.f32.mrf.mxu1  ;;  %v5809_v48 = vadd.f32 %v5808_v14, %v10048_v19  ;;  %v5940_v47 = vrot.slane %v5939_v49, 2  ;;  %v10092_v7 = vadd.f32 %v5951_v15, %v5950_v44  ;;  %v5879_v45 = vmax.f32 %v5807_v21, 0.0 }
 0x659   :  { %v5812_v33 = vpop.f32.mrf.mxu0  ;;  %v5700_v32 = vadd.f32 %v5699_v23, %v10039_v58  ;;  %v5927_v36 = vrot.slane %v5926_v12, 2  ;;  %v10096_v38 = vadd.f32 %v5914_v2, %v5913_v10  ;;  %v5957_v24 = vadd.f32 %v5877_v55, %v5873_v40 }
 0x65a   :  { %v5701_v30 = vpop.f32.mrf.mxu1  ;;  %v5813_v0 = vadd.f32 %v5812_v33, %v10042_v34  ;;  %v5878_v20 = vmax.f32 %v5696_v1, 0.0  ;;  %v5880_v57 = vmax.f32 %v5809_v48, 0.0  ;;  %v10098_v41 = vadd.f32 %v5940_v47, %v5939_v49 }
 0x65b   :  { %v5814_v26 = vpop.f32.mrf.mxu0  ;;  %v5702_v46 = vadd.f32 %v5701_v30, %v10045_v56  ;;  %v5881_v60 = vmax.f32 %v5700_v32, 0.0  ;;  %v5953_v11 = vrot.slane %v10092_v7, 2  ;;  %v10103_v29 = vadd.f32 %v5927_v36, %v5926_v12 }
 0x65c   :  { %v5703_v53 = vpop.f32.mrf.mxu1  ;;  %v5815_v9 = vadd.f32 %v5814_v26, %v10048_v19  ;;  %v5883_v6 = vmax.f32 %v5813_v0, 0.0  ;;  %v5983_v22 = vadd.f32 %v5879_v45, %v5875_v59  ;;  %v5970_v44 = vadd.f32 %v5878_v20, %v5874_v18 }
 0x65d   :  { %v5816_v50 = vpop.f32.mrf.mxu0  ;;  %v5704_v51 = vadd.f32 %v5703_v53, %v10039_v58  ;;  %v5882_v52 = vmax.f32 %v5702_v46, 0.0  ;;  %v5996_v27 = vadd.f32 %v5880_v57, %v5876_v5  ;;  %v5958_v63 = vadd.f32 %v5957_v24, %v5881_v60 }
 0x65e   :  { %v5705_v8 = vpop.f32.mrf.mxu1  ;;  %v5884_v62 = vmax.f32 %v5815_v9, 0.0  ;;  %v5817_v28 = vadd.f32 %v5816_v50, %v10042_v34  ;;  %v5984_v23 = vadd.f32 %v5983_v22, %v5883_v6 }
 0x65f   :  { %v5818_v42 = vpop.f32.mrf.mxu0  ;;  %v5885_v31 = vmax.f32 %v5704_v51, 0.0  ;;  %v5706_v13 = vadd.f32 %v5705_v8, %v10045_v56  ;;  %v5971_v15 = vadd.f32 %v5970_v44, %v5882_v52 }
 0x660   :  { %v5709_v37 = vpop.f32.mrf.mxu1  ;;  %v5887_v43 = vmax.f32 %v5817_v28, 0.0  ;;  %v5819_v14 = vadd.f32 %v5818_v42, %v10048_v19  ;;  %v5997_v35 = vadd.f32 %v5996_v27, %v5884_v62 }
 0x661   :  { %v5822_v54 = vpop.f32.mrf.mxu0  ;;  %v5886_v49 = vmax.f32 %v5706_v13, 0.0  ;;  %v5710_v61 = vadd.f32 %v5709_v37, %v10039_v58  ;;  %v5959_v25 = vadd.f32 %v5958_v63, %v5885_v31 }
 0x662   :  { %v5711_v3 = vpop.f32.mrf.mxu1  ;;  %v5888_v30 = vmax.f32 %v5819_v14, 0.0  ;;  %v5823_v12 = vadd.f32 %v5822_v54, %v10042_v34  ;;  %v5985_v1 = vadd.f32 %v5984_v23, %v5887_v43 }
 0x663   :  { %v5824_v4 = vpop.f32.mrf.mxu0  ;;  %v5889_v21 = vmax.f32 %v5710_v61, 0.0  ;;  %v5712_v26 = vadd.f32 %v5711_v3, %v10045_v56  ;;  %v5972_v48 = vadd.f32 %v5971_v15, %v5886_v49 }
 0x664   :  { %v5713_v10 = vpop.f32.mrf.mxu1  ;;  %v5825_v2 = vadd.f32 %v5824_v4, %v10048_v19  ;;  %v5891_v53 = vmax.f32 %v5823_v12, 0.0  ;;  %v5998_v32 = vadd.f32 %v5997_v35, %v5888_v30  ;;  %v5954_v35 = vadd.f32 %v5953_v11, %v10092_v7 }
 0x665   :  { %v5826_v33 = vpop.f32.mrf.mxu0  ;;  %v5714_v47 = vadd.f32 %v5713_v10, %v10039_v58  ;;  %v5890_v0 = vmax.f32 %v5712_v26, 0.0  ;;  %v5960_v9 = vadd.f32 %v5959_v25, %v5889_v21 }
 0x666   :  { %v5715_v17 = vpop.f32.mrf.mxu1  ;;  %v5892_v50 = vmax.f32 %v5825_v2, 0.0  ;;  %v5827_v59 = vadd.f32 %v5826_v33, %v10042_v34  ;;  %v5986_v45 = vadd.f32 %v5985_v1, %v5891_v53  ;;  %v5942_v2 = vrot.slane %v10098_v41, 1 }
 0x667   :  { %v5828_v55 = vpop.f32.mrf.mxu0  ;;  %v5893_v8 = vmax.f32 %v5714_v47, 0.0  ;;  %v5716_v36 = vadd.f32 %v5715_v17, %v10045_v56  ;;  %v5973_v42 = vadd.f32 %v5972_v48, %v5890_v0  ;;  %v5955_v53 = vrot.slane %v5954_v35, 1 }
 0x668   :  { %v5719_v40 = vpop.f32.mrf.mxu1  ;;  %v5829_v18 = vadd.f32 %v5828_v55, %v10048_v19  ;;  %v5895_v24 = vmax.f32 %v5827_v59, 0.0  ;;  %v5999_v37 = vadd.f32 %v5998_v32, %v5892_v50  ;;  %v5943_v0 = vadd.f32 %v5942_v2, %v10098_v41 }
 0x669   :  { %v5832_v46 = vpop.f32.mrf.mxu0  ;;  %v5720_v20 = vadd.f32 %v5719_v40, %v10039_v58  ;;  %v5894_v60 = vmax.f32 %v5716_v36, 0.0  ;;  %v5961_v52 = vadd.f32 %v5960_v9, %v5893_v8  ;;  %v5956_v36 = vadd.f32 %v5955_v53, %v5954_v35 }
 0x66a   :  { %v5721_v5 = vpop.f32.mrf.mxu1  ;;  %v5896_v6 = vmax.f32 %v5829_v18, 0.0  ;;  %v5833_v51 = vadd.f32 %v5832_v46, %v10042_v34  ;;  %v5987_v31 = vadd.f32 %v5986_v45, %v5895_v24 }
 0x66b   :  { %v5834_v57 = vpop.f32.mrf.mxu0  ;;  %v5897_v62 = vmax.f32 %v5720_v20, 0.0  ;;  %v5722_v28 = vadd.f32 %v5721_v5, %v10045_v56  ;;  %v5974_v13 = vadd.f32 %v5973_v42, %v5894_v60  ;;  %v6011_v20 = vmul.f32 0.015625, %v5943_v0 }
 0x66c   :  { %v5723_v54 = vpop.f32.mrf.mxu1  ;;  %v5835_v3 = vadd.f32 %v5834_v57, %v10048_v19  ;;  %v5899_v4 = vmax.f32 %v5833_v51, 0.0  ;;  %v6000_v43 = vadd.f32 %v5999_v37, %v5896_v6  ;;  %v6012_v51 = vmul.f32 0.015625, %v5956_v36 }
 0x66d   :  { %v5836_v22 = vpop.f32.mrf.mxu0  ;;  %v5724_v44 = vadd.f32 %v5723_v54, %v10039_v58  ;;  %v5898_v14 = vmax.f32 %v5722_v28, 0.0  ;;  %v5962_v49 = vadd.f32 %v5961_v52, %v5897_v62 }
 0x66e   :  { %v5725_v27 = vpop.f32.mrf.mxu1  ;;  %v5900_v10 = vmax.f32 %v5835_v3, 0.0  ;;  %v5837_v63 = vadd.f32 %v5836_v22, %v10042_v34  ;;  %v5988_v30 = vadd.f32 %v5987_v31, %v5899_v4  ;;  %v5916_v34 = vrot.slane %v10096_v38, 1 }
 0x66f   :  { %v5838_v23 = vpop.f32.mrf.mxu0  ;;  %v5901_v61 = vmax.f32 %v5724_v44, 0.0  ;;  %v5726_v33 = vadd.f32 %v5725_v27, %v10045_v56  ;;  %v5975_v12 = vadd.f32 %v5974_v13, %v5898_v14  ;;  %v6070_v3 = vpack.c.bf16 %v6011_v20, %v6011_v20 }
 0x670   :  { %v5839_v15 = vadd.f32 %v5838_v23, %v10048_v19  ;;  %v5903_v58 = vmax.f32 %v5837_v63, 0.0  ;;  %v6001_v17 = vadd.f32 %v6000_v43, %v5900_v10  ;;  %v5929_v19 = vrot.slane %v10103_v29, 1 }
 0x671   :  { %v5963_v25 = vadd.f32 %v5962_v49, %v5901_v61  ;;  %v5902_v21 = vmax.f32 %v5726_v33, 0.0  ;;  %v5917_v32 = vadd.f32 %v5916_v34, %v10096_v38  ;;  %v6026_v44 = vcombine.low %v6011_v20, %v6012_v51 }
 0x672   :  { %v5904_v26 = vmax.f32 %v5839_v15, 0.0  ;;  %v5989_v55 = vadd.f32 %v5988_v30, %v5903_v58  ;;  %v5930_v8 = vadd.f32 %v5929_v19, %v10103_v29  ;;  %v6150_v49 = vunpack.c.l.b16 %v6070_v3 }
 0x673   :  { %v5964_v1 = vrot.slane %v5963_v25, 4  ;;  %v5976_v56 = vadd.f32 %v5975_v12, %v5902_v21  ;;  %v6009_v24 = vmul.f32 0.015625, %v5917_v32  ;;  %v6071_v33 = vpack.c.bf16 %v6012_v51, %v6012_v51 }
 0x674   :  { %v6002_v48 = vadd.f32 %v6001_v17, %v5904_v26  ;;  %v5990_v47 = vrot.slane %v5989_v55, 4  ;;  %v6010_v38 = vmul.f32 0.015625, %v5930_v8  ;;  %v6040_v17 = vrot.slane %v6026_v44, %v9117_v39 }
 0x675   :  { %v5965_v7 = vadd.f32 %v5964_v1, %v5963_v25  ;;  %v5977_v11 = vrot.slane %v5976_v56, 4  ;;  %v6068_v28 = vpack.c.bf16 %v6009_v24, %v6009_v24 }
 0x676   :  { %v6003_v40 = vrot.slane %v6002_v48, 4  ;;  %v5991_v50 = vadd.f32 %v5990_v47, %v5989_v55  ;;  %v6025_v4 = vcombine.low %v6009_v24, %v6010_v38  ;;  %v6069_v63 = vpack.c.bf16 %v6010_v38, %v6010_v38 }
 0x677   :  { %v5966_v59 = vrot.slane %v5965_v7, 2  ;;  %v5978_v46 = vadd.f32 %v5977_v11, %v5976_v56  ;;  %v6148_v23 = vunpack.c.l.b16 %v6068_v28  ;;  %v6151_v56 = vunpack.c.l.b16 %v6071_v33 }
 0x678   :  { %v6004_v9 = vadd.f32 %v6003_v40, %v6002_v48  ;;  %v5992_v18 = vrot.slane %v5991_v50, 2  ;;  %v6033_v58 = vrot.slane %v6025_v4, %v9117_v39  ;;  %v6149_v2 = vunpack.c.l.b16 %v6069_v63 }
 0x679   :  { %v5967_v5 = vadd.f32 %v5966_v59, %v5965_v7  ;;  %v5979_v45 = vrot.slane %v5978_v46, 2 }
 0x67a   :  { %v6005_v42 = vrot.slane %v6004_v9, 2  ;;  %v5993_v57 = vadd.f32 %v5992_v18, %v5991_v50  ;;  %v6041_v40 = vcombine.low %v6033_v58, %v6040_v17 }
 0x67b   :  { %v5968_v37 = vrot.slane %v5967_v5, 1  ;;  %v5980_v60 = vadd.f32 %v5979_v45, %v5978_v46 }
 0x67c   :  { %v6006_v6 = vadd.f32 %v6005_v42, %v6004_v9  ;;  %v5994_v41 = vrot.slane %v5993_v57, 1 }
 0x67d   :  { %v5969_v54 = vadd.f32 %v5968_v37, %v5967_v5  ;;  %v5981_v52 = vrot.slane %v5980_v60, 1 }
 0x67e   :  { %v6007_v62 = vrot.slane %v6006_v6, 1  ;;  %v5995_v29 = vadd.f32 %v5994_v41, %v5993_v57 }
 0x67f   :  { %v6013_v22 = vmul.f32 0.015625, %v5969_v54  ;;  %v5982_v31 = vadd.f32 %v5981_v52, %v5980_v60 }
 0x680   :  { %v6008_v13 = vadd.f32 %v6007_v62, %v6006_v6  ;;  %v6015_v27 = vmul.f32 0.015625, %v5995_v29 }
 0x681   :  { %v6072_v43 = vpack.c.bf16 %v6013_v22, %v6013_v22  ;;  %v6014_v14 = vmul.f32 0.015625, %v5982_v31 }
 0x682   :  { %v6016_v10 = vmul.f32 0.015625, %v6008_v13  ;;  %v6074_v61 = vpack.c.bf16 %v6015_v27, %v6015_v27 }
 0x683   :  { %v6152_v15 = vunpack.c.l.b16 %v6072_v43  ;;  %v6042_v35 = vcombine.low %v6013_v22, %v6014_v14  ;;  %v6073_v12 = vpack.c.bf16 %v6014_v14, %v6014_v14 }
 0x684   :  { %v6043_v30 = vcombine.low %v6015_v27, %v6016_v10  ;;  %v6154_v25 = vunpack.c.l.b16 %v6074_v61  ;;  %v6075_v21 = vpack.c.bf16 %v6016_v10, %v6016_v10 }
 0x685   :  { %v6050_v26 = vrot.slane %v6042_v35, %v9117_v39  ;;  %v6153_v55 = vunpack.c.l.b16 %v6073_v12  ;;  %v6156_v1 = vsel %vm2940_vm5, %v6152_v15, %v6148_v23 }
 0x686   :  { %v6057_v34 = vrot.slane %v6043_v30, %v9117_v39  ;;  %v6155_v48 = vunpack.c.l.b16 %v6075_v21  ;;  %v6158_v19 = vsel %vm2940_vm5, %v6154_v25, %v6150_v49  ;;  %v6160_v32 = vpack.c.b16 %v6156_v1, %v6156_v1 }
 0x687   :  { %v6157_v53 = vsel %vm2940_vm5, %v6153_v55, %v6149_v2  ;;  %v6162_v59 = vpack.c.b16 %v6158_v19, %v6158_v19 }
 0x688   :  { %v6058_v47 = vcombine.low %v6050_v26, %v6057_v34  ;;  %v6161_v7 = vpack.c.b16 %v6157_v53, %v6157_v53  ;;  %v6159_v11 = vsel %vm2940_vm5, %v6155_v48, %v6151_v56 }
 0x689   :  { %v6163_v0 = vpack.c.b16 %v6159_v11, %v6159_v11 }
 0x68a   :  { %v6061_v50 = vrot.slane %v6058_v47, 7  ;;  %6392 = vmatprep.mubr.bf16.mxu1 %v6161_v7 }
 0x68b   :  { %6432 = vmatprep.mubr.bf16.mxu0 %v6163_v0  ;;  %6393 = vmatmul.mubr.bf16.vlgmr.msra.gmra.mxu1 %v6160_v32 }
 0x68c   :  { %v6062_v39 = vsel %vm2940_vm5, %v6061_v50, %v6041_v40  ;;  %6433 = vmatmul.mubr.bf16.vlgmr.msra.gmra.mxu0 %v6162_v59 }
 0x68d   :  { %v6063_v46 = vsel %vm2942_vm6, %v6061_v50, %v6062_v39 }
 0x68e   :  { %v6064_v9 = vsel %vm2944_vm7, %v6061_v50, %v6063_v46 }
 0x68f   :  { %v6065_v8 = vsel %vm2946_vm8, %v6061_v50, %v6064_v9 }
 0x690   :  { %6067 = vst [vmem:[#allocation2 + $0x18] sm:$0xff] %v6065_v8 }
 0x691   :  { %7664 = shalt.err (!%p7661_p4)
}
 0x692   :  { %6459 = dma.vmem_to_hbm [thread:$0]  %s6457_s26, 512, %s10163_s9, [#allocation3]   ;;  %v6942_v38 = vld [vmem:[%s10162_s8] ss:$0 sm:$0xff] }
 0x693   :  { %s7701_s4 = smov [#allocation4]  }
 0x694   :  { %s6466_s29 = sshll.u32 %s7701_s4, 4  ;;  %s6467_s29 = int_to_ptr.vmem [resolvable:$true] %s6466_s29 }
 0x695   :  { %s7673_s9 = scalar_lea.vmem %s6467_s29, 32  ;;  %p7678_p6 = scmp.lt.s32.totalorder %s6467_s29, %s6467_s29 }
 0x696   :  { %p7674_p5 = scmp.ne.s32.totalorder %s6467_s29, %s7673_s9  ;;  %p7679_p7 = scmp.lt.s32.totalorder %s7673_s9, %s7673_s9 }
 0x698   :  { %p7680_p8 = por %p7679_p7, %p7678_p6 }
 0x69a   :  { %p7681_p9 = pnand %p7680_p8, %p7674_p5 }
 0x74b   :  { %v7329_v36 = vpop.f32.mrf.mxu1 }
 0x74c   :  { %v7351_v18 = vpop.f32.mrf.mxu0 }
 0x74d   :  { %v7330_v5 = vpop.f32.mrf.mxu1 }
 0x74e   :  { %v7331_v45 = vadd.f32 %v7330_v5, %v7329_v36  ;;  %v7352_v42 = vpop.f32.mrf.mxu0 }
 0x74f   :  { %v7353_v24 = vadd.f32 %v7352_v42, %v7351_v18  ;;  %v7332_v20 = vpop.f32.mrf.mxu1 }
 0x750   :  { %v7354_v57 = vpop.f32.mrf.mxu0 }
 0x751   :  { %v6435_v37 = vadd.f32 %v7353_v24, %v7331_v45  ;;  %v7333_v60 = vpop.f32.mrf.mxu1 }
 0x752   :  { %v7355_v6 = vpop.f32.mrf.mxu0 }
 0x753   :  { %v6440_v51 = vadd.f32 %v6435_v37, %v10033_v16 }
 0x755   :  { %v6448_v41 = vadd.f32 %v6942_v38, %v6440_v51 }
 0x757   :  { %6449 = vst [vmem:[#allocation4] sm:$0x3] %v6448_v41 }
 0x758   :  { %7684 = shalt.err (!%p7681_p9)
}
 0x759   :  { %6469 = dma.vmem_to_hbm [thread:$0]  %s6467_s29, 32, %s10164_s10, [#allocation5]  }
 0x75a   :  { %7693 = dma.done.wait [#allocation3], 512  }
 0x75b   :  { %7694 = vsyncadd [#allocation3], 4294966784 }
 0x75c   :  { %7695 = dma.done.wait [#allocation5], 32  }
 0x75d   :  { %7696 = vsyncadd [#allocation5], 4294967264 }
 0x75e   :  { %6476 = vsyncpa [#allocation3], 1 }
 0x75f   :  { %6477 = vsyncpa [#allocation5], 1 }

</bundles_post_ra>
